<compile_context>
chip_gen: v7x
topology: tpu7x:2x2x1
jax: 0.10.0
libtpu: 0.0.40
codegen_flags: <defaults>
</compile_context>

<pallas_src>
import jax
import jax.numpy as jnp
from jax import lax
from jax.experimental import pallas as pl
from jax.experimental.pallas import tpu as pltpu


def _layernorm(x, g, b, eps=1e-5):
    mean = jnp.mean(x, axis=-1, keepdims=True)
    var = jnp.mean(jnp.square(x - mean), axis=-1, keepdims=True)
    return (x - mean) * lax.rsqrt(var + eps) * g + b


def _make_kernel(S, B, H):
    H2, H3 = 2 * H, 3 * H

    def kernel(x_ref, w_lin_ref, b_lin_ref,
               wih_f_ref, whh_f_ref, gib_f_ref, bhn_f_ref,
               wih_b_ref, whh_b_ref, gib_b_ref, bhn_b_ref,
               ln_w_ref, ln_b_ref, w_new_ref, b_new_ref,
               out_ref, hid_ref,
               gi_f_ref, gi_b_ref, of_ref, ob_ref):
        Din = x_ref.shape[-1]
        mm_dt = w_lin_ref.dtype          # bf16 on the fast MXU path, else f32

        # ---- Stage 1: Linear + tanh as one sublane-dense (S*B, Din) @ (Din, H) matmul ---
        x2d = x_ref[...].reshape(S * B, Din).astype(mm_dt)
        lin = jnp.tanh(
            jnp.dot(x2d, w_lin_ref[...], preferred_element_type=jnp.float32)
            + b_lin_ref[...])                                        # (S*B, H) f32
        lin_mm = lin.astype(mm_dt)

        # ---- Stage 2: hoist input-side gate projections out of the recurrence ----------
        # One (S*B, H) @ (H, 3H) matmul per direction; gate order [r | z | n].
        # Bias = [b_ir + b_hr, b_iz + b_hz, b_in] (recurrent r/z biases folded here).
        gi_f_ref[...] = (
            jnp.dot(lin_mm, wih_f_ref[...], preferred_element_type=jnp.float32)
            + gib_f_ref[...]).reshape(S, B, H3)
        gi_b_ref[...] = (
            jnp.dot(lin_mm, wih_b_ref[...], preferred_element_type=jnp.float32)
            + gib_b_ref[...]).reshape(S, B, H3)

        whh_f = whh_f_ref[...]                                       # resident across steps
        whh_b = whh_b_ref[...]
        # Hoisted broadcasts (JAX does not CSE broadcast_in_dim inside the unrolled loop).
        bhn_f = jnp.broadcast_to(bhn_f_ref[...], (B, H))
        bhn_b = jnp.broadcast_to(bhn_b_ref[...], (B, H))

        def gru_step(gi, h, whh, bhn):
            # Single fused (B, H) @ (H, 3H) recurrent matmul per timestep.
            gh = jnp.dot(h, whh, preferred_element_type=jnp.float32)
            # r/z: one lane-0-aligned [0:2H) slice and a single fused add (fewer rotates).
            rz = jax.nn.sigmoid(gi[:, :H2] + gh[:, :H2])
            r = rz[:, :H]
            z = rz[:, H:]
            # b_hn must stay here: r multiplies (gh_n + b_hn).
            n = jnp.tanh(gi[:, H2:] + r * (gh[:, H2:] + bhn))
            return (1.0 - z) * n + z * h

        # ---- Stage 3: merged bidirectional recurrence (two independent chains) ---------
        def body(i, carry):
            h_f, h_b = carry
            t_b = S - 1 - i
            h_f = gru_step(gi_f_ref[i], h_f, whh_f, bhn_f)
            h_b = gru_step(gi_b_ref[t_b], h_b, whh_b, bhn_b)
            of_ref[i] = h_f          # per-direction scratch (no out_ref sliver stores)
            ob_ref[t_b] = h_b
            return (h_f, h_b)

        h0 = jnp.zeros((B, H), jnp.float32)
        # TODO(synk): cap unroll at 2-4 for production S (vreg pressure); fine at S=8.
        h_f, h_b = lax.fori_loop(0, S, body, (h0, h0), unroll=True)

        ln_w, ln_b = ln_w_ref[...], ln_b_ref[...]                    # (1, 2H)
        g_f, g_b = ln_w[:, :H], ln_w[:, H:]
        o_f, o_b = ln_b[:, :H], ln_b[:, H:]

        def ln_cat_halves(xf, xb):
            # LayerNorm over the concatenated channel dim (2H), stats computed from the
            # two halves directly (no lane-axis concat needed for the statistics).
            s1 = jnp.sum(xf, -1, keepdims=True) + jnp.sum(xb, -1, keepdims=True)
            s2 = (jnp.sum(xf * xf, -1, keepdims=True)
                  + jnp.sum(xb * xb, -1, keepdims=True))
            mean = s1 * (1.0 / H2)
            var = s2 * (1.0 / H2) - mean * mean
            inv = lax.rsqrt(var + 1e-5)
            return (xf - mean) * inv * g_f + o_f, (xb - mean) * inv * g_b + o_b

        # ---- Stage 4: hidden head (split Linear_new; no (B, 2H) concat) -----------------
        nhf, nhb = ln_cat_halves(h_f, h_b)
        w_new = w_new_ref[...]
        hid_ref[...] = jnp.tanh(
            jnp.dot(nhf, w_new[:H, :], preferred_element_type=jnp.float32)
            + jnp.dot(nhb, w_new[H:, :], preferred_element_type=jnp.float32)
            + b_new_ref[...])

        # ---- Stage 5: output LayerNorm — one fused read of both scratches, one store ----
        nof, nob = ln_cat_halves(of_ref[...], ob_ref[...])
        # TODO(synk): for production pick/pad H so 2H is a multiple of 128 to make this
        #             store lane-dense (unmasked vst); at 2H=64 it is lane-masked.
        out_ref[...] = jnp.concatenate([nof, nob], axis=-1)

    return kernel


def _fuse_direction(wih3, whh3, bih3, bhh3):
    """Fuse per-gate weights [r, z, n] into (H, 3H) matrices (pre-transposed for x @ W)
    and fold the recurrent biases b_hr/b_hz into the input-side bias. b_hn must remain
    separate because r multiplies (gh_n + b_hn)."""
    wih = jnp.concatenate([wih3[0], wih3[1], wih3[2]], axis=-1)            # (H, 3H)
    whh = jnp.concatenate([whh3[0], whh3[1], whh3[2]], axis=-1)            # (H, 3H)
    gib = jnp.concatenate([bih3[0] + bhh3[0], bih3[1] + bhh3[1], bih3[2]],
                          axis=-1).reshape(1, -1)                          # (1, 3H)
    bhn = bhh3[2].reshape(1, -1)                                           # (1, H)
    return wih, whh, gib, bhn


def s2s_encoder(x, params, *, bf16_matmul=False):
    S, B, _ = x.shape
    H = params['w_lin'].shape[1]
    mm_dt = jnp.bfloat16 if bf16_matmul else jnp.float32

    wih_f, whh_f, gib_f, bhn_f = _fuse_direction(params['wih_f'], params['whh_f'],
                                                 params['bih_f'], params['bhh_f'])
    wih_b, whh_b, gib_b, bhn_b = _fuse_direction(params['wih_b'], params['whh_b'],
                                                 params['bih_b'], params['bhh_b'])

    vmem = pl.BlockSpec(memory_space=pltpu.MemorySpace.VMEM)
    fn = pl.pallas_call(
        _make_kernel(S, B, H),
        out_shape=(
            jax.ShapeDtypeStruct((S, B, 2 * H), jnp.float32),
            jax.ShapeDtypeStruct((B, H), jnp.float32),
        ),
        in_specs=[vmem] * 15,
        out_specs=(vmem, vmem),
        scratch_shapes=[
            pltpu.VMEM((S, B, 3 * H), jnp.float32),   # fwd input-side gate projections
            pltpu.VMEM((S, B, 3 * H), jnp.float32),   # bwd input-side gate projections
            pltpu.VMEM((S, B, H), jnp.float32),       # fwd per-step hidden states
            pltpu.VMEM((S, B, H), jnp.float32),       # bwd per-step hidden states
        ],
    )
    output, hidden = fn(
        x,
        params['w_lin'].astype(mm_dt), params['b_lin'],
        wih_f.astype(mm_dt), whh_f, gib_f, bhn_f,
        wih_b.astype(mm_dt), whh_b, gib_b, bhn_b,
        params['ln_w'], params['ln_b'], params['w_new'], params['b_new'],
    )
    return output, hidden.reshape(1, B, H)


# ----------------------------- pure-JAX reference -------------------------------------
def _gru_cell_ref(x_t, h, wih, whh, bih, bhh):
    gi_r = x_t @ wih[0] + bih[0]
    gi_z = x_t @ wih[1] + bih[1]
    gi_n = x_t @ wih[2] + bih[2]
    gh_r = h @ whh[0] + bhh[0]
    gh_z = h @ whh[1] + bhh[1]
    gh_n = h @ whh[2] + bhh[2]
    r = jax.nn.sigmoid(gi_r + gh_r)
    z = jax.nn.sigmoid(gi_z + gh_z)
    n = jnp.tanh(gi_n + r * gh_n)
    return (1.0 - z) * n + z * h


def s2s_encoder_ref(x, p):
    """Pure-JAX reference (same math, unfused weights) for correctness checking."""
    lin = jnp.tanh(jnp.einsum('sbd,dh->sbh', x, p['w_lin']) + p['b_lin'])
    B = x.shape[1]
    H = p['w_lin'].shape[1]
    h0 = jnp.zeros((B, H), jnp.float32)

    def f_step(h, xt):
        h = _gru_cell_ref(xt, h, p['wih_f'], p['whh_f'], p['bih_f'], p['bhh_f'])
        return h, h

    def b_step(h, xt):
        h = _gru_cell_ref(xt, h, p['wih_b'], p['whh_b'], p['bih_b'], p['bhh_b'])
        return h, h

    h_f, out_f = lax.scan(f_step, h0, lin)
    h_b, out_b_rev = lax.scan(b_step, h0, lin[::-1])
    out_b = out_b_rev[::-1]
    output = _layernorm(jnp.concatenate([out_f, out_b], -1), p['ln_w'], p['ln_b'])
    hid = _layernorm(jnp.concatenate([h_f, h_b], -1), p['ln_w'], p['ln_b'])
    hid = jnp.tanh(hid @ p['w_new'] + p['b_new'])
    return output, hid[None]


if __name__ == "__main__":
    # seq=8, batch=16 (module default batch_size; 16 sublane rows per recurrent matmul),
    # input_size=16, hidden_size=32.
    S, B, Din, H = 8, 16, 16, 32

    key = jax.random.PRNGKey(0)
    ks = jax.random.split(key, 13)

    def rnorm(k, shape, scale=0.1):
        return (scale * jax.random.normal(k, shape)).astype(jnp.float32)

    params = {
        'w_lin': rnorm(ks[0], (Din, H)),
        'b_lin': rnorm(ks[1], (1, H)),
        'wih_f': rnorm(ks[2], (3, H, H)),   # gates [r, z, n], pre-transposed
        'whh_f': rnorm(ks[3], (3, H, H)),
        'bih_f': rnorm(ks[4], (3, H)),
        'bhh_f': rnorm(ks[5], (3, H)),
        'wih_b': rnorm(ks[6], (3, H, H)),
        'whh_b': rnorm(ks[7], (3, H, H)),
        'bih_b': rnorm(ks[8], (3, H)),
        'bhh_b': rnorm(ks[9], (3, H)),
        'ln_w': jnp.ones((1, 2 * H), jnp.float32),
        'ln_b': jnp.zeros((1, 2 * H), jnp.float32),
        'w_new': rnorm(ks[10], (2 * H, H)),
        'b_new': rnorm(ks[11], (1, H)),
    }
    x = rnorm(ks[12], (S, B, Din), scale=1.0)

    ref_out, ref_hid = jax.block_until_ready(s2s_encoder_ref(x, params))

    # f32-MXU path: strict numerical check against the PyTorch-equivalent reference.
    out, hid = jax.block_until_ready(s2s_encoder(x, params, bf16_matmul=False))
    assert out.shape == (S, B, 2 * H) and hid.shape == (1, B, H)
    assert jnp.allclose(out, ref_out, atol=1e-4, rtol=1e-4)
    assert jnp.allclose(hid, ref_hid, atol=1e-4, rtol=1e-4)

    # bf16-MXU path for the bulk Stage-1/2 matmuls (v5e/v6e throughput); loose tolerance
    # accounts for bf16 input rounding feeding tanh/sigmoid + LayerNorm amplification.
    out16, hid16 = jax.block_until_ready(s2s_encoder(x, params, bf16_matmul=True))
    assert out16.shape == (S, B, 2 * H) and hid16.shape == (1, B, H)
    assert jnp.allclose(out16, ref_out, atol=1e-1, rtol=1e-1)
    assert jnp.allclose(hid16, ref_hid, atol=1e-1, rtol=1e-1)

    print("KERNEL_OK")
</pallas_src>

<mosaic_0001>
module attributes {stable_mosaic.version = 11 : i64} {
  func.func @kernel(%arg0: memref<8x16x16xf32, #tpu.memory_space<vmem>>, %arg1: memref<16x32xf32, #tpu.memory_space<vmem>>, %arg2: memref<1x32xf32, #tpu.memory_space<vmem>>, %arg3: memref<32x96xf32, #tpu.memory_space<vmem>>, %arg4: memref<32x96xf32, #tpu.memory_space<vmem>>, %arg5: memref<1x96xf32, #tpu.memory_space<vmem>>, %arg6: memref<1x32xf32, #tpu.memory_space<vmem>>, %arg7: memref<32x96xf32, #tpu.memory_space<vmem>>, %arg8: memref<32x96xf32, #tpu.memory_space<vmem>>, %arg9: memref<1x96xf32, #tpu.memory_space<vmem>>, %arg10: memref<1x32xf32, #tpu.memory_space<vmem>>, %arg11: memref<1x64xf32, #tpu.memory_space<vmem>>, %arg12: memref<1x64xf32, #tpu.memory_space<vmem>>, %arg13: memref<64x32xf32, #tpu.memory_space<vmem>>, %arg14: memref<1x32xf32, #tpu.memory_space<vmem>>, %arg15: memref<8x16x64xf32, #tpu.memory_space<vmem>>, %arg16: memref<16x32xf32, #tpu.memory_space<vmem>>, %arg17: memref<8x16x96xf32, #tpu.memory_space<vmem>>, %arg18: memref<8x16x96xf32, #tpu.memory_space<vmem>>, %arg19: memref<8x16x32xf32, #tpu.memory_space<vmem>>, %arg20: memref<8x16x32xf32, #tpu.memory_space<vmem>>) attributes {dimension_semantics = [], scalar_prefetch = 0 : i64, scratch_operands = 4 : i64, tpu.core_type = #tpu.core_type<tc>} {
    %c0 = arith.constant 0 : index
    %c0_0 = arith.constant 0 : index
    %c0_1 = arith.constant 0 : index
    %0 = vector.load %arg0[%c0, %c0_0, %c0_1] : memref<8x16x16xf32, #tpu.memory_space<vmem>>, vector<8x16x16xf32>
    %1 = vector.shape_cast %0 : vector<8x16x16xf32> to vector<128x16xf32>
    %c0_2 = arith.constant 0 : index
    %c0_3 = arith.constant 0 : index
    %2 = vector.load %arg1[%c0_2, %c0_3] : memref<16x32xf32, #tpu.memory_space<vmem>>, vector<16x32xf32>
    %cst = arith.constant dense<0.000000e+00> : vector<128x32xf32>
    %3 = tpu.matmul %1, %2, %cst {dimension_numbers = #tpu.dot_dimension_numbers<[1], [0], [0], [1], [0, 0, 1, 1], [], []>} : vector<128x16xf32>, vector<16x32xf32>, vector<128x32xf32> -> vector<128x32xf32>
    %c0_4 = arith.constant 0 : index
    %c0_5 = arith.constant 0 : index
    %4 = vector.load %arg2[%c0_4, %c0_5] : memref<1x32xf32, #tpu.memory_space<vmem>>, vector<1x32xf32>
    %5 = vector.broadcast %4 : vector<1x32xf32> to vector<128x32xf32>
    %6 = arith.addf %3, %5 : vector<128x32xf32>
    %7 = math.tanh %6 : vector<128x32xf32>
    %c0_6 = arith.constant 0 : index
    %c0_7 = arith.constant 0 : index
    %8 = vector.load %arg3[%c0_6, %c0_7] : memref<32x96xf32, #tpu.memory_space<vmem>>, vector<32x96xf32>
    %cst_8 = arith.constant dense<0.000000e+00> : vector<128x96xf32>
    %9 = tpu.matmul %7, %8, %cst_8 {dimension_numbers = #tpu.dot_dimension_numbers<[1], [0], [0], [1], [0, 0, 1, 1], [], []>} : vector<128x32xf32>, vector<32x96xf32>, vector<128x96xf32> -> vector<128x96xf32>
    %c0_9 = arith.constant 0 : index
    %c0_10 = arith.constant 0 : index
    %10 = vector.load %arg5[%c0_9, %c0_10] : memref<1x96xf32, #tpu.memory_space<vmem>>, vector<1x96xf32>
    %11 = vector.broadcast %10 : vector<1x96xf32> to vector<128x96xf32>
    %12 = arith.addf %9, %11 : vector<128x96xf32>
    %13 = vector.shape_cast %12 : vector<128x96xf32> to vector<8x16x96xf32>
    %c0_11 = arith.constant 0 : index
    %c0_12 = arith.constant 0 : index
    %c0_13 = arith.constant 0 : index
    %14 = vector.load %arg17[%c0_11, %c0_12, %c0_13] : memref<8x16x96xf32, #tpu.memory_space<vmem>>, vector<8x16x96xf32>
    tpu.vector_store %arg17[%c0_11, %c0_12, %c0_13], %13 {strides = array<i32>} : memref<8x16x96xf32, #tpu.memory_space<vmem>>, vector<8x16x96xf32>,
    %c0_14 = arith.constant 0 : index
    %c0_15 = arith.constant 0 : index
    %15 = vector.load %arg7[%c0_14, %c0_15] : memref<32x96xf32, #tpu.memory_space<vmem>>, vector<32x96xf32>
    %cst_16 = arith.constant dense<0.000000e+00> : vector<128x96xf32>
    %16 = tpu.matmul %7, %15, %cst_16 {dimension_numbers = #tpu.dot_dimension_numbers<[1], [0], [0], [1], [0, 0, 1, 1], [], []>} : vector<128x32xf32>, vector<32x96xf32>, vector<128x96xf32> -> vector<128x96xf32>
    %c0_17 = arith.constant 0 : index
    %c0_18 = arith.constant 0 : index
    %17 = vector.load %arg9[%c0_17, %c0_18] : memref<1x96xf32, #tpu.memory_space<vmem>>, vector<1x96xf32>
    %18 = vector.broadcast %17 : vector<1x96xf32> to vector<128x96xf32>
    %19 = arith.addf %16, %18 : vector<128x96xf32>
    %20 = vector.shape_cast %19 : vector<128x96xf32> to vector<8x16x96xf32>
    %c0_19 = arith.constant 0 : index
    %c0_20 = arith.constant 0 : index
    %c0_21 = arith.constant 0 : index
    %21 = vector.load %arg18[%c0_19, %c0_20, %c0_21] : memref<8x16x96xf32, #tpu.memory_space<vmem>>, vector<8x16x96xf32>
    tpu.vector_store %arg18[%c0_19, %c0_20, %c0_21], %20 {strides = array<i32>} : memref<8x16x96xf32, #tpu.memory_space<vmem>>, vector<8x16x96xf32>,
    %c0_22 = arith.constant 0 : index
    %c0_23 = arith.constant 0 : index
    %22 = vector.load %arg4[%c0_22, %c0_23] : memref<32x96xf32, #tpu.memory_space<vmem>>, vector<32x96xf32>
    %c0_24 = arith.constant 0 : index
    %c0_25 = arith.constant 0 : index
    %23 = vector.load %arg8[%c0_24, %c0_25] : memref<32x96xf32, #tpu.memory_space<vmem>>, vector<32x96xf32>
    %c0_26 = arith.constant 0 : index
    %c0_27 = arith.constant 0 : index
    %24 = vector.load %arg6[%c0_26, %c0_27] : memref<1x32xf32, #tpu.memory_space<vmem>>, vector<1x32xf32>
    %25 = vector.shape_cast %24 : vector<1x32xf32> to vector<1x32xf32>
    %26 = vector.broadcast %25 : vector<1x32xf32> to vector<16x32xf32>
    %c0_28 = arith.constant 0 : index
    %c0_29 = arith.constant 0 : index
    %27 = vector.load %arg10[%c0_28, %c0_29] : memref<1x32xf32, #tpu.memory_space<vmem>>, vector<1x32xf32>
    %28 = vector.shape_cast %27 : vector<1x32xf32> to vector<1x32xf32>
    %29 = vector.broadcast %28 : vector<1x32xf32> to vector<16x32xf32>
    %cst_30 = arith.constant 0.000000e+00 : f32
    %30 = vector.broadcast %cst_30 : f32 to vector<16x32xf32>
    %c0_i32 = arith.constant 0 : i32
    %c7_i32 = arith.constant 7 : i32
    %31 = arith.subi %c7_i32, %c0_i32 : i32
    %32 = arith.index_cast %c0_i32 : i32 to index
    %c0_31 = arith.constant 0 : index
    %c0_32 = arith.constant 0 : index
    %33 = vector.load %arg17[%32, %c0_31, %c0_32] : memref<8x16x96xf32, #tpu.memory_space<vmem>>, vector<1x16x96xf32>
    %34 = vector.shape_cast %33 : vector<1x16x96xf32> to vector<16x96xf32>
    %cst_33 = arith.constant dense<0.000000e+00> : vector<16x96xf32>
    %35 = tpu.matmul %30, %22, %cst_33 {dimension_numbers = #tpu.dot_dimension_numbers<[1], [0], [0], [1], [0, 0, 1, 1], [], []>} : vector<16x32xf32>, vector<32x96xf32>, vector<16x96xf32> -> vector<16x96xf32>
    %36 = vector.extract_strided_slice %34 {offsets = [0, 0], sizes = [16, 64], strides = [1, 1]} : vector<16x96xf32> to vector<16x64xf32>
    %37 = vector.extract_strided_slice %35 {offsets = [0, 0], sizes = [16, 64], strides = [1, 1]} : vector<16x96xf32> to vector<16x64xf32>
    %38 = arith.addf %36, %37 : vector<16x64xf32>
    %39 = arith.negf %38 : vector<16x64xf32>
    %40 = math.exp %39 : vector<16x64xf32>
    %cst_34 = arith.constant 1.000000e+00 : f32
    %41 = vector.broadcast %cst_34 : f32 to vector<16x64xf32>
    %42 = arith.addf %41, %40 : vector<16x64xf32>
    %43 = arith.divf %41, %42 : vector<16x64xf32>
    %44 = vector.extract_strided_slice %43 {offsets = [0, 0], sizes = [16, 32], strides = [1, 1]} : vector<16x64xf32> to vector<16x32xf32>
    %45 = vector.extract_strided_slice %43 {offsets = [0, 32], sizes = [16, 32], strides = [1, 1]} : vector<16x64xf32> to vector<16x32xf32>
    %46 = vector.extract_strided_slice %34 {offsets = [0, 64], sizes = [16, 32], strides = [1, 1]} : vector<16x96xf32> to vector<16x32xf32>
    %47 = vector.extract_strided_slice %35 {offsets = [0, 64], sizes = [16, 32], strides = [1, 1]} : vector<16x96xf32> to vector<16x32xf32>
    %48 = arith.addf %47, %26 : vector<16x32xf32>
    %49 = arith.mulf %44, %48 : vector<16x32xf32>
    %50 = arith.addf %46, %49 : vector<16x32xf32>
    %51 = math.tanh %50 : vector<16x32xf32>
    %cst_35 = arith.constant 1.000000e+00 : f32
    %52 = vector.broadcast %cst_35 : f32 to vector<16x32xf32>
    %53 = arith.subf %52, %45 : vector<16x32xf32>
    %54 = arith.mulf %53, %51 : vector<16x32xf32>
    %55 = arith.mulf %45, %30 : vector<16x32xf32>
    %56 = arith.addf %54, %55 : vector<16x32xf32>
    %57 = arith.index_cast %31 : i32 to index
    %c0_36 = arith.constant 0 : index
    %c0_37 = arith.constant 0 : index
    %58 = vector.load %arg18[%57, %c0_36, %c0_37] : memref<8x16x96xf32, #tpu.memory_space<vmem>>, vector<1x16x96xf32>
    %59 = vector.shape_cast %58 : vector<1x16x96xf32> to vector<16x96xf32>
    %cst_38 = arith.constant dense<0.000000e+00> : vector<16x96xf32>
    %60 = tpu.matmul %30, %23, %cst_38 {dimension_numbers = #tpu.dot_dimension_numbers<[1], [0], [0], [1], [0, 0, 1, 1], [], []>} : vector<16x32xf32>, vector<32x96xf32>, vector<16x96xf32> -> vector<16x96xf32>
    %61 = vector.extract_strided_slice %59 {offsets = [0, 0], sizes = [16, 64], strides = [1, 1]} : vector<16x96xf32> to vector<16x64xf32>
    %62 = vector.extract_strided_slice %60 {offsets = [0, 0], sizes = [16, 64], strides = [1, 1]} : vector<16x96xf32> to vector<16x64xf32>
    %63 = arith.addf %61, %62 : vector<16x64xf32>
    %64 = arith.negf %63 : vector<16x64xf32>
    %65 = math.exp %64 : vector<16x64xf32>
    %cst_39 = arith.constant 1.000000e+00 : f32
    %66 = vector.broadcast %cst_39 : f32 to vector<16x64xf32>
    %67 = arith.addf %66, %65 : vector<16x64xf32>
    %68 = arith.divf %66, %67 : vector<16x64xf32>
    %69 = vector.extract_strided_slice %68 {offsets = [0, 0], sizes = [16, 32], strides = [1, 1]} : vector<16x64xf32> to vector<16x32xf32>
    %70 = vector.extract_strided_slice %68 {offsets = [0, 32], sizes = [16, 32], strides = [1, 1]} : vector<16x64xf32> to vector<16x32xf32>
    %71 = vector.extract_strided_slice %59 {offsets = [0, 64], sizes = [16, 32], strides = [1, 1]} : vector<16x96xf32> to vector<16x32xf32>
    %72 = vector.extract_strided_slice %60 {offsets = [0, 64], sizes = [16, 32], strides = [1, 1]} : vector<16x96xf32> to vector<16x32xf32>
    %73 = arith.addf %72, %29 : vector<16x32xf32>
    %74 = arith.mulf %69, %73 : vector<16x32xf32>
    %75 = arith.addf %71, %74 : vector<16x32xf32>
    %76 = math.tanh %75 : vector<16x32xf32>
    %cst_40 = arith.constant 1.000000e+00 : f32
    %77 = vector.broadcast %cst_40 : f32 to vector<16x32xf32>
    %78 = arith.subf %77, %70 : vector<16x32xf32>
    %79 = arith.mulf %78, %76 : vector<16x32xf32>
    %80 = arith.mulf %70, %30 : vector<16x32xf32>
    %81 = arith.addf %79, %80 : vector<16x32xf32>
    %82 = arith.index_cast %c0_i32 : i32 to index
    %c0_41 = arith.constant 0 : index
    %c0_42 = arith.constant 0 : index
    %83 = vector.load %arg19[%82, %c0_41, %c0_42] : memref<8x16x32xf32, #tpu.memory_space<vmem>>, vector<1x16x32xf32>
    %84 = vector.shape_cast %83 : vector<1x16x32xf32> to vector<16x32xf32>
    %85 = vector.shape_cast %56 : vector<16x32xf32> to vector<1x16x32xf32>
    tpu.vector_store %arg19[%82, %c0_41, %c0_42], %85 {strides = array<i32>} : memref<8x16x32xf32, #tpu.memory_space<vmem>>, vector<1x16x32xf32>,
    %86 = arith.index_cast %31 : i32 to index
    %c0_43 = arith.constant 0 : index
    %c0_44 = arith.constant 0 : index
    %87 = vector.load %arg20[%86, %c0_43, %c0_44] : memref<8x16x32xf32, #tpu.memory_space<vmem>>, vector<1x16x32xf32>
    %88 = vector.shape_cast %87 : vector<1x16x32xf32> to vector<16x32xf32>
    %89 = vector.shape_cast %81 : vector<16x32xf32> to vector<1x16x32xf32>
    tpu.vector_store %arg20[%86, %c0_43, %c0_44], %89 {strides = array<i32>} : memref<8x16x32xf32, #tpu.memory_space<vmem>>, vector<1x16x32xf32>,
    %c1_i32 = arith.constant 1 : i32
    %c7_i32_45 = arith.constant 7 : i32
    %90 = arith.subi %c7_i32_45, %c1_i32 : i32
    %91 = arith.index_cast %c1_i32 : i32 to index
    %c0_46 = arith.constant 0 : index
    %c0_47 = arith.constant 0 : index
    %92 = vector.load %arg17[%91, %c0_46, %c0_47] : memref<8x16x96xf32, #tpu.memory_space<vmem>>, vector<1x16x96xf32>
    %93 = vector.shape_cast %92 : vector<1x16x96xf32> to vector<16x96xf32>
    %cst_48 = arith.constant dense<0.000000e+00> : vector<16x96xf32>
    %94 = tpu.matmul %56, %22, %cst_48 {dimension_numbers = #tpu.dot_dimension_numbers<[1], [0], [0], [1], [0, 0, 1, 1], [], []>} : vector<16x32xf32>, vector<32x96xf32>, vector<16x96xf32> -> vector<16x96xf32>
    %95 = vector.extract_strided_slice %93 {offsets = [0, 0], sizes = [16, 64], strides = [1, 1]} : vector<16x96xf32> to vector<16x64xf32>
    %96 = vector.extract_strided_slice %94 {offsets = [0, 0], sizes = [16, 64], strides = [1, 1]} : vector<16x96xf32> to vector<16x64xf32>
    %97 = arith.addf %95, %96 : vector<16x64xf32>
    %98 = arith.negf %97 : vector<16x64xf32>
    %99 = math.exp %98 : vector<16x64xf32>
    %cst_49 = arith.constant 1.000000e+00 : f32
    %100 = vector.broadcast %cst_49 : f32 to vector<16x64xf32>
    %101 = arith.addf %100, %99 : vector<16x64xf32>
    %102 = arith.divf %100, %101 : vector<16x64xf32>
    %103 = vector.extract_strided_slice %102 {offsets = [0, 0], sizes = [16, 32], strides = [1, 1]} : vector<16x64xf32> to vector<16x32xf32>
    %104 = vector.extract_strided_slice %102 {offsets = [0, 32], sizes = [16, 32], strides = [1, 1]} : vector<16x64xf32> to vector<16x32xf32>
    %105 = vector.extract_strided_slice %93 {offsets = [0, 64], sizes = [16, 32], strides = [1, 1]} : vector<16x96xf32> to vector<16x32xf32>
    %106 = vector.extract_strided_slice %94 {offsets = [0, 64], sizes = [16, 32], strides = [1, 1]} : vector<16x96xf32> to vector<16x32xf32>
    %107 = arith.addf %106, %26 : vector<16x32xf32>
    %108 = arith.mulf %103, %107 : vector<16x32xf32>
    %109 = arith.addf %105, %108 : vector<16x32xf32>
    %110 = math.tanh %109 : vector<16x32xf32>
    %cst_50 = arith.constant 1.000000e+00 : f32
    %111 = vector.broadcast %cst_50 : f32 to vector<16x32xf32>
    %112 = arith.subf %111, %104 : vector<16x32xf32>
    %113 = arith.mulf %112, %110 : vector<16x32xf32>
    %114 = arith.mulf %104, %56 : vector<16x32xf32>
    %115 = arith.addf %113, %114 : vector<16x32xf32>
    %116 = arith.index_cast %90 : i32 to index
    %c0_51 = arith.constant 0 : index
    %c0_52 = arith.constant 0 : index
    %117 = vector.load %arg18[%116, %c0_51, %c0_52] : memref<8x16x96xf32, #tpu.memory_space<vmem>>, vector<1x16x96xf32>
    %118 = vector.shape_cast %117 : vector<1x16x96xf32> to vector<16x96xf32>
    %cst_53 = arith.constant dense<0.000000e+00> : vector<16x96xf32>
    %119 = tpu.matmul %81, %23, %cst_53 {dimension_numbers = #tpu.dot_dimension_numbers<[1], [0], [0], [1], [0, 0, 1, 1], [], []>} : vector<16x32xf32>, vector<32x96xf32>, vector<16x96xf32> -> vector<16x96xf32>
    %120 = vector.extract_strided_slice %118 {offsets = [0, 0], sizes = [16, 64], strides = [1, 1]} : vector<16x96xf32> to vector<16x64xf32>
    %121 = vector.extract_strided_slice %119 {offsets = [0, 0], sizes = [16, 64], strides = [1, 1]} : vector<16x96xf32> to vector<16x64xf32>
    %122 = arith.addf %120, %121 : vector<16x64xf32>
    %123 = arith.negf %122 : vector<16x64xf32>
    %124 = math.exp %123 : vector<16x64xf32>
    %cst_54 = arith.constant 1.000000e+00 : f32
    %125 = vector.broadcast %cst_54 : f32 to vector<16x64xf32>
    %126 = arith.addf %125, %124 : vector<16x64xf32>
    %127 = arith.divf %125, %126 : vector<16x64xf32>
    %128 = vector.extract_strided_slice %127 {offsets = [0, 0], sizes = [16, 32], strides = [1, 1]} : vector<16x64xf32> to vector<16x32xf32>
    %129 = vector.extract_strided_slice %127 {offsets = [0, 32], sizes = [16, 32], strides = [1, 1]} : vector<16x64xf32> to vector<16x32xf32>
    %130 = vector.extract_strided_slice %118 {offsets = [0, 64], sizes = [16, 32], strides = [1, 1]} : vector<16x96xf32> to vector<16x32xf32>
    %131 = vector.extract_strided_slice %119 {offsets = [0, 64], sizes = [16, 32], strides = [1, 1]} : vector<16x96xf32> to vector<16x32xf32>
    %132 = arith.addf %131, %29 : vector<16x32xf32>
    %133 = arith.mulf %128, %132 : vector<16x32xf32>
    %134 = arith.addf %130, %133 : vector<16x32xf32>
    %135 = math.tanh %134 : vector<16x32xf32>
    %cst_55 = arith.constant 1.000000e+00 : f32
    %136 = vector.broadcast %cst_55 : f32 to vector<16x32xf32>
    %137 = arith.subf %136, %129 : vector<16x32xf32>
    %138 = arith.mulf %137, %135 : vector<16x32xf32>
    %139 = arith.mulf %129, %81 : vector<16x32xf32>
    %140 = arith.addf %138, %139 : vector<16x32xf32>
    %141 = arith.index_cast %c1_i32 : i32 to index
    %c0_56 = arith.constant 0 : index
    %c0_57 = arith.constant 0 : index
    %142 = vector.load %arg19[%141, %c0_56, %c0_57] : memref<8x16x32xf32, #tpu.memory_space<vmem>>, vector<1x16x32xf32>
    %143 = vector.shape_cast %142 : vector<1x16x32xf32> to vector<16x32xf32>
    %144 = vector.shape_cast %115 : vector<16x32xf32> to vector<1x16x32xf32>
    tpu.vector_store %arg19[%141, %c0_56, %c0_57], %144 {strides = array<i32>} : memref<8x16x32xf32, #tpu.memory_space<vmem>>, vector<1x16x32xf32>,
    %145 = arith.index_cast %90 : i32 to index
    %c0_58 = arith.constant 0 : index
    %c0_59 = arith.constant 0 : index
    %146 = vector.load %arg20[%145, %c0_58, %c0_59] : memref<8x16x32xf32, #tpu.memory_space<vmem>>, vector<1x16x32xf32>
    %147 = vector.shape_cast %146 : vector<1x16x32xf32> to vector<16x32xf32>
    %148 = vector.shape_cast %140 : vector<16x32xf32> to vector<1x16x32xf32>
    tpu.vector_store %arg20[%145, %c0_58, %c0_59], %148 {strides = array<i32>} : memref<8x16x32xf32, #tpu.memory_space<vmem>>, vector<1x16x32xf32>,
    %c2_i32 = arith.constant 2 : i32
    %c7_i32_60 = arith.constant 7 : i32
    %149 = arith.subi %c7_i32_60, %c2_i32 : i32
    %150 = arith.index_cast %c2_i32 : i32 to index
    %c0_61 = arith.constant 0 : index
    %c0_62 = arith.constant 0 : index
    %151 = vector.load %arg17[%150, %c0_61, %c0_62] : memref<8x16x96xf32, #tpu.memory_space<vmem>>, vector<1x16x96xf32>
    %152 = vector.shape_cast %151 : vector<1x16x96xf32> to vector<16x96xf32>
    %cst_63 = arith.constant dense<0.000000e+00> : vector<16x96xf32>
    %153 = tpu.matmul %115, %22, %cst_63 {dimension_numbers = #tpu.dot_dimension_numbers<[1], [0], [0], [1], [0, 0, 1, 1], [], []>} : vector<16x32xf32>, vector<32x96xf32>, vector<16x96xf32> -> vector<16x96xf32>
    %154 = vector.extract_strided_slice %152 {offsets = [0, 0], sizes = [16, 64], strides = [1, 1]} : vector<16x96xf32> to vector<16x64xf32>
    %155 = vector.extract_strided_slice %153 {offsets = [0, 0], sizes = [16, 64], strides = [1, 1]} : vector<16x96xf32> to vector<16x64xf32>
    %156 = arith.addf %154, %155 : vector<16x64xf32>
    %157 = arith.negf %156 : vector<16x64xf32>
    %158 = math.exp %157 : vector<16x64xf32>
    %cst_64 = arith.constant 1.000000e+00 : f32
    %159 = vector.broadcast %cst_64 : f32 to vector<16x64xf32>
    %160 = arith.addf %159, %158 : vector<16x64xf32>
    %161 = arith.divf %159, %160 : vector<16x64xf32>
    %162 = vector.extract_strided_slice %161 {offsets = [0, 0], sizes = [16, 32], strides = [1, 1]} : vector<16x64xf32> to vector<16x32xf32>
    %163 = vector.extract_strided_slice %161 {offsets = [0, 32], sizes = [16, 32], strides = [1, 1]} : vector<16x64xf32> to vector<16x32xf32>
    %164 = vector.extract_strided_slice %152 {offsets = [0, 64], sizes = [16, 32], strides = [1, 1]} : vector<16x96xf32> to vector<16x32xf32>
    %165 = vector.extract_strided_slice %153 {offsets = [0, 64], sizes = [16, 32], strides = [1, 1]} : vector<16x96xf32> to vector<16x32xf32>
    %166 = arith.addf %165, %26 : vector<16x32xf32>
    %167 = arith.mulf %162, %166 : vector<16x32xf32>
    %168 = arith.addf %164, %167 : vector<16x32xf32>
    %169 = math.tanh %168 : vector<16x32xf32>
    %cst_65 = arith.constant 1.000000e+00 : f32
    %170 = vector.broadcast %cst_65 : f32 to vector<16x32xf32>
    %171 = arith.subf %170, %163 : vector<16x32xf32>
    %172 = arith.mulf %171, %169 : vector<16x32xf32>
    %173 = arith.mulf %163, %115 : vector<16x32xf32>
    %174 = arith.addf %172, %173 : vector<16x32xf32>
    %175 = arith.index_cast %149 : i32 to index
    %c0_66 = arith.constant 0 : index
    %c0_67 = arith.constant 0 : index
    %176 = vector.load %arg18[%175, %c0_66, %c0_67] : memref<8x16x96xf32, #tpu.memory_space<vmem>>, vector<1x16x96xf32>
    %177 = vector.shape_cast %176 : vector<1x16x96xf32> to vector<16x96xf32>
    %cst_68 = arith.constant dense<0.000000e+00> : vector<16x96xf32>
    %178 = tpu.matmul %140, %23, %cst_68 {dimension_numbers = #tpu.dot_dimension_numbers<[1], [0], [0], [1], [0, 0, 1, 1], [], []>} : vector<16x32xf32>, vector<32x96xf32>, vector<16x96xf32> -> vector<16x96xf32>
    %179 = vector.extract_strided_slice %177 {offsets = [0, 0], sizes = [16, 64], strides = [1, 1]} : vector<16x96xf32> to vector<16x64xf32>
    %180 = vector.extract_strided_slice %178 {offsets = [0, 0], sizes = [16, 64], strides = [1, 1]} : vector<16x96xf32> to vector<16x64xf32>
    %181 = arith.addf %179, %180 : vector<16x64xf32>
    %182 = arith.negf %181 : vector<16x64xf32>
    %183 = math.exp %182 : vector<16x64xf32>
    %cst_69 = arith.constant 1.000000e+00 : f32
    %184 = vector.broadcast %cst_69 : f32 to vector<16x64xf32>
    %185 = arith.addf %184, %183 : vector<16x64xf32>
    %186 = arith.divf %184, %185 : vector<16x64xf32>
    %187 = vector.extract_strided_slice %186 {offsets = [0, 0], sizes = [16, 32], strides = [1, 1]} : vector<16x64xf32> to vector<16x32xf32>
    %188 = vector.extract_strided_slice %186 {offsets = [0, 32], sizes = [16, 32], strides = [1, 1]} : vector<16x64xf32> to vector<16x32xf32>
    %189 = vector.extract_strided_slice %177 {offsets = [0, 64], sizes = [16, 32], strides = [1, 1]} : vector<16x96xf32> to vector<16x32xf32>
    %190 = vector.extract_strided_slice %178 {offsets = [0, 64], sizes = [16, 32], strides = [1, 1]} : vector<16x96xf32> to vector<16x32xf32>
    %191 = arith.addf %190, %29 : vector<16x32xf32>
    %192 = arith.mulf %187, %191 : vector<16x32xf32>
    %193 = arith.addf %189, %192 : vector<16x32xf32>
    %194 = math.tanh %193 : vector<16x32xf32>
    %cst_70 = arith.constant 1.000000e+00 : f32
    %195 = vector.broadcast %cst_70 : f32 to vector<16x32xf32>
    %196 = arith.subf %195, %188 : vector<16x32xf32>
    %197 = arith.mulf %196, %194 : vector<16x32xf32>
    %198 = arith.mulf %188, %140 : vector<16x32xf32>
    %199 = arith.addf %197, %198 : vector<16x32xf32>
    %200 = arith.index_cast %c2_i32 : i32 to index
    %c0_71 = arith.constant 0 : index
    %c0_72 = arith.constant 0 : index
    %201 = vector.load %arg19[%200, %c0_71, %c0_72] : memref<8x16x32xf32, #tpu.memory_space<vmem>>, vector<1x16x32xf32>
    %202 = vector.shape_cast %201 : vector<1x16x32xf32> to vector<16x32xf32>
    %203 = vector.shape_cast %174 : vector<16x32xf32> to vector<1x16x32xf32>
    tpu.vector_store %arg19[%200, %c0_71, %c0_72], %203 {strides = array<i32>} : memref<8x16x32xf32, #tpu.memory_space<vmem>>, vector<1x16x32xf32>,
    %204 = arith.index_cast %149 : i32 to index
    %c0_73 = arith.constant 0 : index
    %c0_74 = arith.constant 0 : index
    %205 = vector.load %arg20[%204, %c0_73, %c0_74] : memref<8x16x32xf32, #tpu.memory_space<vmem>>, vector<1x16x32xf32>
    %206 = vector.shape_cast %205 : vector<1x16x32xf32> to vector<16x32xf32>
    %207 = vector.shape_cast %199 : vector<16x32xf32> to vector<1x16x32xf32>
    tpu.vector_store %arg20[%204, %c0_73, %c0_74], %207 {strides = array<i32>} : memref<8x16x32xf32, #tpu.memory_space<vmem>>, vector<1x16x32xf32>,
    %c3_i32 = arith.constant 3 : i32
    %c7_i32_75 = arith.constant 7 : i32
    %208 = arith.subi %c7_i32_75, %c3_i32 : i32
    %209 = arith.index_cast %c3_i32 : i32 to index
    %c0_76 = arith.constant 0 : index
    %c0_77 = arith.constant 0 : index
    %210 = vector.load %arg17[%209, %c0_76, %c0_77] : memref<8x16x96xf32, #tpu.memory_space<vmem>>, vector<1x16x96xf32>
    %211 = vector.shape_cast %210 : vector<1x16x96xf32> to vector<16x96xf32>
    %cst_78 = arith.constant dense<0.000000e+00> : vector<16x96xf32>
    %212 = tpu.matmul %174, %22, %cst_78 {dimension_numbers = #tpu.dot_dimension_numbers<[1], [0], [0], [1], [0, 0, 1, 1], [], []>} : vector<16x32xf32>, vector<32x96xf32>, vector<16x96xf32> -> vector<16x96xf32>
    %213 = vector.extract_strided_slice %211 {offsets = [0, 0], sizes = [16, 64], strides = [1, 1]} : vector<16x96xf32> to vector<16x64xf32>
    %214 = vector.extract_strided_slice %212 {offsets = [0, 0], sizes = [16, 64], strides = [1, 1]} : vector<16x96xf32> to vector<16x64xf32>
    %215 = arith.addf %213, %214 : vector<16x64xf32>
    %216 = arith.negf %215 : vector<16x64xf32>
    %217 = math.exp %216 : vector<16x64xf32>
    %cst_79 = arith.constant 1.000000e+00 : f32
    %218 = vector.broadcast %cst_79 : f32 to vector<16x64xf32>
    %219 = arith.addf %218, %217 : vector<16x64xf32>
    %220 = arith.divf %218, %219 : vector<16x64xf32>
    %221 = vector.extract_strided_slice %220 {offsets = [0, 0], sizes = [16, 32], strides = [1, 1]} : vector<16x64xf32> to vector<16x32xf32>
    %222 = vector.extract_strided_slice %220 {offsets = [0, 32], sizes = [16, 32], strides = [1, 1]} : vector<16x64xf32> to vector<16x32xf32>
    %223 = vector.extract_strided_slice %211 {offsets = [0, 64], sizes = [16, 32], strides = [1, 1]} : vector<16x96xf32> to vector<16x32xf32>
    %224 = vector.extract_strided_slice %212 {offsets = [0, 64], sizes = [16, 32], strides = [1, 1]} : vector<16x96xf32> to vector<16x32xf32>
    %225 = arith.addf %224, %26 : vector<16x32xf32>
    %226 = arith.mulf %221, %225 : vector<16x32xf32>
    %227 = arith.addf %223, %226 : vector<16x32xf32>
    %228 = math.tanh %227 : vector<16x32xf32>
    %cst_80 = arith.constant 1.000000e+00 : f32
    %229 = vector.broadcast %cst_80 : f32 to vector<16x32xf32>
    %230 = arith.subf %229, %222 : vector<16x32xf32>
    %231 = arith.mulf %230, %228 : vector<16x32xf32>
    %232 = arith.mulf %222, %174 : vector<16x32xf32>
    %233 = arith.addf %231, %232 : vector<16x32xf32>
    %234 = arith.index_cast %208 : i32 to index
    %c0_81 = arith.constant 0 : index
    %c0_82 = arith.constant 0 : index
    %235 = vector.load %arg18[%234, %c0_81, %c0_82] : memref<8x16x96xf32, #tpu.memory_space<vmem>>, vector<1x16x96xf32>
    %236 = vector.shape_cast %235 : vector<1x16x96xf32> to vector<16x96xf32>
    %cst_83 = arith.constant dense<0.000000e+00> : vector<16x96xf32>
    %237 = tpu.matmul %199, %23, %cst_83 {dimension_numbers = #tpu.dot_dimension_numbers<[1], [0], [0], [1], [0, 0, 1, 1], [], []>} : vector<16x32xf32>, vector<32x96xf32>, vector<16x96xf32> -> vector<16x96xf32>
    %238 = vector.extract_strided_slice %236 {offsets = [0, 0], sizes = [16, 64], strides = [1, 1]} : vector<16x96xf32> to vector<16x64xf32>
    %239 = vector.extract_strided_slice %237 {offsets = [0, 0], sizes = [16, 64], strides = [1, 1]} : vector<16x96xf32> to vector<16x64xf32>
    %240 = arith.addf %238, %239 : vector<16x64xf32>
    %241 = arith.negf %240 : vector<16x64xf32>
    %242 = math.exp %241 : vector<16x64xf32>
    %cst_84 = arith.constant 1.000000e+00 : f32
    %243 = vector.broadcast %cst_84 : f32 to vector<16x64xf32>
    %244 = arith.addf %243, %242 : vector<16x64xf32>
    %245 = arith.divf %243, %244 : vector<16x64xf32>
    %246 = vector.extract_strided_slice %245 {offsets = [0, 0], sizes = [16, 32], strides = [1, 1]} : vector<16x64xf32> to vector<16x32xf32>
    %247 = vector.extract_strided_slice %245 {offsets = [0, 32], sizes = [16, 32], strides = [1, 1]} : vector<16x64xf32> to vector<16x32xf32>
    %248 = vector.extract_strided_slice %236 {offsets = [0, 64], sizes = [16, 32], strides = [1, 1]} : vector<16x96xf32> to vector<16x32xf32>
    %249 = vector.extract_strided_slice %237 {offsets = [0, 64], sizes = [16, 32], strides = [1, 1]} : vector<16x96xf32> to vector<16x32xf32>
    %250 = arith.addf %249, %29 : vector<16x32xf32>
    %251 = arith.mulf %246, %250 : vector<16x32xf32>
    %252 = arith.addf %248, %251 : vector<16x32xf32>
    %253 = math.tanh %252 : vector<16x32xf32>
    %cst_85 = arith.constant 1.000000e+00 : f32
    %254 = vector.broadcast %cst_85 : f32 to vector<16x32xf32>
    %255 = arith.subf %254, %247 : vector<16x32xf32>
    %256 = arith.mulf %255, %253 : vector<16x32xf32>
    %257 = arith.mulf %247, %199 : vector<16x32xf32>
    %258 = arith.addf %256, %257 : vector<16x32xf32>
    %259 = arith.index_cast %c3_i32 : i32 to index
    %c0_86 = arith.constant 0 : index
    %c0_87 = arith.constant 0 : index
    %260 = vector.load %arg19[%259, %c0_86, %c0_87] : memref<8x16x32xf32, #tpu.memory_space<vmem>>, vector<1x16x32xf32>
    %261 = vector.shape_cast %260 : vector<1x16x32xf32> to vector<16x32xf32>
    %262 = vector.shape_cast %233 : vector<16x32xf32> to vector<1x16x32xf32>
    tpu.vector_store %arg19[%259, %c0_86, %c0_87], %262 {strides = array<i32>} : memref<8x16x32xf32, #tpu.memory_space<vmem>>, vector<1x16x32xf32>,
    %263 = arith.index_cast %208 : i32 to index
    %c0_88 = arith.constant 0 : index
    %c0_89 = arith.constant 0 : index
    %264 = vector.load %arg20[%263, %c0_88, %c0_89] : memref<8x16x32xf32, #tpu.memory_space<vmem>>, vector<1x16x32xf32>
    %265 = vector.shape_cast %264 : vector<1x16x32xf32> to vector<16x32xf32>
    %266 = vector.shape_cast %258 : vector<16x32xf32> to vector<1x16x32xf32>
    tpu.vector_store %arg20[%263, %c0_88, %c0_89], %266 {strides = array<i32>} : memref<8x16x32xf32, #tpu.memory_space<vmem>>, vector<1x16x32xf32>,
    %c4_i32 = arith.constant 4 : i32
    %c7_i32_90 = arith.constant 7 : i32
    %267 = arith.subi %c7_i32_90, %c4_i32 : i32
    %268 = arith.index_cast %c4_i32 : i32 to index
    %c0_91 = arith.constant 0 : index
    %c0_92 = arith.constant 0 : index
    %269 = vector.load %arg17[%268, %c0_91, %c0_92] : memref<8x16x96xf32, #tpu.memory_space<vmem>>, vector<1x16x96xf32>
    %270 = vector.shape_cast %269 : vector<1x16x96xf32> to vector<16x96xf32>
    %cst_93 = arith.constant dense<0.000000e+00> : vector<16x96xf32>
    %271 = tpu.matmul %233, %22, %cst_93 {dimension_numbers = #tpu.dot_dimension_numbers<[1], [0], [0], [1], [0, 0, 1, 1], [], []>} : vector<16x32xf32>, vector<32x96xf32>, vector<16x96xf32> -> vector<16x96xf32>
    %272 = vector.extract_strided_slice %270 {offsets = [0, 0], sizes = [16, 64], strides = [1, 1]} : vector<16x96xf32> to vector<16x64xf32>
    %273 = vector.extract_strided_slice %271 {offsets = [0, 0], sizes = [16, 64], strides = [1, 1]} : vector<16x96xf32> to vector<16x64xf32>
    %274 = arith.addf %272, %273 : vector<16x64xf32>
    %275 = arith.negf %274 : vector<16x64xf32>
    %276 = math.exp %275 : vector<16x64xf32>
    %cst_94 = arith.constant 1.000000e+00 : f32
    %277 = vector.broadcast %cst_94 : f32 to vector<16x64xf32>
    %278 = arith.addf %277, %276 : vector<16x64xf32>
    %279 = arith.divf %277, %278 : vector<16x64xf32>
    %280 = vector.extract_strided_slice %279 {offsets = [0, 0], sizes = [16, 32], strides = [1, 1]} : vector<16x64xf32> to vector<16x32xf32>
    %281 = vector.extract_strided_slice %279 {offsets = [0, 32], sizes = [16, 32], strides = [1, 1]} : vector<16x64xf32> to vector<16x32xf32>
    %282 = vector.extract_strided_slice %270 {offsets = [0, 64], sizes = [16, 32], strides = [1, 1]} : vector<16x96xf32> to vector<16x32xf32>
    %283 = vector.extract_strided_slice %271 {offsets = [0, 64], sizes = [16, 32], strides = [1, 1]} : vector<16x96xf32> to vector<16x32xf32>
    %284 = arith.addf %283, %26 : vector<16x32xf32>
    %285 = arith.mulf %280, %284 : vector<16x32xf32>
    %286 = arith.addf %282, %285 : vector<16x32xf32>
    %287 = math.tanh %286 : vector<16x32xf32>
    %cst_95 = arith.constant 1.000000e+00 : f32
    %288 = vector.broadcast %cst_95 : f32 to vector<16x32xf32>
    %289 = arith.subf %288, %281 : vector<16x32xf32>
    %290 = arith.mulf %289, %287 : vector<16x32xf32>
    %291 = arith.mulf %281, %233 : vector<16x32xf32>
    %292 = arith.addf %290, %291 : vector<16x32xf32>
    %293 = arith.index_cast %267 : i32 to index
    %c0_96 = arith.constant 0 : index
    %c0_97 = arith.constant 0 : index
    %294 = vector.load %arg18[%293, %c0_96, %c0_97] : memref<8x16x96xf32, #tpu.memory_space<vmem>>, vector<1x16x96xf32>
    %295 = vector.shape_cast %294 : vector<1x16x96xf32> to vector<16x96xf32>
    %cst_98 = arith.constant dense<0.000000e+00> : vector<16x96xf32>
    %296 = tpu.matmul %258, %23, %cst_98 {dimension_numbers = #tpu.dot_dimension_numbers<[1], [0], [0], [1], [0, 0, 1, 1], [], []>} : vector<16x32xf32>, vector<32x96xf32>, vector<16x96xf32> -> vector<16x96xf32>
    %297 = vector.extract_strided_slice %295 {offsets = [0, 0], sizes = [16, 64], strides = [1, 1]} : vector<16x96xf32> to vector<16x64xf32>
    %298 = vector.extract_strided_slice %296 {offsets = [0, 0], sizes = [16, 64], strides = [1, 1]} : vector<16x96xf32> to vector<16x64xf32>
    %299 = arith.addf %297, %298 : vector<16x64xf32>
    %300 = arith.negf %299 : vector<16x64xf32>
    %301 = math.exp %300 : vector<16x64xf32>
    %cst_99 = arith.constant 1.000000e+00 : f32
    %302 = vector.broadcast %cst_99 : f32 to vector<16x64xf32>
    %303 = arith.addf %302, %301 : vector<16x64xf32>
    %304 = arith.divf %302, %303 : vector<16x64xf32>
    %305 = vector.extract_strided_slice %304 {offsets = [0, 0], sizes = [16, 32], strides = [1, 1]} : vector<16x64xf32> to vector<16x32xf32>
    %306 = vector.extract_strided_slice %304 {offsets = [0, 32], sizes = [16, 32], strides = [1, 1]} : vector<16x64xf32> to vector<16x32xf32>
    %307 = vector.extract_strided_slice %295 {offsets = [0, 64], sizes = [16, 32], strides = [1, 1]} : vector<16x96xf32> to vector<16x32xf32>
    %308 = vector.extract_strided_slice %296 {offsets = [0, 64], sizes = [16, 32], strides = [1, 1]} : vector<16x96xf32> to vector<16x32xf32>
    %309 = arith.addf %308, %29 : vector<16x32xf32>
    %310 = arith.mulf %305, %309 : vector<16x32xf32>
    %311 = arith.addf %307, %310 : vector<16x32xf32>
    %312 = math.tanh %311 : vector<16x32xf32>
    %cst_100 = arith.constant 1.000000e+00 : f32
    %313 = vector.broadcast %cst_100 : f32 to vector<16x32xf32>
    %314 = arith.subf %313, %306 : vector<16x32xf32>
    %315 = arith.mulf %314, %312 : vector<16x32xf32>
    %316 = arith.mulf %306, %258 : vector<16x32xf32>
    %317 = arith.addf %315, %316 : vector<16x32xf32>
    %318 = arith.index_cast %c4_i32 : i32 to index
    %c0_101 = arith.constant 0 : index
    %c0_102 = arith.constant 0 : index
    %319 = vector.load %arg19[%318, %c0_101, %c0_102] : memref<8x16x32xf32, #tpu.memory_space<vmem>>, vector<1x16x32xf32>
    %320 = vector.shape_cast %319 : vector<1x16x32xf32> to vector<16x32xf32>
    %321 = vector.shape_cast %292 : vector<16x32xf32> to vector<1x16x32xf32>
    tpu.vector_store %arg19[%318, %c0_101, %c0_102], %321 {strides = array<i32>} : memref<8x16x32xf32, #tpu.memory_space<vmem>>, vector<1x16x32xf32>,
    %322 = arith.index_cast %267 : i32 to index
    %c0_103 = arith.constant 0 : index
    %c0_104 = arith.constant 0 : index
    %323 = vector.load %arg20[%322, %c0_103, %c0_104] : memref<8x16x32xf32, #tpu.memory_space<vmem>>, vector<1x16x32xf32>
    %324 = vector.shape_cast %323 : vector<1x16x32xf32> to vector<16x32xf32>
    %325 = vector.shape_cast %317 : vector<16x32xf32> to vector<1x16x32xf32>
    tpu.vector_store %arg20[%322, %c0_103, %c0_104], %325 {strides = array<i32>} : memref<8x16x32xf32, #tpu.memory_space<vmem>>, vector<1x16x32xf32>,
    %c5_i32 = arith.constant 5 : i32
    %c7_i32_105 = arith.constant 7 : i32
    %326 = arith.subi %c7_i32_105, %c5_i32 : i32
    %327 = arith.index_cast %c5_i32 : i32 to index
    %c0_106 = arith.constant 0 : index
    %c0_107 = arith.constant 0 : index
    %328 = vector.load %arg17[%327, %c0_106, %c0_107] : memref<8x16x96xf32, #tpu.memory_space<vmem>>, vector<1x16x96xf32>
    %329 = vector.shape_cast %328 : vector<1x16x96xf32> to vector<16x96xf32>
    %cst_108 = arith.constant dense<0.000000e+00> : vector<16x96xf32>
    %330 = tpu.matmul %292, %22, %cst_108 {dimension_numbers = #tpu.dot_dimension_numbers<[1], [0], [0], [1], [0, 0, 1, 1], [], []>} : vector<16x32xf32>, vector<32x96xf32>, vector<16x96xf32> -> vector<16x96xf32>
    %331 = vector.extract_strided_slice %329 {offsets = [0, 0], sizes = [16, 64], strides = [1, 1]} : vector<16x96xf32> to vector<16x64xf32>
    %332 = vector.extract_strided_slice %330 {offsets = [0, 0], sizes = [16, 64], strides = [1, 1]} : vector<16x96xf32> to vector<16x64xf32>
    %333 = arith.addf %331, %332 : vector<16x64xf32>
    %334 = arith.negf %333 : vector<16x64xf32>
    %335 = math.exp %334 : vector<16x64xf32>
    %cst_109 = arith.constant 1.000000e+00 : f32
    %336 = vector.broadcast %cst_109 : f32 to vector<16x64xf32>
    %337 = arith.addf %336, %335 : vector<16x64xf32>
    %338 = arith.divf %336, %337 : vector<16x64xf32>
    %339 = vector.extract_strided_slice %338 {offsets = [0, 0], sizes = [16, 32], strides = [1, 1]} : vector<16x64xf32> to vector<16x32xf32>
    %340 = vector.extract_strided_slice %338 {offsets = [0, 32], sizes = [16, 32], strides = [1, 1]} : vector<16x64xf32> to vector<16x32xf32>
    %341 = vector.extract_strided_slice %329 {offsets = [0, 64], sizes = [16, 32], strides = [1, 1]} : vector<16x96xf32> to vector<16x32xf32>
    %342 = vector.extract_strided_slice %330 {offsets = [0, 64], sizes = [16, 32], strides = [1, 1]} : vector<16x96xf32> to vector<16x32xf32>
    %343 = arith.addf %342, %26 : vector<16x32xf32>
    %344 = arith.mulf %339, %343 : vector<16x32xf32>
    %345 = arith.addf %341, %344 : vector<16x32xf32>
    %346 = math.tanh %345 : vector<16x32xf32>
    %cst_110 = arith.constant 1.000000e+00 : f32
    %347 = vector.broadcast %cst_110 : f32 to vector<16x32xf32>
    %348 = arith.subf %347, %340 : vector<16x32xf32>
    %349 = arith.mulf %348, %346 : vector<16x32xf32>
    %350 = arith.mulf %340, %292 : vector<16x32xf32>
    %351 = arith.addf %349, %350 : vector<16x32xf32>
    %352 = arith.index_cast %326 : i32 to index
    %c0_111 = arith.constant 0 : index
    %c0_112 = arith.constant 0 : index
    %353 = vector.load %arg18[%352, %c0_111, %c0_112] : memref<8x16x96xf32, #tpu.memory_space<vmem>>, vector<1x16x96xf32>
    %354 = vector.shape_cast %353 : vector<1x16x96xf32> to vector<16x96xf32>
    %cst_113 = arith.constant dense<0.000000e+00> : vector<16x96xf32>
    %355 = tpu.matmul %317, %23, %cst_113 {dimension_numbers = #tpu.dot_dimension_numbers<[1], [0], [0], [1], [0, 0, 1, 1], [], []>} : vector<16x32xf32>, vector<32x96xf32>, vector<16x96xf32> -> vector<16x96xf32>
    %356 = vector.extract_strided_slice %354 {offsets = [0, 0], sizes = [16, 64], strides = [1, 1]} : vector<16x96xf32> to vector<16x64xf32>
    %357 = vector.extract_strided_slice %355 {offsets = [0, 0], sizes = [16, 64], strides = [1, 1]} : vector<16x96xf32> to vector<16x64xf32>
    %358 = arith.addf %356, %357 : vector<16x64xf32>
    %359 = arith.negf %358 : vector<16x64xf32>
    %360 = math.exp %359 : vector<16x64xf32>
    %cst_114 = arith.constant 1.000000e+00 : f32
    %361 = vector.broadcast %cst_114 : f32 to vector<16x64xf32>
    %362 = arith.addf %361, %360 : vector<16x64xf32>
    %363 = arith.divf %361, %362 : vector<16x64xf32>
    %364 = vector.extract_strided_slice %363 {offsets = [0, 0], sizes = [16, 32], strides = [1, 1]} : vector<16x64xf32> to vector<16x32xf32>
    %365 = vector.extract_strided_slice %363 {offsets = [0, 32], sizes = [16, 32], strides = [1, 1]} : vector<16x64xf32> to vector<16x32xf32>
    %366 = vector.extract_strided_slice %354 {offsets = [0, 64], sizes = [16, 32], strides = [1, 1]} : vector<16x96xf32> to vector<16x32xf32>
    %367 = vector.extract_strided_slice %355 {offsets = [0, 64], sizes = [16, 32], strides = [1, 1]} : vector<16x96xf32> to vector<16x32xf32>
    %368 = arith.addf %367, %29 : vector<16x32xf32>
    %369 = arith.mulf %364, %368 : vector<16x32xf32>
    %370 = arith.addf %366, %369 : vector<16x32xf32>
    %371 = math.tanh %370 : vector<16x32xf32>
    %cst_115 = arith.constant 1.000000e+00 : f32
    %372 = vector.broadcast %cst_115 : f32 to vector<16x32xf32>
    %373 = arith.subf %372, %365 : vector<16x32xf32>
    %374 = arith.mulf %373, %371 : vector<16x32xf32>
    %375 = arith.mulf %365, %317 : vector<16x32xf32>
    %376 = arith.addf %374, %375 : vector<16x32xf32>
    %377 = arith.index_cast %c5_i32 : i32 to index
    %c0_116 = arith.constant 0 : index
    %c0_117 = arith.constant 0 : index
    %378 = vector.load %arg19[%377, %c0_116, %c0_117] : memref<8x16x32xf32, #tpu.memory_space<vmem>>, vector<1x16x32xf32>
    %379 = vector.shape_cast %378 : vector<1x16x32xf32> to vector<16x32xf32>
    %380 = vector.shape_cast %351 : vector<16x32xf32> to vector<1x16x32xf32>
    tpu.vector_store %arg19[%377, %c0_116, %c0_117], %380 {strides = array<i32>} : memref<8x16x32xf32, #tpu.memory_space<vmem>>, vector<1x16x32xf32>,
    %381 = arith.index_cast %326 : i32 to index
    %c0_118 = arith.constant 0 : index
    %c0_119 = arith.constant 0 : index
    %382 = vector.load %arg20[%381, %c0_118, %c0_119] : memref<8x16x32xf32, #tpu.memory_space<vmem>>, vector<1x16x32xf32>
    %383 = vector.shape_cast %382 : vector<1x16x32xf32> to vector<16x32xf32>
    %384 = vector.shape_cast %376 : vector<16x32xf32> to vector<1x16x32xf32>
    tpu.vector_store %arg20[%381, %c0_118, %c0_119], %384 {strides = array<i32>} : memref<8x16x32xf32, #tpu.memory_space<vmem>>, vector<1x16x32xf32>,
    %c6_i32 = arith.constant 6 : i32
    %c7_i32_120 = arith.constant 7 : i32
    %385 = arith.subi %c7_i32_120, %c6_i32 : i32
    %386 = arith.index_cast %c6_i32 : i32 to index
    %c0_121 = arith.constant 0 : index
    %c0_122 = arith.constant 0 : index
    %387 = vector.load %arg17[%386, %c0_121, %c0_122] : memref<8x16x96xf32, #tpu.memory_space<vmem>>, vector<1x16x96xf32>
    %388 = vector.shape_cast %387 : vector<1x16x96xf32> to vector<16x96xf32>
    %cst_123 = arith.constant dense<0.000000e+00> : vector<16x96xf32>
    %389 = tpu.matmul %351, %22, %cst_123 {dimension_numbers = #tpu.dot_dimension_numbers<[1], [0], [0], [1], [0, 0, 1, 1], [], []>} : vector<16x32xf32>, vector<32x96xf32>, vector<16x96xf32> -> vector<16x96xf32>
    %390 = vector.extract_strided_slice %388 {offsets = [0, 0], sizes = [16, 64], strides = [1, 1]} : vector<16x96xf32> to vector<16x64xf32>
    %391 = vector.extract_strided_slice %389 {offsets = [0, 0], sizes = [16, 64], strides = [1, 1]} : vector<16x96xf32> to vector<16x64xf32>
    %392 = arith.addf %390, %391 : vector<16x64xf32>
    %393 = arith.negf %392 : vector<16x64xf32>
    %394 = math.exp %393 : vector<16x64xf32>
    %cst_124 = arith.constant 1.000000e+00 : f32
    %395 = vector.broadcast %cst_124 : f32 to vector<16x64xf32>
    %396 = arith.addf %395, %394 : vector<16x64xf32>
    %397 = arith.divf %395, %396 : vector<16x64xf32>
    %398 = vector.extract_strided_slice %397 {offsets = [0, 0], sizes = [16, 32], strides = [1, 1]} : vector<16x64xf32> to vector<16x32xf32>
    %399 = vector.extract_strided_slice %397 {offsets = [0, 32], sizes = [16, 32], strides = [1, 1]} : vector<16x64xf32> to vector<16x32xf32>
    %400 = vector.extract_strided_slice %388 {offsets = [0, 64], sizes = [16, 32], strides = [1, 1]} : vector<16x96xf32> to vector<16x32xf32>
    %401 = vector.extract_strided_slice %389 {offsets = [0, 64], sizes = [16, 32], strides = [1, 1]} : vector<16x96xf32> to vector<16x32xf32>
    %402 = arith.addf %401, %26 : vector<16x32xf32>
    %403 = arith.mulf %398, %402 : vector<16x32xf32>
    %404 = arith.addf %400, %403 : vector<16x32xf32>
    %405 = math.tanh %404 : vector<16x32xf32>
    %cst_125 = arith.constant 1.000000e+00 : f32
    %406 = vector.broadcast %cst_125 : f32 to vector<16x32xf32>
    %407 = arith.subf %406, %399 : vector<16x32xf32>
    %408 = arith.mulf %407, %405 : vector<16x32xf32>
    %409 = arith.mulf %399, %351 : vector<16x32xf32>
    %410 = arith.addf %408, %409 : vector<16x32xf32>
    %411 = arith.index_cast %385 : i32 to index
    %c0_126 = arith.constant 0 : index
    %c0_127 = arith.constant 0 : index
    %412 = vector.load %arg18[%411, %c0_126, %c0_127] : memref<8x16x96xf32, #tpu.memory_space<vmem>>, vector<1x16x96xf32>
    %413 = vector.shape_cast %412 : vector<1x16x96xf32> to vector<16x96xf32>
    %cst_128 = arith.constant dense<0.000000e+00> : vector<16x96xf32>
    %414 = tpu.matmul %376, %23, %cst_128 {dimension_numbers = #tpu.dot_dimension_numbers<[1], [0], [0], [1], [0, 0, 1, 1], [], []>} : vector<16x32xf32>, vector<32x96xf32>, vector<16x96xf32> -> vector<16x96xf32>
    %415 = vector.extract_strided_slice %413 {offsets = [0, 0], sizes = [16, 64], strides = [1, 1]} : vector<16x96xf32> to vector<16x64xf32>
    %416 = vector.extract_strided_slice %414 {offsets = [0, 0], sizes = [16, 64], strides = [1, 1]} : vector<16x96xf32> to vector<16x64xf32>
    %417 = arith.addf %415, %416 : vector<16x64xf32>
    %418 = arith.negf %417 : vector<16x64xf32>
    %419 = math.exp %418 : vector<16x64xf32>
    %cst_129 = arith.constant 1.000000e+00 : f32
    %420 = vector.broadcast %cst_129 : f32 to vector<16x64xf32>
    %421 = arith.addf %420, %419 : vector<16x64xf32>
    %422 = arith.divf %420, %421 : vector<16x64xf32>
    %423 = vector.extract_strided_slice %422 {offsets = [0, 0], sizes = [16, 32], strides = [1, 1]} : vector<16x64xf32> to vector<16x32xf32>
    %424 = vector.extract_strided_slice %422 {offsets = [0, 32], sizes = [16, 32], strides = [1, 1]} : vector<16x64xf32> to vector<16x32xf32>
    %425 = vector.extract_strided_slice %413 {offsets = [0, 64], sizes = [16, 32], strides = [1, 1]} : vector<16x96xf32> to vector<16x32xf32>
    %426 = vector.extract_strided_slice %414 {offsets = [0, 64], sizes = [16, 32], strides = [1, 1]} : vector<16x96xf32> to vector<16x32xf32>
    %427 = arith.addf %426, %29 : vector<16x32xf32>
    %428 = arith.mulf %423, %427 : vector<16x32xf32>
    %429 = arith.addf %425, %428 : vector<16x32xf32>
    %430 = math.tanh %429 : vector<16x32xf32>
    %cst_130 = arith.constant 1.000000e+00 : f32
    %431 = vector.broadcast %cst_130 : f32 to vector<16x32xf32>
    %432 = arith.subf %431, %424 : vector<16x32xf32>
    %433 = arith.mulf %432, %430 : vector<16x32xf32>
    %434 = arith.mulf %424, %376 : vector<16x32xf32>
    %435 = arith.addf %433, %434 : vector<16x32xf32>
    %436 = arith.index_cast %c6_i32 : i32 to index
    %c0_131 = arith.constant 0 : index
    %c0_132 = arith.constant 0 : index
    %437 = vector.load %arg19[%436, %c0_131, %c0_132] : memref<8x16x32xf32, #tpu.memory_space<vmem>>, vector<1x16x32xf32>
    %438 = vector.shape_cast %437 : vector<1x16x32xf32> to vector<16x32xf32>
    %439 = vector.shape_cast %410 : vector<16x32xf32> to vector<1x16x32xf32>
    tpu.vector_store %arg19[%436, %c0_131, %c0_132], %439 {strides = array<i32>} : memref<8x16x32xf32, #tpu.memory_space<vmem>>, vector<1x16x32xf32>,
    %440 = arith.index_cast %385 : i32 to index
    %c0_133 = arith.constant 0 : index
    %c0_134 = arith.constant 0 : index
    %441 = vector.load %arg20[%440, %c0_133, %c0_134] : memref<8x16x32xf32, #tpu.memory_space<vmem>>, vector<1x16x32xf32>
    %442 = vector.shape_cast %441 : vector<1x16x32xf32> to vector<16x32xf32>
    %443 = vector.shape_cast %435 : vector<16x32xf32> to vector<1x16x32xf32>
    tpu.vector_store %arg20[%440, %c0_133, %c0_134], %443 {strides = array<i32>} : memref<8x16x32xf32, #tpu.memory_space<vmem>>, vector<1x16x32xf32>,
    %c7_i32_135 = arith.constant 7 : i32
    %c7_i32_136 = arith.constant 7 : i32
    %444 = arith.subi %c7_i32_136, %c7_i32_135 : i32
    %445 = arith.index_cast %c7_i32_135 : i32 to index
    %c0_137 = arith.constant 0 : index
    %c0_138 = arith.constant 0 : index
    %446 = vector.load %arg17[%445, %c0_137, %c0_138] : memref<8x16x96xf32, #tpu.memory_space<vmem>>, vector<1x16x96xf32>
    %447 = vector.shape_cast %446 : vector<1x16x96xf32> to vector<16x96xf32>
    %cst_139 = arith.constant dense<0.000000e+00> : vector<16x96xf32>
    %448 = tpu.matmul %410, %22, %cst_139 {dimension_numbers = #tpu.dot_dimension_numbers<[1], [0], [0], [1], [0, 0, 1, 1], [], []>} : vector<16x32xf32>, vector<32x96xf32>, vector<16x96xf32> -> vector<16x96xf32>
    %449 = vector.extract_strided_slice %447 {offsets = [0, 0], sizes = [16, 64], strides = [1, 1]} : vector<16x96xf32> to vector<16x64xf32>
    %450 = vector.extract_strided_slice %448 {offsets = [0, 0], sizes = [16, 64], strides = [1, 1]} : vector<16x96xf32> to vector<16x64xf32>
    %451 = arith.addf %449, %450 : vector<16x64xf32>
    %452 = arith.negf %451 : vector<16x64xf32>
    %453 = math.exp %452 : vector<16x64xf32>
    %cst_140 = arith.constant 1.000000e+00 : f32
    %454 = vector.broadcast %cst_140 : f32 to vector<16x64xf32>
    %455 = arith.addf %454, %453 : vector<16x64xf32>
    %456 = arith.divf %454, %455 : vector<16x64xf32>
    %457 = vector.extract_strided_slice %456 {offsets = [0, 0], sizes = [16, 32], strides = [1, 1]} : vector<16x64xf32> to vector<16x32xf32>
    %458 = vector.extract_strided_slice %456 {offsets = [0, 32], sizes = [16, 32], strides = [1, 1]} : vector<16x64xf32> to vector<16x32xf32>
    %459 = vector.extract_strided_slice %447 {offsets = [0, 64], sizes = [16, 32], strides = [1, 1]} : vector<16x96xf32> to vector<16x32xf32>
    %460 = vector.extract_strided_slice %448 {offsets = [0, 64], sizes = [16, 32], strides = [1, 1]} : vector<16x96xf32> to vector<16x32xf32>
    %461 = arith.addf %460, %26 : vector<16x32xf32>
    %462 = arith.mulf %457, %461 : vector<16x32xf32>
    %463 = arith.addf %459, %462 : vector<16x32xf32>
    %464 = math.tanh %463 : vector<16x32xf32>
    %cst_141 = arith.constant 1.000000e+00 : f32
    %465 = vector.broadcast %cst_141 : f32 to vector<16x32xf32>
    %466 = arith.subf %465, %458 : vector<16x32xf32>
    %467 = arith.mulf %466, %464 : vector<16x32xf32>
    %468 = arith.mulf %458, %410 : vector<16x32xf32>
    %469 = arith.addf %467, %468 : vector<16x32xf32>
    %470 = arith.index_cast %444 : i32 to index
    %c0_142 = arith.constant 0 : index
    %c0_143 = arith.constant 0 : index
    %471 = vector.load %arg18[%470, %c0_142, %c0_143] : memref<8x16x96xf32, #tpu.memory_space<vmem>>, vector<1x16x96xf32>
    %472 = vector.shape_cast %471 : vector<1x16x96xf32> to vector<16x96xf32>
    %cst_144 = arith.constant dense<0.000000e+00> : vector<16x96xf32>
    %473 = tpu.matmul %435, %23, %cst_144 {dimension_numbers = #tpu.dot_dimension_numbers<[1], [0], [0], [1], [0, 0, 1, 1], [], []>} : vector<16x32xf32>, vector<32x96xf32>, vector<16x96xf32> -> vector<16x96xf32>
    %474 = vector.extract_strided_slice %472 {offsets = [0, 0], sizes = [16, 64], strides = [1, 1]} : vector<16x96xf32> to vector<16x64xf32>
    %475 = vector.extract_strided_slice %473 {offsets = [0, 0], sizes = [16, 64], strides = [1, 1]} : vector<16x96xf32> to vector<16x64xf32>
    %476 = arith.addf %474, %475 : vector<16x64xf32>
    %477 = arith.negf %476 : vector<16x64xf32>
    %478 = math.exp %477 : vector<16x64xf32>
    %cst_145 = arith.constant 1.000000e+00 : f32
    %479 = vector.broadcast %cst_145 : f32 to vector<16x64xf32>
    %480 = arith.addf %479, %478 : vector<16x64xf32>
    %481 = arith.divf %479, %480 : vector<16x64xf32>
    %482 = vector.extract_strided_slice %481 {offsets = [0, 0], sizes = [16, 32], strides = [1, 1]} : vector<16x64xf32> to vector<16x32xf32>
    %483 = vector.extract_strided_slice %481 {offsets = [0, 32], sizes = [16, 32], strides = [1, 1]} : vector<16x64xf32> to vector<16x32xf32>
    %484 = vector.extract_strided_slice %472 {offsets = [0, 64], sizes = [16, 32], strides = [1, 1]} : vector<16x96xf32> to vector<16x32xf32>
    %485 = vector.extract_strided_slice %473 {offsets = [0, 64], sizes = [16, 32], strides = [1, 1]} : vector<16x96xf32> to vector<16x32xf32>
    %486 = arith.addf %485, %29 : vector<16x32xf32>
    %487 = arith.mulf %482, %486 : vector<16x32xf32>
    %488 = arith.addf %484, %487 : vector<16x32xf32>
    %489 = math.tanh %488 : vector<16x32xf32>
    %cst_146 = arith.constant 1.000000e+00 : f32
    %490 = vector.broadcast %cst_146 : f32 to vector<16x32xf32>
    %491 = arith.subf %490, %483 : vector<16x32xf32>
    %492 = arith.mulf %491, %489 : vector<16x32xf32>
    %493 = arith.mulf %483, %435 : vector<16x32xf32>
    %494 = arith.addf %492, %493 : vector<16x32xf32>
    %495 = arith.index_cast %c7_i32_135 : i32 to index
    %c0_147 = arith.constant 0 : index
    %c0_148 = arith.constant 0 : index
    %496 = vector.load %arg19[%495, %c0_147, %c0_148] : memref<8x16x32xf32, #tpu.memory_space<vmem>>, vector<1x16x32xf32>
    %497 = vector.shape_cast %496 : vector<1x16x32xf32> to vector<16x32xf32>
    %498 = vector.shape_cast %469 : vector<16x32xf32> to vector<1x16x32xf32>
    tpu.vector_store %arg19[%495, %c0_147, %c0_148], %498 {strides = array<i32>} : memref<8x16x32xf32, #tpu.memory_space<vmem>>, vector<1x16x32xf32>,
    %499 = arith.index_cast %444 : i32 to index
    %c0_149 = arith.constant 0 : index
    %c0_150 = arith.constant 0 : index
    %500 = vector.load %arg20[%499, %c0_149, %c0_150] : memref<8x16x32xf32, #tpu.memory_space<vmem>>, vector<1x16x32xf32>
    %501 = vector.shape_cast %500 : vector<1x16x32xf32> to vector<16x32xf32>
    %502 = vector.shape_cast %494 : vector<16x32xf32> to vector<1x16x32xf32>
    tpu.vector_store %arg20[%499, %c0_149, %c0_150], %502 {strides = array<i32>} : memref<8x16x32xf32, #tpu.memory_space<vmem>>, vector<1x16x32xf32>,
    %c8_i32 = arith.constant 8 : i32
    %c0_151 = arith.constant 0 : index
    %c0_152 = arith.constant 0 : index
    %503 = vector.load %arg11[%c0_151, %c0_152] : memref<1x64xf32, #tpu.memory_space<vmem>>, vector<1x64xf32>
    %c0_153 = arith.constant 0 : index
    %c0_154 = arith.constant 0 : index
    %504 = vector.load %arg12[%c0_153, %c0_154] : memref<1x64xf32, #tpu.memory_space<vmem>>, vector<1x64xf32>
    %505 = vector.extract_strided_slice %503 {offsets = [0, 0], sizes = [1, 32], strides = [1, 1]} : vector<1x64xf32> to vector<1x32xf32>
    %506 = vector.extract_strided_slice %503 {offsets = [0, 32], sizes = [1, 32], strides = [1, 1]} : vector<1x64xf32> to vector<1x32xf32>
    %507 = vector.extract_strided_slice %504 {offsets = [0, 0], sizes = [1, 32], strides = [1, 1]} : vector<1x64xf32> to vector<1x32xf32>
    %508 = vector.extract_strided_slice %504 {offsets = [0, 32], sizes = [1, 32], strides = [1, 1]} : vector<1x64xf32> to vector<1x32xf32>
    %cst_155 = arith.constant dense<0.000000e+00> : vector<16xf32>
    %509 = vector.multi_reduction <add>, %469, %cst_155 [1] : vector<16x32xf32> to vector<16xf32>
    %510 = vector.shape_cast %509 : vector<16xf32> to vector<16x1xf32>
    %cst_156 = arith.constant dense<0.000000e+00> : vector<16xf32>
    %511 = vector.multi_reduction <add>, %494, %cst_156 [1] : vector<16x32xf32> to vector<16xf32>
    %512 = vector.shape_cast %511 : vector<16xf32> to vector<16x1xf32>
    %513 = arith.addf %510, %512 : vector<16x1xf32>
    %514 = arith.mulf %469, %469 : vector<16x32xf32>
    %cst_157 = arith.constant dense<0.000000e+00> : vector<16xf32>
    %515 = vector.multi_reduction <add>, %514, %cst_157 [1] : vector<16x32xf32> to vector<16xf32>
    %516 = vector.shape_cast %515 : vector<16xf32> to vector<16x1xf32>
    %517 = arith.mulf %494, %494 : vector<16x32xf32>
    %cst_158 = arith.constant dense<0.000000e+00> : vector<16xf32>
    %518 = vector.multi_reduction <add>, %517, %cst_158 [1] : vector<16x32xf32> to vector<16xf32>
    %519 = vector.shape_cast %518 : vector<16xf32> to vector<16x1xf32>
    %520 = arith.addf %516, %519 : vector<16x1xf32>
    %cst_159 = arith.constant 1.562500e-02 : f32
    %521 = vector.broadcast %cst_159 : f32 to vector<16x1xf32>
    %522 = arith.mulf %513, %521 : vector<16x1xf32>
    %cst_160 = arith.constant 1.562500e-02 : f32
    %523 = vector.broadcast %cst_160 : f32 to vector<16x1xf32>
    %524 = arith.mulf %520, %523 : vector<16x1xf32>
    %525 = arith.mulf %522, %522 : vector<16x1xf32>
    %526 = arith.subf %524, %525 : vector<16x1xf32>
    %cst_161 = arith.constant 9.99999974E-6 : f32
    %527 = vector.broadcast %cst_161 : f32 to vector<16x1xf32>
    %528 = arith.addf %526, %527 : vector<16x1xf32>
    %529 = math.rsqrt %528 : vector<16x1xf32>
    %530 = vector.broadcast %522 : vector<16x1xf32> to vector<16x32xf32>
    %531 = arith.subf %469, %530 : vector<16x32xf32>
    %532 = vector.broadcast %529 : vector<16x1xf32> to vector<16x32xf32>
    %533 = arith.mulf %531, %532 : vector<16x32xf32>
    %534 = vector.broadcast %505 : vector<1x32xf32> to vector<16x32xf32>
    %535 = arith.mulf %533, %534 : vector<16x32xf32>
    %536 = vector.broadcast %507 : vector<1x32xf32> to vector<16x32xf32>
    %537 = arith.addf %535, %536 : vector<16x32xf32>
    %538 = vector.broadcast %522 : vector<16x1xf32> to vector<16x32xf32>
    %539 = arith.subf %494, %538 : vector<16x32xf32>
    %540 = vector.broadcast %529 : vector<16x1xf32> to vector<16x32xf32>
    %541 = arith.mulf %539, %540 : vector<16x32xf32>
    %542 = vector.broadcast %506 : vector<1x32xf32> to vector<16x32xf32>
    %543 = arith.mulf %541, %542 : vector<16x32xf32>
    %544 = vector.broadcast %508 : vector<1x32xf32> to vector<16x32xf32>
    %545 = arith.addf %543, %544 : vector<16x32xf32>
    %c0_162 = arith.constant 0 : index
    %c0_163 = arith.constant 0 : index
    %546 = vector.load %arg13[%c0_162, %c0_163] : memref<64x32xf32, #tpu.memory_space<vmem>>, vector<64x32xf32>
    %547 = vector.extract_strided_slice %546 {offsets = [0, 0], sizes = [32, 32], strides = [1, 1]} : vector<64x32xf32> to vector<32x32xf32>
    %cst_164 = arith.constant dense<0.000000e+00> : vector<16x32xf32>
    %548 = tpu.matmul %537, %547, %cst_164 {dimension_numbers = #tpu.dot_dimension_numbers<[1], [0], [0], [1], [0, 0, 1, 1], [], []>} : vector<16x32xf32>, vector<32x32xf32>, vector<16x32xf32> -> vector<16x32xf32>
    %549 = vector.extract_strided_slice %546 {offsets = [32, 0], sizes = [32, 32], strides = [1, 1]} : vector<64x32xf32> to vector<32x32xf32>
    %cst_165 = arith.constant dense<0.000000e+00> : vector<16x32xf32>
    %550 = tpu.matmul %545, %549, %cst_165 {dimension_numbers = #tpu.dot_dimension_numbers<[1], [0], [0], [1], [0, 0, 1, 1], [], []>} : vector<16x32xf32>, vector<32x32xf32>, vector<16x32xf32> -> vector<16x32xf32>
    %551 = arith.addf %548, %550 : vector<16x32xf32>
    %c0_166 = arith.constant 0 : index
    %c0_167 = arith.constant 0 : index
    %552 = vector.load %arg14[%c0_166, %c0_167] : memref<1x32xf32, #tpu.memory_space<vmem>>, vector<1x32xf32>
    %553 = vector.broadcast %552 : vector<1x32xf32> to vector<16x32xf32>
    %554 = arith.addf %551, %553 : vector<16x32xf32>
    %555 = math.tanh %554 : vector<16x32xf32>
    %c0_168 = arith.constant 0 : index
    %c0_169 = arith.constant 0 : index
    %556 = vector.load %arg16[%c0_168, %c0_169] : memref<16x32xf32, #tpu.memory_space<vmem>>, vector<16x32xf32>
    tpu.vector_store %arg16[%c0_168, %c0_169], %555 {strides = array<i32>} : memref<16x32xf32, #tpu.memory_space<vmem>>, vector<16x32xf32>,
    %c0_170 = arith.constant 0 : index
    %c0_171 = arith.constant 0 : index
    %c0_172 = arith.constant 0 : index
    %557 = vector.load %arg19[%c0_170, %c0_171, %c0_172] : memref<8x16x32xf32, #tpu.memory_space<vmem>>, vector<8x16x32xf32>
    %c0_173 = arith.constant 0 : index
    %c0_174 = arith.constant 0 : index
    %c0_175 = arith.constant 0 : index
    %558 = vector.load %arg20[%c0_173, %c0_174, %c0_175] : memref<8x16x32xf32, #tpu.memory_space<vmem>>, vector<8x16x32xf32>
    %cst_176 = arith.constant dense<0.000000e+00> : vector<8x16xf32>
    %559 = vector.multi_reduction <add>, %557, %cst_176 [2] : vector<8x16x32xf32> to vector<8x16xf32>
    %560 = vector.shape_cast %559 : vector<8x16xf32> to vector<8x16x1xf32>
    %cst_177 = arith.constant dense<0.000000e+00> : vector<8x16xf32>
    %561 = vector.multi_reduction <add>, %558, %cst_177 [2] : vector<8x16x32xf32> to vector<8x16xf32>
    %562 = vector.shape_cast %561 : vector<8x16xf32> to vector<8x16x1xf32>
    %563 = arith.addf %560, %562 : vector<8x16x1xf32>
    %564 = arith.mulf %557, %557 : vector<8x16x32xf32>
    %cst_178 = arith.constant dense<0.000000e+00> : vector<8x16xf32>
    %565 = vector.multi_reduction <add>, %564, %cst_178 [2] : vector<8x16x32xf32> to vector<8x16xf32>
    %566 = vector.shape_cast %565 : vector<8x16xf32> to vector<8x16x1xf32>
    %567 = arith.mulf %558, %558 : vector<8x16x32xf32>
    %cst_179 = arith.constant dense<0.000000e+00> : vector<8x16xf32>
    %568 = vector.multi_reduction <add>, %567, %cst_179 [2] : vector<8x16x32xf32> to vector<8x16xf32>
    %569 = vector.shape_cast %568 : vector<8x16xf32> to vector<8x16x1xf32>
    %570 = arith.addf %566, %569 : vector<8x16x1xf32>
    %cst_180 = arith.constant 1.562500e-02 : f32
    %571 = vector.broadcast %cst_180 : f32 to vector<8x16x1xf32>
    %572 = arith.mulf %563, %571 : vector<8x16x1xf32>
    %cst_181 = arith.constant 1.562500e-02 : f32
    %573 = vector.broadcast %cst_181 : f32 to vector<8x16x1xf32>
    %574 = arith.mulf %570, %573 : vector<8x16x1xf32>
    %575 = arith.mulf %572, %572 : vector<8x16x1xf32>
    %576 = arith.subf %574, %575 : vector<8x16x1xf32>
    %cst_182 = arith.constant 9.99999974E-6 : f32
    %577 = vector.broadcast %cst_182 : f32 to vector<8x16x1xf32>
    %578 = arith.addf %576, %577 : vector<8x16x1xf32>
    %579 = math.rsqrt %578 : vector<8x16x1xf32>
    %580 = vector.broadcast %572 : vector<8x16x1xf32> to vector<8x16x32xf32>
    %581 = arith.subf %557, %580 : vector<8x16x32xf32>
    %582 = vector.broadcast %579 : vector<8x16x1xf32> to vector<8x16x32xf32>
    %583 = arith.mulf %581, %582 : vector<8x16x32xf32>
    %584 = vector.shape_cast %505 : vector<1x32xf32> to vector<1x1x32xf32>
    %585 = vector.broadcast %584 : vector<1x1x32xf32> to vector<8x16x32xf32>
    %586 = arith.mulf %583, %585 : vector<8x16x32xf32>
    %587 = vector.shape_cast %507 : vector<1x32xf32> to vector<1x1x32xf32>
    %588 = vector.broadcast %587 : vector<1x1x32xf32> to vector<8x16x32xf32>
    %589 = arith.addf %586, %588 : vector<8x16x32xf32>
    %590 = vector.broadcast %572 : vector<8x16x1xf32> to vector<8x16x32xf32>
    %591 = arith.subf %558, %590 : vector<8x16x32xf32>
    %592 = vector.broadcast %579 : vector<8x16x1xf32> to vector<8x16x32xf32>
    %593 = arith.mulf %591, %592 : vector<8x16x32xf32>
    %594 = vector.shape_cast %506 : vector<1x32xf32> to vector<1x1x32xf32>
    %595 = vector.broadcast %594 : vector<1x1x32xf32> to vector<8x16x32xf32>
    %596 = arith.mulf %593, %595 : vector<8x16x32xf32>
    %597 = vector.shape_cast %508 : vector<1x32xf32> to vector<1x1x32xf32>
    %598 = vector.broadcast %597 : vector<1x1x32xf32> to vector<8x16x32xf32>
    %599 = arith.addf %596, %598 : vector<8x16x32xf32>
    %600 = tpu.concatenate %589, %599 in 2 : vector<8x16x32xf32>, vector<8x16x32xf32> -> vector<8x16x64xf32>
    %c0_183 = arith.constant 0 : index
    %c0_184 = arith.constant 0 : index
    %c0_185 = arith.constant 0 : index
    %601 = vector.load %arg15[%c0_183, %c0_184, %c0_185] : memref<8x16x64xf32, #tpu.memory_space<vmem>>, vector<8x16x64xf32>
    tpu.vector_store %arg15[%c0_183, %c0_184, %c0_185], %600 {strides = array<i32>} : memref<8x16x64xf32, #tpu.memory_space<vmem>>, vector<8x16x64xf32>,
    return
  }
}

</mosaic_0001>

<bundles_post_ra>
// kernel: tpu_custom_call.1
= control target key start
LH: loop header
LB: loop body
LE: loop exit
PB: predicated region body
PF: predicated region fallthrough
CT: control target
= control target key end

     0   :  { %s6681_s0 = inlined_call_operand.hbm [shape: f32[8,16,16], index: 0, kind: input, shape index: {}]   ;;  %s6682_s1 = inlined_call_operand.hbm [shape: f32[16,32], index: 1, kind: input, shape index: {}]   ;;  %s6683_s2 = inlined_call_operand.vmem [shape: f32[1,32], index: 2, kind: input, shape index: {}]   ;;  %s6684_s3 = inlined_call_operand.vmem [shape: f32[32,96], index: 3, kind: input, shape index: {}]   ;;  %s6685_s4 = inlined_call_operand.vmem [shape: f32[32,96], index: 4, kind: input, shape index: {}]   ;;  %s6686_s5 = inlined_call_operand.vmem [shape: f32[1,96], index: 5, kind: input, shape index: {}]   ;;  %s6687_s6 = inlined_call_operand.vmem [shape: f32[1,32], index: 6, kind: input, shape index: {}]   ;;  %s6688_s7 = inlined_call_operand.vmem [shape: f32[32,96], index: 7, kind: input, shape index: {}]   ;;  %s6689_s8 = inlined_call_operand.hbm [shape: f32[32,96], index: 8, kind: input, shape index: {}]   ;;  %s6690_s9 = inlined_call_operand.vmem [shape: f32[1,96], index: 9, kind: input, shape index: {}]   ;;  %s6691_s10 = inlined_call_operand.vmem [shape: f32[1,32], index: 10, kind: input, shape index: {}]   ;;  %s6692_s11 = inlined_call_operand.vmem [shape: f32[1,64], index: 11, kind: input, shape index: {}]   ;;  %s6693_s12 = inlined_call_operand.vmem [shape: f32[1,64], index: 12, kind: input, shape index: {}]   ;;  %s6694_s13 = inlined_call_operand.vmem [shape: f32[64,32], index: 13, kind: input, shape index: {}]   ;;  %s6695_s14 = inlined_call_operand.vmem [shape: f32[1,32], index: 14, kind: input, shape index: {}]   ;;  %s6696_s15 = inlined_call_operand.hbm [shape: f32[8,16,64], index: 15, kind: output, shape index: {0}]   ;;  %s6697_s16 = inlined_call_operand.hbm [shape: f32[16,32], index: 16, kind: output, shape index: {1}]  }
   0x1   :  { %6712 = sst [smem:[#allocation32_spill]] %s6681_s0 }
   0x2   :  { %22 = vsyncpa [#allocation7], 0 }
   0x3   :  { %23 = vsyncpa [#allocation10], 0 }
   0x4   :  { %24 = vsyncpa [#allocation8], 0 }
   0x5   :  { %25 = vsyncpa [#allocation14], 0  ;;  %s5168_s21 = smov [#allocation9]   ;;  %s5169_s23 = smov [#allocation6]  }
   0x6   :  { %s43_s22 = sshll.u32 %s5168_s21, 4  ;;  %s31_s24 = sshll.u32 %s5169_s23, 4  ;;  %s44_s22 = int_to_ptr.vmem [resolvable:$true] %s43_s22  ;;  %s5264_s24 = int_to_ptr.vmem [resolvable:$true] %s31_s24 }
   0x7   :  { %s5050_s27 = scalar_lea.hbm %s6682_s1, 256 }
   0x8   :  { %p5051_p0 = scmp.ne.s32.totalorder %s6682_s1, %s5050_s27  ;;  %p5054_p1 = scmp.lt.u32.totalorder %s5050_s27, %s6682_s1 }
   0xa   :  { %p5056_p2 = pnand %p5054_p1, %p5051_p0 }
   0xc   :  { %5059 = shalt.err (!%p5056_p2)
}
   0xd   :  { %s5060_s17 = scalar_lea.vmem %s44_s22, 256  ;;  %p5065_p4 = scmp.lt.s32.totalorder %s44_s22, %s44_s22 }
   0xe   :  { %p5061_p3 = scmp.ne.s32.totalorder %s44_s22, %s5060_s17  ;;  %p5066_p5 = scmp.lt.s32.totalorder %s5060_s17, %s5060_s17 }
  0x10   :  { %p5067_p6 = por %p5066_p5, %p5065_p4 }
  0x12   :  { %p5068_p7 = pnand %p5067_p6, %p5061_p3 }
  0x14   :  { %5071 = shalt.err (!%p5068_p7)
}
  0x15   :  { %s5170_s18 = smov 128   ;;  %s5171_s19 = smov 8  }
  0x16   :  { %49 = dma.hbm_to_vmem [thread:$0]  %s6682_s1, 256, %s44_s22, [#allocation10], %s5170_s18, %s5170_s18, %s5171_s19  }
  0x17   :  { %s6713_s26 = sld [smem:[#allocation32_spill]] }
  0x1d   :  { %s5072_s27 = scalar_lea.hbm %s6713_s26, 2048 }
  0x1e   :  { %p5073_p8 = scmp.ne.s32.totalorder %s6713_s26, %s5072_s27  ;;  %p5076_p9 = scmp.lt.u32.totalorder %s5072_s27, %s6713_s26 }
  0x20   :  { %p5078_p10 = pnand %p5076_p9, %p5073_p8 }
  0x22   :  { %5081 = shalt.err (!%p5078_p10)
}
  0x23   :  { %s5082_s17 = scalar_lea.vmem %s5264_s24, 2048  ;;  %p5087_p12 = scmp.lt.s32.totalorder %s5264_s24, %s5264_s24 }
  0x24   :  { %p5083_p11 = scmp.ne.s32.totalorder %s5264_s24, %s5082_s17  ;;  %p5088_p13 = scmp.lt.s32.totalorder %s5082_s17, %s5082_s17 }
  0x26   :  { %p5089_p0 = por %p5088_p13, %p5087_p12 }
  0x28   :  { %p5090_p1 = pnand %p5089_p0, %p5083_p11 }
  0x2a   :  { %5093 = shalt.err (!%p5090_p1)
}
  0x2b   :  { %37 = dma.hbm_to_vmem [thread:$0]  %s6713_s26, 2048, %s5264_s24, [#allocation7], %s5170_s18, %s5170_s18, %s5171_s19  }
  0x2c   :  { %s5172_s20 = smov [#allocation11]   ;;  %s5094_s27 = scalar_lea.hbm %s6689_s8, 512 }
  0x2d   :  { %s67_s21 = sshll.u32 %s5172_s20, 4  ;;  %p5095_p2 = scmp.ne.s32.totalorder %s6689_s8, %s5094_s27  ;;  %s68_s21 = int_to_ptr.vmem [resolvable:$true] %s67_s21 }
  0x2e   :  { %p5098_p3 = scmp.lt.u32.totalorder %s5094_s27, %s6689_s8 }
  0x30   :  { %p5100_p4 = pnand %p5098_p3, %p5095_p2 }
  0x32   :  { %5103 = shalt.err (!%p5100_p4)
}
  0x33   :  { %s5104_s17 = scalar_lea.vmem %s68_s21, 512  ;;  %p5109_p6 = scmp.lt.s32.totalorder %s68_s21, %s68_s21 }
  0x34   :  { %p5105_p5 = scmp.ne.s32.totalorder %s68_s21, %s5104_s17  ;;  %p5110_p7 = scmp.lt.s32.totalorder %s5104_s17, %s5104_s17 }
  0x36   :  { %p5111_p8 = por %p5110_p7, %p5109_p6 }
  0x38   :  { %p5112_p9 = pnand %p5111_p8, %p5105_p5 }
  0x3a   :  { %5115 = shalt.err (!%p5112_p9)
}
  0x3b   :  { %73 = dma.hbm_to_vmem [thread:$0]  %s6689_s8, 512, %s68_s21, [#allocation10], %s5170_s18, %s5170_s18, %s5171_s19  }
  0x3c   :  { %5160 = dma.done.wait [#allocation7], 2048  }
  0x3d   :  { %5161 = vsyncadd [#allocation7], 4294965248 }
  0x3e   :  { %5162 = dma.done.wait [#allocation10], 768  }
  0x3f   :  { %5163 = vsyncadd [#allocation10], 4294966528  ;;  %vm120_vm0 = vcmask 130048   ;;  %v111_v0 = vld [vmem:[#allocation9] sm:$0xff]  ;;  %v112_v1 = vld [vmem:[#allocation9 + $0x8] sm:$0xff]  ;;  %s5173_s23 = smov 64  }
  0x40   :  { %v95_v2 = vld [vmem:[#allocation6] sm:$0xff]  ;;  %v4605_v3 = vpack.c.bf16 %v112_v1, %v111_v0  ;;  %v96_v4 = vld [vmem:[#allocation6 + $0x8] sm:$0xff]  ;;  %v97_v6 = vld [vmem:[#allocation6 + $0x10] sm:$0xff]  ;;  %vm341_vm1 = vcmask 261120   ;;  %vm535_vm2 = vcmask 785408   ;;  %s5176_s8 = smov 32  }
  0x41   :  { %4319 = vmatprep.mubr.msk.f32.mxu0 %vm120_vm0, %v95_v2  ;;  %v107_v5 = vld [vmem:[#allocation6 + $0x60] sm:$0xff]  ;;  %v108_v7 = vld [vmem:[#allocation6 + $0x68] sm:$0xff]  ;;  %v109_v8 = vld [vmem:[#allocation6 + $0x70] sm:$0xff] }
  0x42   :  { %4606 = vmatprep.subr.bf16.mxu0 %v4605_v3  ;;  %4769 = vmatprep.subr.bf16.mxu1 %v4605_v3  ;;  %v98_v9 = vld [vmem:[#allocation6 + $0x18] sm:$0xff]  ;;  %v99_v11 = vld [vmem:[#allocation6 + $0x20] sm:$0xff]  ;;  %v100_v12 = vld [vmem:[#allocation6 + $0x28] sm:$0xff] }
  0x43   :  { %4608 = vmatpush3.bf16.msra.mxu0 %v4605_v3  ;;  %4770 = vmatpush3.bf16.msra.mxu1 %v4605_v3  ;;  %v110_v10 = vld [vmem:[#allocation6 + $0x78] sm:$0xff]  ;;  %v101_v13 = vld [vmem:[#allocation6 + $0x30] sm:$0xff]  ;;  %v103_v15 = vld [vmem:[#allocation6 + $0x40] sm:$0xff] }
  0x44   :  { %4337 = vmatprep.mubr.msk.f32.mxu1 %vm120_vm0, %v107_v5  ;;  %v102_v14 = vld [vmem:[#allocation6 + $0x38] sm:$0xff]  ;;  %v104_v16 = vld [vmem:[#allocation6 + $0x48] sm:$0xff]  ;;  %v105_v17 = vld [vmem:[#allocation6 + $0x50] sm:$0xff] }
  0x45   :  { %v106_v18 = vld [vmem:[#allocation6 + $0x58] sm:$0xff]  ;;  %v330_v19 = vld [vmem:[%s6684_s3] sm:$0xff]  ;;  %v331_v20 = vld [vmem:[%s6684_s3 + $0x8] sm:$0xff] }
  0x46   :  { %4320 = vmatmul.mubr.msk.f32.vlgmr.msra.gmra.mrb[0].mxu0 %vm120_vm0, %v96_v4  ;;  %4338 = vmatmul.mubr.msk.f32.vlgmr.msra.gmra.mrb[0].mxu1 %vm120_vm0, %v108_v7  ;;  %v552_v21 = vld [vmem:[%s6688_s7] sm:$0xff]  ;;  %v4609_v22 = vpack.c.bf16 %v331_v20, %v330_v19  ;;  %v553_v23 = vld [vmem:[%s6688_s7 + $0x8] sm:$0xff]  ;;  %v332_v25 = vld [vmem:[%s6684_s3 + $0x10] sm:$0xff] }
  0x47   :  { %4322 = vmatprep.mubr.msk.f32.mxu0 %vm120_vm0, %v97_v6  ;;  %4340 = vmatprep.mubr.msk.f32.mxu1 %vm120_vm0, %v109_v8  ;;  %v4617_v24 = vpack.c.bf16 %v553_v23, %v552_v21  ;;  %v333_v26 = vld [vmem:[%s6684_s3 + $0x18] sm:$0xff]  ;;  %v554_v27 = vld [vmem:[%s6688_s7 + $0x10] sm:$0xff]  ;;  %v724_v31 = vld [vmem:[%s6685_s4] sm:$0xff] }
  0x48   :  { %4610 = vmatprep.subr.bf16.mxu1 %v4609_v22  ;;  %v4613_v28 = vpack.c.bf16 %v333_v26, %v332_v25  ;;  %v555_v29 = vld [vmem:[%s6688_s7 + $0x18] sm:$0xff]  ;;  %v725_v32 = vld [vmem:[%s6685_s4 + $0x8] sm:$0xff]  ;;  %v4080_v34 = vld [vmem:[%s6687_s6] ss:$0 sm:$0xff] }
  0x49   :  { %4612 = vmatpush3.bf16.msra.mxu1 %v4609_v22  ;;  %4618 = vmatprep.subr.bf16.mxu0 %v4617_v24  ;;  %v4621_v30 = vpack.c.bf16 %v555_v29, %v554_v27  ;;  %v5362_v33 = vpack.c.bf16 %v725_v32, %v724_v31  ;;  %v4081_v35 = vld [vmem:[%s6691_s10] ss:$0 sm:$0xff]  ;;  %v726_v53 = vld [vmem:[%s6685_s4 + $0x10] sm:$0xff]  ;;  %v727_v54 = vld [vmem:[%s6685_s4 + $0x18] sm:$0xff]  ;;  %v5174_v29 = vmov 0.0  }
  0x4a   :  { %4323 = vmatmul.mubr.msk.f32.gmra.mrb[2].mxu0 %vm120_vm0, %v98_v9  ;;  %4341 = vmatmul.mubr.msk.f32.gmra.mrb[2].mxu1 %vm120_vm0, %v110_v10  ;;  %v5377_v36 = vld [vmem:[%s6683_s2] ss:$0 sm:$0xff]  ;;  %v5397_v60 = vpack.c.bf16 %v727_v54, %v726_v53  ;;  %v728_v62 = vld [vmem:[#allocation11] sm:$0xff]  ;;  %v729_v63 = vld [vmem:[#allocation11 + $0x8] sm:$0xff] }
  0x4b   :  { %4325 = vmatprep.mubr.msk.f32.mxu0 %vm120_vm0, %v99_v11  ;;  %4620 = vmatpush3.bf16.msra.mxu0 %v4617_v24  ;;  %v5408_v5 = vpack.c.bf16 %v729_v63, %v728_v62  ;;  %v730_v27 = vld [vmem:[#allocation11 + $0x10] sm:$0xff] }
  0x4c   :  { %4614 = vmatprep.subr.bf16.mxu1 %v4613_v28  ;;  %4622 = vmatprep.subr.bf16.mxu0 %v4621_v30  ;;  %v5464_v31 = vld [vmem:[%s6686_s5] ss:$0 sm:$0xff]  ;;  %s5175_s5 = smov 96  }
  0x4d   :  { %4616 = vmatpush3.bf16.msra.mxu1 %v4613_v28  ;;  %838 = vrot.lane.b32.xlu0 %v4080_v34, %s5173_s23  ;;  %v731_v28 = vld [vmem:[#allocation11 + $0x18] sm:$0xff]  ;;  %v5469_v32 = vld [vmem:[%s6690_s9] ss:$0 sm:$0xff] }
  0x4e   :  { %4326 = vmatmul.mubr.msk.f32.gmra.mrb[4].mxu0 %vm120_vm0, %v100_v12  ;;  %4626 = vmatprep.subr.bf16.mxu1 %v5362_v33 }
  0x4f   :  { %4328 = vmatprep.mubr.msk.f32.mxu0 %vm120_vm0, %v101_v13  ;;  %4624 = vmatpush3.bf16.msra.mxu0 %v4621_v30  ;;  %v5451_v30 = vpack.c.bf16 %v731_v28, %v730_v27 }
  0x50   :  { %4658 = vmatprep.subr.bf16.mxu0 %v5362_v33 }
  0x51   :  { %973 = vrot.lane.b32.xlu0 %v4081_v35, %s5173_s23 }
  0x52   :  { %4329 = vmatmul.mubr.msk.f32.gmra.mrb[6].mxu0 %vm120_vm0, %v102_v14 }
  0x53   :  { %4331 = vmatprep.mubr.msk.f32.mxu0 %vm120_vm0, %v103_v15 }
  0x56   :  { %4332 = vmatmul.mubr.msk.f32.gmra.mrb[8].mxu0 %vm120_vm0, %v104_v16 }
  0x57   :  { %4334 = vmatprep.mubr.msk.f32.mxu0 %vm120_vm0, %v105_v17 }
  0x5a   :  { %4335 = vmatmul.mubr.msk.f32.gmra.mrb[10].mxu0 %vm120_vm0, %v106_v18 }
 0x119   :  { %v4321_v37 = vpop.f32.mrb[0].mxu0  ;;  %v5379_v38 = vpop.f32.mrb[0].mxu1 }
 0x11a   :  { %v241_v39 = vadd.f32 %v4321_v37, %v5377_v36  ;;  %v235_v40 = vpop.f32.mrb[1].mxu0  ;;  %v295_v41 = vpop.f32.mrb[1].mxu1  ;;  %v301_v15 = vadd.f32 %v5379_v38, %v5377_v36 }
 0x11b   :  { %v236_v42 = vadd.f32 %v5377_v36, %v235_v40  ;;  %v296_v7 = vadd.f32 %v5377_v36, %v295_v41 }
 0x11d   :  { %4784 = vtanh.f32 %v236_v42  ;;  %v4324_v43 = vpop.f32.mrb[2].mxu0  ;;  %v5383_v44 = vpop.f32.mrb[2].mxu1 }
 0x11e   :  { %4786 = vtanh.f32 %v241_v39  ;;  %v251_v45 = vadd.f32 %v4324_v43, %v5377_v36  ;;  %v245_v46 = vpop.f32.mrb[3].mxu0  ;;  %v305_v47 = vpop.f32.mrb[3].mxu1  ;;  %v311_v18 = vadd.f32 %v5383_v44, %v5377_v36 }
 0x11f   :  { %v246_v48 = vadd.f32 %v5377_v36, %v245_v46  ;;  %v306_v14 = vadd.f32 %v5377_v36, %v305_v47 }
 0x121   :  { %4788 = vtanh.f32 %v246_v48  ;;  %v4327_v49 = vpop.f32.mrb[4].mxu0 }
 0x122   :  { %4790 = vtanh.f32 %v251_v45  ;;  %v261_v50 = vadd.f32 %v4327_v49, %v5377_v36  ;;  %v255_v51 = vpop.f32.mrb[5].mxu0 }
 0x123   :  { %v256_v52 = vadd.f32 %v5377_v36, %v255_v51 }
 0x125   :  { %4792 = vtanh.f32 %v256_v52  ;;  %v4330_v55 = vpop.f32.mrb[6].mxu0 }
 0x126   :  { %4794 = vtanh.f32 %v261_v50  ;;  %v271_v56 = vadd.f32 %v4330_v55, %v5377_v36  ;;  %v265_v57 = vpop.f32.mrb[7].mxu0 }
 0x127   :  { %v4785_v58 = vpop.eup %4784  ;;  %v266_v59 = vadd.f32 %v5377_v36, %v265_v57 }
 0x128   :  { %v4787_v61 = vpop.eup %4786  ;;  %4351 = vmatprep.mubr.msk.f32.mxu1 %vm341_vm1, %v4785_v58  ;;  %4383 = vmatprep.mubr.msk.f32.mxu0 %vm341_vm1, %v4785_v58 }
 0x129   :  { %4796 = vtanh.f32 %v266_v59  ;;  %v4333_v0 = vpop.f32.mrb[8].mxu0  ;;  %4352 = vmatmul.mubr.msk.f32.vlgmr.msra.gmra.mrb[4].mxu1 %vm341_vm1, %v4787_v61  ;;  %4384 = vmatmul.mubr.msk.f32.vlgmr.msra.gmra.mrb[12].mxu0 %vm341_vm1, %v4787_v61 }
 0x12a   :  { %4798 = vtanh.f32 %v271_v56  ;;  %v281_v1 = vadd.f32 %v4333_v0, %v5377_v36  ;;  %4628 = vmatpush3.bf16.msra.mxu1 %v5362_v33  ;;  %v275_v2 = vpop.f32.mrb[9].mxu0  ;;  %4660 = vmatpush3.bf16.msra.mxu0 %v5362_v33 }
 0x12b   :  { %v4789_v3 = vpop.eup %4788  ;;  %v276_v4 = vadd.f32 %v5377_v36, %v275_v2  ;;  %4630 = vmatprep.subr.bf16.mxu1 %v5397_v60  ;;  %4662 = vmatprep.subr.bf16.mxu0 %v5397_v60 }
 0x12c   :  { %v4791_v6 = vpop.eup %4790  ;;  %4354 = vmatprep.mubr.msk.f32.mxu1 %vm341_vm1, %v4789_v3  ;;  %4386 = vmatprep.mubr.msk.f32.mxu0 %vm341_vm1, %v4789_v3 }
 0x12d   :  { %4800 = vtanh.f32 %v276_v4  ;;  %v4336_v8 = vpop.f32.mrb[10].mxu0  ;;  %4355 = vmatmul.mubr.msk.f32.gmra.mrb[6].mxu1 %vm341_vm1, %v4791_v6  ;;  %4387 = vmatmul.mubr.msk.f32.gmra.mrb[14].mxu0 %vm341_vm1, %v4791_v6 }
 0x12e   :  { %4802 = vtanh.f32 %v281_v1  ;;  %v291_v9 = vadd.f32 %v4336_v8, %v5377_v36  ;;  %v285_v10 = vpop.f32.mrb[11].mxu0  ;;  %4632 = vmatpush3.bf16.msra.mxu1 %v5397_v60  ;;  %4664 = vmatpush3.bf16.msra.mxu0 %v5397_v60 }
 0x12f   :  { %v4793_v11 = vpop.eup %4792  ;;  %v286_v12 = vadd.f32 %v5377_v36, %v285_v10  ;;  %4634 = vmatprep.subr.bf16.mxu1 %v5408_v5  ;;  %4674 = vmatprep.subr.bf16.mxu0 %v5362_v33  ;;  %4804 = vtanh.f32 %v296_v7 }
 0x130   :  { %v4795_v13 = vpop.eup %4794  ;;  %4357 = vmatprep.mubr.msk.f32.mxu1 %vm341_vm1, %v4793_v11  ;;  %4389 = vmatprep.mubr.msk.f32.mxu0 %vm341_vm1, %v4793_v11 }
 0x131   :  { %4806 = vtanh.f32 %v286_v12  ;;  %4358 = vmatmul.mubr.msk.f32.gmra.mrb[8].mxu1 %vm341_vm1, %v4795_v13  ;;  %4390 = vmatmul.mubr.msk.f32.gmra.mrb[16].mxu0 %vm341_vm1, %v4795_v13 }
 0x132   :  { %4808 = vtanh.f32 %v291_v9 }
 0x133   :  { %v4797_v16 = vpop.eup %4796  ;;  %4810 = vtanh.f32 %v306_v14 }
 0x134   :  { %v4799_v17 = vpop.eup %4798  ;;  %4360 = vmatprep.mubr.msk.f32.mxu1 %vm341_vm1, %v4797_v16  ;;  %4392 = vmatprep.mubr.msk.f32.mxu0 %vm341_vm1, %v4797_v16  ;;  %4812 = vtanh.f32 %v301_v15 }
 0x135   :  { %4361 = vmatmul.mubr.msk.f32.gmra.mrb[10].mxu1 %vm341_vm1, %v4799_v17  ;;  %4393 = vmatmul.mubr.msk.f32.gmra.mrb[18].mxu0 %vm341_vm1, %v4799_v17  ;;  %4814 = vtanh.f32 %v311_v18 }
 0x137   :  { %v4801_v19 = vpop.eup %4800 }
 0x138   :  { %v4803_v20 = vpop.eup %4802  ;;  %4363 = vmatprep.mubr.msk.f32.mxu1 %vm341_vm1, %v4801_v19  ;;  %4395 = vmatprep.mubr.msk.f32.mxu0 %vm341_vm1, %v4801_v19 }
 0x139   :  { %4364 = vmatmul.mubr.msk.f32.gmra.mrb[12].mxu1 %vm341_vm1, %v4803_v20  ;;  %4396 = vmatmul.mubr.msk.f32.gmra.mrb[20].mxu0 %vm341_vm1, %v4803_v20  ;;  %v4805_v21 = vpop.eup %4804 }
 0x13b   :  { %v4807_v22 = vpop.eup %4806 }
 0x13c   :  { %v4809_v23 = vpop.eup %4808  ;;  %4366 = vmatprep.mubr.msk.f32.mxu1 %vm341_vm1, %v4807_v22  ;;  %4398 = vmatprep.mubr.msk.f32.mxu0 %vm341_vm1, %v4807_v22 }
 0x13d   :  { %4367 = vmatmul.mubr.msk.f32.gmra.mrb[14].mxu1 %vm341_vm1, %v4809_v23  ;;  %4399 = vmatmul.mubr.msk.f32.gmra.mrb[22].mxu0 %vm341_vm1, %v4809_v23  ;;  %v4811_v24 = vpop.eup %4810 }
 0x13e   :  { %4369 = vmatprep.mubr.msk.f32.mxu1 %vm341_vm1, %v4805_v21  ;;  %4401 = vmatprep.mubr.msk.f32.mxu0 %vm341_vm1, %v4805_v21  ;;  %v4813_v25 = vpop.eup %4812 }
 0x13f   :  { %v4815_v26 = vpop.eup %4814 }
 0x141   :  { %4370 = vmatmul.mubr.msk.f32.gmra.mrb[16].mxu1 %vm341_vm1, %v4813_v25  ;;  %4402 = vmatmul.mubr.msk.f32.gmra.mrb[24].mxu0 %vm341_vm1, %v4813_v25 }
 0x142   :  { %4372 = vmatprep.mubr.msk.f32.mxu1 %vm341_vm1, %v4811_v24  ;;  %4404 = vmatprep.mubr.msk.f32.mxu0 %vm341_vm1, %v4811_v24 }
 0x145   :  { %4373 = vmatmul.mubr.msk.f32.gmra.mrb[18].mxu1 %vm341_vm1, %v4815_v26  ;;  %4405 = vmatmul.mubr.msk.f32.gmra.mrb[26].mxu0 %vm341_vm1, %v4815_v26 }
 0x146   :  { %4415 = vmatprep.mubr.f32.mxu1 %v5174_v29 }
 0x149   :  { %4416 = vmatmul.mubr.f32.vlgmr.msra.gmra.mrb[20].mxu1 %v5174_v29 }
 0x14a   :  { %4636 = vmatpush3.bf16.msra.mxu1 %v5408_v5  ;;  %4426 = vmatprep.mubr.f32.mxu1 %v5174_v29 }
 0x14b   :  { %4638 = vmatprep.subr.bf16.mxu1 %v5451_v30 }
 0x14e   :  { %4640 = vmatpush3.bf16.msra.mxu1 %v5451_v30 }
 0x14f   :  { %4642 = vmatprep.subr.bf16.mxu1 %v5362_v33 }
 0x151   :  { %4427 = vmatmul.mubr.f32.vlgmr.msra.gmra.mrb[22].mxu1 %v5174_v29 }
 0x152   :  { %4644 = vmatpush3.bf16.msra.mxu1 %v5362_v33 }
 0x153   :  { %4646 = vmatprep.subr.bf16.mxu1 %v5397_v60 }
 0x156   :  { %4648 = vmatpush3.bf16.msra.mxu1 %v5397_v60 }
 0x157   :  { %4650 = vmatprep.subr.bf16.mxu1 %v5408_v5 }
 0x1fc   :  { %v4353_v34 = vpop.f32.mrb[4].mxu1  ;;  %v4385_v35 = vpop.f32.mrb[12].mxu0 }
 0x1fd   :  { %v462_v36 = vadd.f32 %v4353_v34, %v5464_v31  ;;  %v635_v37 = vadd.f32 %v4385_v35, %v5469_v32  ;;  %v456_v38 = vpop.f32.mrb[5].mxu1  ;;  %v629_v39 = vpop.f32.mrb[13].mxu0 }
 0x1fe   :  { %v457_v40 = vadd.f32 %v5464_v31, %v456_v38  ;;  %v630_v41 = vadd.f32 %v5469_v32, %v629_v39 }
 0x1ff   :  { %537 = vst.msk [vmem:[#allocation2 + $0x8] sm:$0xff] %vm535_vm2, %v462_v36  ;;  %709 = vst.msk [vmem:[#allocation3 + $0x8] sm:$0xff] %vm535_vm2, %v635_v37 }
 0x200   :  { %536 = vst.msk [vmem:[#allocation2] sm:$0xff] %vm535_vm2, %v457_v40  ;;  %708 = vst.msk [vmem:[#allocation3] sm:$0xff] %vm535_vm2, %v630_v41  ;;  %v4356_v42 = vpop.f32.mrb[6].mxu1  ;;  %v4388_v43 = vpop.f32.mrb[14].mxu0 }
 0x201   :  { %v472_v44 = vadd.f32 %v4356_v42, %v5464_v31  ;;  %v645_v45 = vadd.f32 %v4388_v43, %v5469_v32  ;;  %v466_v46 = vpop.f32.mrb[7].mxu1  ;;  %v639_v47 = vpop.f32.mrb[15].mxu0 }
 0x202   :  { %v467_v48 = vadd.f32 %v5464_v31, %v466_v46  ;;  %v640_v49 = vadd.f32 %v5469_v32, %v639_v47  ;;  %v5533_v40 = vpop.permute.xlu0 %838 }
 0x203   :  { %539 = vst.msk [vmem:[#allocation2 + $0x18] sm:$0xff] %vm535_vm2, %v472_v44  ;;  %711 = vst.msk [vmem:[#allocation3 + $0x18] sm:$0xff] %vm535_vm2, %v645_v45 }
 0x204   :  { %538 = vst.msk [vmem:[#allocation2 + $0x10] sm:$0xff] %vm535_vm2, %v467_v48  ;;  %710 = vst.msk [vmem:[#allocation3 + $0x10] sm:$0xff] %vm535_vm2, %v640_v49  ;;  %v4359_v50 = vpop.f32.mrb[8].mxu1  ;;  %v4391_v51 = vpop.f32.mrb[16].mxu0 }
 0x205   :  { %v482_v52 = vadd.f32 %v4359_v50, %v5464_v31  ;;  %v655_v53 = vadd.f32 %v4391_v51, %v5469_v32  ;;  %v476_v54 = vpop.f32.mrb[9].mxu1  ;;  %v649_v55 = vpop.f32.mrb[17].mxu0 }
 0x206   :  { %v477_v56 = vadd.f32 %v5464_v31, %v476_v54  ;;  %v650_v57 = vadd.f32 %v5469_v32, %v649_v55  ;;  %v5540_v44 = vpop.permute.xlu0 %973  ;;  %v745_v50 = vld [vmem:[#allocation2 + $0x8] sm:$0xff] }
 0x207   :  { %541 = vst.msk [vmem:[#allocation2 + $0x28] sm:$0xff] %vm535_vm2, %v482_v52  ;;  %713 = vst.msk [vmem:[#allocation3 + $0x28] sm:$0xff] %vm535_vm2, %v655_v53  ;;  %v744_v48 = vld [vmem:[#allocation2] sm:$0xff] }
 0x208   :  { %540 = vst.msk [vmem:[#allocation2 + $0x20] sm:$0xff] %vm535_vm2, %v477_v56  ;;  %712 = vst.msk [vmem:[#allocation3 + $0x20] sm:$0xff] %vm535_vm2, %v650_v57  ;;  %v4362_v58 = vpop.f32.mrb[10].mxu1  ;;  %v4394_v59 = vpop.f32.mrb[18].mxu0 }
 0x209   :  { %v492_v61 = vadd.f32 %v4362_v58, %v5464_v31  ;;  %v665_v62 = vadd.f32 %v4394_v59, %v5469_v32  ;;  %v486_v63 = vpop.f32.mrb[11].mxu1  ;;  %v659_v0 = vpop.f32.mrb[19].mxu0 }
 0x20a   :  { %v487_v1 = vadd.f32 %v5464_v31, %v486_v63  ;;  %v660_v2 = vadd.f32 %v5469_v32, %v659_v0 }
 0x20b   :  { %543 = vst.msk [vmem:[#allocation2 + $0x38] sm:$0xff] %vm535_vm2, %v492_v61  ;;  %715 = vst.msk [vmem:[#allocation3 + $0x38] sm:$0xff] %vm535_vm2, %v665_v62 }
 0x20c   :  { %542 = vst.msk [vmem:[#allocation2 + $0x30] sm:$0xff] %vm535_vm2, %v487_v1  ;;  %714 = vst.msk [vmem:[#allocation3 + $0x30] sm:$0xff] %vm535_vm2, %v660_v2  ;;  %v4365_v3 = vpop.f32.mrb[12].mxu1  ;;  %v4397_v4 = vpop.f32.mrb[20].mxu0 }
 0x20d   :  { %v502_v6 = vadd.f32 %v4365_v3, %v5464_v31  ;;  %v675_v7 = vadd.f32 %v4397_v4, %v5469_v32  ;;  %v496_v8 = vpop.f32.mrb[13].mxu1  ;;  %v669_v9 = vpop.f32.mrb[21].mxu0 }
 0x20e   :  { %v497_v10 = vadd.f32 %v5464_v31, %v496_v8  ;;  %v670_v11 = vadd.f32 %v5469_v32, %v669_v9 }
 0x20f   :  { %545 = vst.msk [vmem:[#allocation2 + $0x48] sm:$0xff] %vm535_vm2, %v502_v6  ;;  %717 = vst.msk [vmem:[#allocation3 + $0x48] sm:$0xff] %vm535_vm2, %v675_v7 }
 0x210   :  { %544 = vst.msk [vmem:[#allocation2 + $0x40] sm:$0xff] %vm535_vm2, %v497_v10  ;;  %716 = vst.msk [vmem:[#allocation3 + $0x40] sm:$0xff] %vm535_vm2, %v670_v11  ;;  %v4368_v12 = vpop.f32.mrb[14].mxu1  ;;  %v4400_v13 = vpop.f32.mrb[22].mxu0 }
 0x211   :  { %v512_v14 = vadd.f32 %v4368_v12, %v5464_v31  ;;  %v685_v15 = vadd.f32 %v4400_v13, %v5469_v32  ;;  %v506_v16 = vpop.f32.mrb[15].mxu1  ;;  %v679_v17 = vpop.f32.mrb[23].mxu0 }
 0x212   :  { %v507_v18 = vadd.f32 %v5464_v31, %v506_v16  ;;  %v680_v19 = vadd.f32 %v5469_v32, %v679_v17 }
 0x213   :  { %547 = vst.msk [vmem:[#allocation2 + $0x58] sm:$0xff] %vm535_vm2, %v512_v14  ;;  %719 = vst.msk [vmem:[#allocation3 + $0x58] sm:$0xff] %vm535_vm2, %v685_v15 }
 0x214   :  { %546 = vst.msk [vmem:[#allocation2 + $0x50] sm:$0xff] %vm535_vm2, %v507_v18  ;;  %718 = vst.msk [vmem:[#allocation3 + $0x50] sm:$0xff] %vm535_vm2, %v680_v19  ;;  %v4371_v20 = vpop.f32.mrb[16].mxu1  ;;  %v4403_v21 = vpop.f32.mrb[24].mxu0 }
 0x215   :  { %v522_v22 = vadd.f32 %v4371_v20, %v5464_v31  ;;  %v695_v23 = vadd.f32 %v4403_v21, %v5469_v32  ;;  %v516_v24 = vpop.f32.mrb[17].mxu1  ;;  %v689_v25 = vpop.f32.mrb[25].mxu0 }
 0x216   :  { %v517_v26 = vadd.f32 %v5464_v31, %v516_v24  ;;  %v690_v27 = vadd.f32 %v5469_v32, %v689_v25 }
 0x217   :  { %549 = vst.msk [vmem:[#allocation2 + $0x68] sm:$0xff] %vm535_vm2, %v522_v22  ;;  %721 = vst.msk [vmem:[#allocation3 + $0x68] sm:$0xff] %vm535_vm2, %v695_v23 }
 0x218   :  { %548 = vst.msk [vmem:[#allocation2 + $0x60] sm:$0xff] %vm535_vm2, %v517_v26  ;;  %720 = vst.msk [vmem:[#allocation3 + $0x60] sm:$0xff] %vm535_vm2, %v690_v27  ;;  %v4374_v28 = vpop.f32.mrb[18].mxu1  ;;  %v4406_v29 = vpop.f32.mrb[26].mxu0 }
 0x219   :  { %v532_v34 = vadd.f32 %v4374_v28, %v5464_v31  ;;  %v705_v35 = vadd.f32 %v4406_v29, %v5469_v32  ;;  %v526_v36 = vpop.f32.mrb[19].mxu1  ;;  %v699_v37 = vpop.f32.mrb[27].mxu0 }
 0x21a   :  { %v527_v38 = vadd.f32 %v5464_v31, %v526_v36  ;;  %v700_v39 = vadd.f32 %v5469_v32, %v699_v37 }
 0x21b   :  { %551 = vst.msk [vmem:[#allocation2 + $0x78] sm:$0xff] %vm535_vm2, %v532_v34  ;;  %723 = vst.msk [vmem:[#allocation3 + $0x78] sm:$0xff] %vm535_vm2, %v705_v35 }
 0x21c   :  { %550 = vst.msk [vmem:[#allocation2 + $0x70] sm:$0xff] %vm535_vm2, %v527_v38  ;;  %722 = vst.msk [vmem:[#allocation3 + $0x70] sm:$0xff] %vm535_vm2, %v700_v39  ;;  %v4417_v41 = vpop.f32.mrb[20].mxu1 }
 0x21d   :  { %v815_v42 = vpop.f32.mrb[21].mxu1  ;;  %v842_v31 = vadd.f32 %v4417_v41, %v5533_v40  ;;  %v825_v51 = vadd.f32 %v4417_v41, %v745_v50 }
 0x21e   :  { %v841_v43 = vadd.f32 %v5533_v40, %v815_v42  ;;  %v824_v49 = vadd.f32 %v815_v42, %v744_v48 }
 0x21f   :  { %v4083_v56 = vmul.f32 -1.442695, %v825_v51 }
 0x220   :  { %845 = vrot.lane.b32.xlu1 %v841_v43, %s5173_s23  ;;  %v4082_v52 = vmul.f32 -1.442695, %v824_v49 }
 0x222   :  { %v883_v53 = vld [vmem:[#allocation3 + $0x78] sm:$0xff]  ;;  %4816 = vpow2.f32 %v4082_v52 }
 0x223   :  { %v882_v54 = vld [vmem:[#allocation3 + $0x70] sm:$0xff]  ;;  %4818 = vpow2.f32 %v4083_v56 }
 0x224   :  { %v4428_v32 = vpop.f32.mrb[22].mxu1  ;;  %847 = vrot.lane.b32.xlu1 %v842_v31, %s5173_s23 }
 0x225   :  { %v950_v45 = vpop.f32.mrb[23].mxu1  ;;  %v977_v46 = vadd.f32 %v4428_v32, %v5540_v44  ;;  %v960_v55 = vadd.f32 %v4428_v32, %v883_v53 }
 0x226   :  { %v976_v47 = vadd.f32 %v5540_v44, %v950_v45  ;;  %v959_v57 = vadd.f32 %v950_v45, %v882_v54 }
 0x227   :  { %v4085_v58 = vmul.f32 -1.442695, %v960_v55 }
 0x228   :  { %980 = vrot.lane.b32.xlu0 %v976_v47, %s5173_s23  ;;  %982 = vrot.lane.b32.xlu1 %v977_v46, %s5173_s23  ;;  %v4084_v59 = vmul.f32 -1.442695, %v959_v57 }
 0x229   :  { %4820 = vpow2.f32 %v4085_v58 }
 0x22a   :  { %4822 = vpow2.f32 %v4084_v59 }
 0x22c   :  { %v4817_v61 = vpop.eup %4816 }
 0x22d   :  { %v832_v62 = vadd.f32 1.0, %v4817_v61  ;;  %v4819_v63 = vpop.eup %4818 }
 0x22e   :  { %v833_v1 = vadd.f32 1.0, %v4819_v63 }
 0x22f   :  { %4824 = vrcp.f32 %v832_v62 }
 0x230   :  { %4826 = vrcp.f32 %v833_v1 }
 0x233   :  { %v4821_v0 = vpop.eup %4820 }
 0x234   :  { %v4823_v2 = vpop.eup %4822  ;;  %v968_v3 = vadd.f32 1.0, %v4821_v0 }
 0x235   :  { %v967_v4 = vadd.f32 1.0, %v4823_v2 }
 0x236   :  { %4828 = vrcp.f32 %v968_v3  ;;  %v1038_v3 = vld [vmem:[#allocation2 + $0x10] sm:$0xff] }
 0x237   :  { %4830 = vrcp.f32 %v967_v4 }
 0x239   :  { %v4825_v6 = vpop.eup %4824 }
 0x23a   :  { %v4827_v9 = vpop.eup %4826  ;;  %v865_v34 = vsub.f32 1.0, %v4825_v6  ;;  %v877_v36 = vmul.f32 0.0, %v4825_v6 }
 0x23b   :  { %v866_v39 = vsub.f32 1.0, %v4827_v9  ;;  %v878_v42 = vmul.f32 0.0, %v4827_v9 }
 0x240   :  { %v4829_v12 = vpop.eup %4828 }
 0x241   :  { %v4831_v13 = vpop.eup %4830  ;;  %v1001_v46 = vsub.f32 1.0, %v4829_v12 }
 0x242   :  { %v1000_v32 = vsub.f32 1.0, %v4831_v13  ;;  %v1012_v47 = vmul.f32 0.0, %v4831_v13 }
 0x292   :  { %v846_v7 = vpop.permute.xlu1 %845 }
 0x293   :  { %v851_v8 = vmul.f32 %v4825_v6, %v846_v7  ;;  %v1039_v6 = vld [vmem:[#allocation2 + $0x18] sm:$0xff] }
 0x295   :  { %855 = vrot.lane.b32.xlu0 %v851_v8, %s5173_s23 }
 0x296   :  { %v848_v10 = vpop.permute.xlu1 %847 }
 0x297   :  { %v852_v11 = vmul.f32 %v4827_v9, %v848_v10  ;;  %v1174_v9 = vld [vmem:[#allocation3 + $0x60] sm:$0xff] }
 0x299   :  { %857 = vrot.lane.b32.xlu1 %v852_v11, %s5173_s23 }
 0x29a   :  { %v981_v14 = vpop.permute.xlu0 %980  ;;  %v983_v15 = vpop.permute.xlu1 %982 }
 0x29b   :  { %v986_v16 = vmul.f32 %v4831_v13, %v981_v14  ;;  %v987_v17 = vmul.f32 %v4829_v12, %v983_v15 }
 0x29d   :  { %990 = vrot.lane.b32.xlu0 %v986_v16, %s5173_s23  ;;  %992 = vrot.lane.b32.xlu1 %v987_v17, %s5173_s23 }
 0x307   :  { %v856_v18 = vpop.permute.xlu0 %855 }
 0x308   :  { %v861_v19 = vadd.f32 %v856_v18, %v744_v48 }
 0x30a   :  { %4832 = vtanh.f32 %v861_v19 }
 0x30b   :  { %v858_v20 = vpop.permute.xlu1 %857 }
 0x30c   :  { %v862_v21 = vadd.f32 %v858_v20, %v745_v50  ;;  %v1013_v50 = vmul.f32 0.0, %v4829_v12  ;;  %v1175_v12 = vld [vmem:[#allocation3 + $0x68] sm:$0xff] }
 0x30e   :  { %4834 = vtanh.f32 %v862_v21 }
 0x30f   :  { %v991_v22 = vpop.permute.xlu0 %990  ;;  %v993_v23 = vpop.permute.xlu1 %992 }
 0x310   :  { %v996_v24 = vadd.f32 %v991_v22, %v882_v54  ;;  %v997_v25 = vadd.f32 %v993_v23, %v883_v53 }
 0x312   :  { %4836 = vtanh.f32 %v996_v24 }
 0x313   :  { %4838 = vtanh.f32 %v997_v25 }
 0x314   :  { %v4833_v26 = vpop.eup %4832 }
 0x315   :  { %869 = vrot.lane.b32.xlu0 %v4833_v26, %s5175_s5 }
 0x318   :  { %v4835_v27 = vpop.eup %4834 }
 0x319   :  { %871 = vrot.lane.b32.xlu1 %v4835_v27, %s5175_s5 }
 0x31c   :  { %v4837_v28 = vpop.eup %4836 }
 0x31d   :  { %v4839_v29 = vpop.eup %4838  ;;  %1004 = vrot.lane.b32.xlu0 %v4837_v28, %s5175_s5 }
 0x31e   :  { %1006 = vrot.lane.b32.xlu1 %v4839_v29, %s5175_s5 }
 0x387   :  { %v870_v35 = vpop.permute.xlu0 %869 }
 0x388   :  { %v875_v37 = vmul.f32 %v870_v35, %v865_v34 }
 0x38a   :  { %v5555_v38 = vadd.f32 %v877_v36, %v875_v37 }
 0x38b   :  { %v872_v41 = vpop.permute.xlu1 %871 }
 0x38c   :  { %v876_v43 = vmul.f32 %v872_v41, %v866_v39  ;;  %1018 = vrot.lane.b32.xlu0 %v5555_v38, %s5175_s5 }
 0x38e   :  { %v5559_v31 = vadd.f32 %v878_v42, %v876_v43 }
 0x38f   :  { %v1005_v45 = vpop.permute.xlu0 %1004 }
 0x390   :  { %v1010_v48 = vmul.f32 %v1005_v45, %v1000_v32  ;;  %v1007_v49 = vpop.permute.xlu1 %1006  ;;  %1020 = vrot.lane.b32.xlu1 %v5559_v31, %s5175_s5 }
 0x391   :  { %v1011_v51 = vmul.f32 %v1007_v49, %v1001_v46 }
 0x392   :  { %v5563_v52 = vadd.f32 %v1012_v47, %v1010_v48 }
 0x393   :  { %v5565_v53 = vadd.f32 %v1013_v50, %v1011_v51 }
 0x394   :  { %1028 = vrot.lane.b32.xlu0 %v5563_v52, %s5175_s5 }
 0x395   :  { %1030 = vrot.lane.b32.xlu1 %v5565_v53, %s5175_s5 }
 0x3fe   :  { %v1019_v54 = vpop.permute.xlu0 %1018 }
 0x3ff   :  { %1024 = vst.msk [vmem:[#allocation4] sm:$0xff] %vm341_vm1, %v1019_v54  ;;  %4437 = vmatprep.mubr.msk.f32.mxu1 %vm341_vm1, %v1019_v54 }
 0x402   :  { %v1021_v55 = vpop.permute.xlu1 %1020 }
 0x403   :  { %1025 = vst.msk [vmem:[#allocation4 + $0x8] sm:$0xff] %vm341_vm1, %v1021_v55  ;;  %4438 = vmatmul.mubr.msk.f32.vlgmr.msra.gmra.mrb[24].mxu1 %vm341_vm1, %v1021_v55 }
 0x404   :  { %4652 = vmatpush3.bf16.msra.mxu1 %v5408_v5 }
 0x405   :  { %4654 = vmatprep.subr.bf16.mxu1 %v5451_v30 }
 0x406   :  { %v1029_v56 = vpop.permute.xlu0 %1028 }
 0x407   :  { %1035 = vst.msk [vmem:[#allocation5 + $0x70] sm:$0xff] %vm341_vm1, %v1029_v56  ;;  %v1031_v57 = vpop.permute.xlu1 %1030  ;;  %4448 = vmatprep.mubr.msk.f32.mxu1 %vm341_vm1, %v1029_v56 }
 0x408   :  { %1036 = vst.msk [vmem:[#allocation5 + $0x78] sm:$0xff] %vm341_vm1, %v1031_v57  ;;  %4656 = vmatpush3.bf16.msra.mxu1 %v5451_v30 }
 0x409   :  { %4666 = vmatprep.subr.bf16.mxu1 %v5408_v5 }
 0x40b   :  { %4449 = vmatmul.mubr.msk.f32.vlgmr.msra.gmra.mrb[26].mxu1 %vm341_vm1, %v1031_v57 }
 0x40c   :  { %4668 = vmatpush3.bf16.msra.mxu1 %v5408_v5 }
 0x40d   :  { %4670 = vmatprep.subr.bf16.mxu1 %v5451_v30 }
 0x410   :  { %4672 = vmatpush3.bf16.msra.mxu1 %v5451_v30 }
 0x411   :  { %4682 = vmatprep.subr.bf16.mxu1 %v5408_v5 }
 0x4d6   :  { %v4439_v58 = vpop.f32.mrb[24].mxu1 }
 0x4d7   :  { %v1110_v59 = vpop.f32.mrb[25].mxu1  ;;  %v1134_v62 = vadd.f32 %v4439_v58, %v5533_v40  ;;  %v1120_v7 = vadd.f32 %v4439_v58, %v1039_v6 }
 0x4d8   :  { %v1133_v61 = vadd.f32 %v1110_v59, %v5533_v40  ;;  %v1119_v4 = vadd.f32 %v1110_v59, %v1038_v3 }
 0x4d9   :  { %v4089_v10 = vmul.f32 -1.442695, %v1120_v7 }
 0x4da   :  { %1137 = vrot.lane.b32.xlu0 %v1133_v61, %s5173_s23  ;;  %v4088_v8 = vmul.f32 -1.442695, %v1119_v4 }
 0x4dc   :  { %4840 = vpow2.f32 %v4088_v8 }
 0x4dd   :  { %4842 = vpow2.f32 %v4089_v10 }
 0x4de   :  { %v4450_v63 = vpop.f32.mrb[26].mxu1  ;;  %1139 = vrot.lane.b32.xlu0 %v1134_v62, %s5173_s23 }
 0x4df   :  { %v1246_v0 = vpop.f32.mrb[27].mxu1  ;;  %v1270_v2 = vadd.f32 %v4450_v63, %v5540_v44  ;;  %v1256_v13 = vadd.f32 %v4450_v63, %v1175_v12 }
 0x4e0   :  { %v1269_v1 = vadd.f32 %v1246_v0, %v5540_v44  ;;  %v1255_v11 = vadd.f32 %v1246_v0, %v1174_v9 }
 0x4e1   :  { %v4093_v15 = vmul.f32 -1.442695, %v1256_v13 }
 0x4e2   :  { %1273 = vrot.lane.b32.xlu1 %v1269_v1, %s5173_s23  ;;  %v4092_v14 = vmul.f32 -1.442695, %v1255_v11 }
 0x4e4   :  { %4844 = vpow2.f32 %v4092_v14 }
 0x4e5   :  { %4846 = vpow2.f32 %v4093_v15 }
 0x4e6   :  { %1275 = vrot.lane.b32.xlu1 %v1270_v2, %s5173_s23  ;;  %v4841_v16 = vpop.eup %4840 }
 0x4e7   :  { %v1127_v17 = vadd.f32 1.0, %v4841_v16  ;;  %v4843_v18 = vpop.eup %4842 }
 0x4e8   :  { %v1128_v19 = vadd.f32 1.0, %v4843_v18 }
 0x4e9   :  { %4848 = vrcp.f32 %v1127_v17 }
 0x4ea   :  { %4850 = vrcp.f32 %v1128_v19 }
 0x4ee   :  { %v4845_v20 = vpop.eup %4844 }
 0x4ef   :  { %v1263_v21 = vadd.f32 1.0, %v4845_v20  ;;  %v4847_v22 = vpop.eup %4846 }
 0x4f0   :  { %v1264_v23 = vadd.f32 1.0, %v4847_v22  ;;  %v1332_v22 = vld [vmem:[#allocation2 + $0x20] sm:$0xff] }
 0x4f1   :  { %4852 = vrcp.f32 %v1263_v21 }
 0x4f2   :  { %4854 = vrcp.f32 %v1264_v23 }
 0x4f3   :  { %v4849_v24 = vpop.eup %4848 }
 0x4f4   :  { %v4851_v27 = vpop.eup %4850  ;;  %v1157_v56 = vsub.f32 1.0, %v4849_v24  ;;  %v1169_v58 = vmul.f32 %v4849_v24, %v5555_v38 }
 0x4f5   :  { %v1158_v62 = vsub.f32 1.0, %v4851_v27  ;;  %v1170_v0 = vmul.f32 %v4851_v27, %v5559_v31 }
 0x4fb   :  { %v4853_v34 = vpop.eup %4852 }
 0x4fc   :  { %v4855_v37 = vpop.eup %4854 }
 0x4fd   :  { %v1294_v8 = vsub.f32 1.0, %v4855_v37  ;;  %v1306_v31 = vmul.f32 %v4855_v37, %v5565_v53 }
 0x54c   :  { %v1138_v25 = vpop.permute.xlu0 %1137 }
 0x54d   :  { %v1143_v26 = vmul.f32 %v4849_v24, %v1138_v25  ;;  %v1333_v24 = vld [vmem:[#allocation2 + $0x28] sm:$0xff] }
 0x54f   :  { %1147 = vrot.lane.b32.xlu0 %v1143_v26, %s5173_s23 }
 0x550   :  { %v1140_v28 = vpop.permute.xlu0 %1139 }
 0x551   :  { %v1144_v29 = vmul.f32 %v4851_v27, %v1140_v28  ;;  %v1468_v27 = vld [vmem:[#allocation3 + $0x50] sm:$0xff] }
 0x553   :  { %1149 = vrot.lane.b32.xlu0 %v1144_v29, %s5173_s23 }
 0x554   :  { %v1274_v35 = vpop.permute.xlu1 %1273 }
 0x555   :  { %v1279_v36 = vmul.f32 %v4853_v34, %v1274_v35 }
 0x557   :  { %1283 = vrot.lane.b32.xlu1 %v1279_v36, %s5173_s23 }
 0x558   :  { %v1276_v39 = vpop.permute.xlu1 %1275 }
 0x559   :  { %v1280_v41 = vmul.f32 %v4855_v37, %v1276_v39 }
 0x55b   :  { %1285 = vrot.lane.b32.xlu1 %v1280_v41, %s5173_s23 }
 0x5c1   :  { %v1148_v42 = vpop.permute.xlu0 %1147 }
 0x5c2   :  { %v1153_v43 = vadd.f32 %v1148_v42, %v1038_v3  ;;  %v1293_v3 = vsub.f32 1.0, %v4853_v34 }
 0x5c4   :  { %4856 = vtanh.f32 %v1153_v43 }
 0x5c5   :  { %v1150_v32 = vpop.permute.xlu0 %1149 }
 0x5c6   :  { %v1154_v45 = vadd.f32 %v1150_v32, %v1039_v6  ;;  %v1305_v6 = vmul.f32 %v4853_v34, %v5563_v52  ;;  %v1469_v34 = vld [vmem:[#allocation3 + $0x58] sm:$0xff] }
 0x5c8   :  { %4858 = vtanh.f32 %v1154_v45 }
 0x5c9   :  { %v1284_v46 = vpop.permute.xlu1 %1283 }
 0x5ca   :  { %v1289_v47 = vadd.f32 %v1284_v46, %v1174_v9 }
 0x5cc   :  { %4860 = vtanh.f32 %v1289_v47 }
 0x5cd   :  { %v1286_v48 = vpop.permute.xlu1 %1285 }
 0x5ce   :  { %v4857_v49 = vpop.eup %4856  ;;  %v1290_v50 = vadd.f32 %v1286_v48, %v1175_v12 }
 0x5cf   :  { %1161 = vrot.lane.b32.xlu0 %v4857_v49, %s5175_s5 }
 0x5d0   :  { %4862 = vtanh.f32 %v1290_v50 }
 0x5d2   :  { %v4859_v51 = vpop.eup %4858 }
 0x5d3   :  { %1163 = vrot.lane.b32.xlu0 %v4859_v51, %s5175_s5 }
 0x5d6   :  { %v4861_v54 = vpop.eup %4860 }
 0x5d7   :  { %1297 = vrot.lane.b32.xlu1 %v4861_v54, %s5175_s5 }
 0x5da   :  { %v4863_v55 = vpop.eup %4862 }
 0x5db   :  { %1299 = vrot.lane.b32.xlu1 %v4863_v55, %s5175_s5 }
 0x641   :  { %v1162_v57 = vpop.permute.xlu0 %1161 }
 0x642   :  { %v1167_v59 = vmul.f32 %v1162_v57, %v1157_v56 }
 0x644   :  { %v5604_v61 = vadd.f32 %v1169_v58, %v1167_v59 }
 0x645   :  { %v1164_v63 = vpop.permute.xlu0 %1163 }
 0x646   :  { %v1168_v1 = vmul.f32 %v1164_v63, %v1158_v62  ;;  %1311 = vrot.lane.b32.xlu0 %v5604_v61, %s5175_s5 }
 0x648   :  { %v5609_v2 = vadd.f32 %v1170_v0, %v1168_v1 }
 0x649   :  { %v1298_v4 = vpop.permute.xlu1 %1297 }
 0x64a   :  { %v1303_v7 = vmul.f32 %v1298_v4, %v1293_v3  ;;  %1313 = vrot.lane.b32.xlu0 %v5609_v2, %s5175_s5 }
 0x64c   :  { %v5614_v38 = vadd.f32 %v1305_v6, %v1303_v7 }
 0x64d   :  { %v1300_v9 = vpop.permute.xlu1 %1299 }
 0x64e   :  { %v1304_v10 = vmul.f32 %v1300_v9, %v1294_v8  ;;  %1322 = vrot.lane.b32.xlu1 %v5614_v38, %s5175_s5 }
 0x650   :  { %v5619_v11 = vadd.f32 %v1306_v31, %v1304_v10 }
 0x652   :  { %1324 = vrot.lane.b32.xlu1 %v5619_v11, %s5175_s5 }
 0x6b8   :  { %v1312_v52 = vpop.permute.xlu0 %1311 }
 0x6b9   :  { %1318 = vst.msk [vmem:[#allocation4 + $0x10] sm:$0xff] %vm341_vm1, %v1312_v52  ;;  %4459 = vmatprep.mubr.msk.f32.mxu0 %vm341_vm1, %v1312_v52 }
 0x6bc   :  { %v1314_v12 = vpop.permute.xlu0 %1313 }
 0x6bd   :  { %1319 = vst.msk [vmem:[#allocation4 + $0x18] sm:$0xff] %vm341_vm1, %v1314_v12  ;;  %4460 = vmatmul.mubr.msk.f32.vlgmr.msra.gmra.mrb[28].mxu0 %vm341_vm1, %v1314_v12 }
 0x6be   :  { %4676 = vmatpush3.bf16.msra.mxu0 %v5362_v33 }
 0x6bf   :  { %4678 = vmatprep.subr.bf16.mxu0 %v5397_v60 }
 0x6c0   :  { %v1323_v53 = vpop.permute.xlu1 %1322 }
 0x6c1   :  { %1329 = vst.msk [vmem:[#allocation5 + $0x60] sm:$0xff] %vm341_vm1, %v1323_v53  ;;  %4470 = vmatprep.mubr.msk.f32.mxu1 %vm341_vm1, %v1323_v53 }
 0x6c2   :  { %4680 = vmatpush3.bf16.msra.mxu0 %v5397_v60 }
 0x6c3   :  { %4690 = vmatprep.subr.bf16.mxu0 %v5362_v33 }
 0x6c4   :  { %v1325_v13 = vpop.permute.xlu1 %1324 }
 0x6c5   :  { %1330 = vst.msk [vmem:[#allocation5 + $0x68] sm:$0xff] %vm341_vm1, %v1325_v13  ;;  %4471 = vmatmul.mubr.msk.f32.vlgmr.msra.gmra.mrb[28].mxu1 %vm341_vm1, %v1325_v13 }
 0x6c6   :  { %4684 = vmatpush3.bf16.msra.mxu1 %v5408_v5 }
 0x6c7   :  { %4686 = vmatprep.subr.bf16.mxu1 %v5451_v30 }
 0x6ca   :  { %4688 = vmatpush3.bf16.msra.mxu1 %v5451_v30 }
 0x6cb   :  { %4698 = vmatprep.subr.bf16.mxu1 %v5408_v5 }
 0x790   :  { %v4461_v14 = vpop.f32.mrb[28].mxu0 }
 0x791   :  { %v1404_v15 = vpop.f32.mrb[29].mxu0  ;;  %v1428_v17 = vadd.f32 %v4461_v14, %v5533_v40  ;;  %v1414_v25 = vadd.f32 %v4461_v14, %v1333_v24 }
 0x792   :  { %v1427_v16 = vadd.f32 %v1404_v15, %v5533_v40  ;;  %v1413_v23 = vadd.f32 %v1404_v15, %v1332_v22 }
 0x793   :  { %v4097_v28 = vmul.f32 -1.442695, %v1414_v25 }
 0x794   :  { %1431 = vrot.lane.b32.xlu0 %v1427_v16, %s5173_s23  ;;  %v4096_v26 = vmul.f32 -1.442695, %v1413_v23 }
 0x796   :  { %4864 = vpow2.f32 %v4096_v26 }
 0x797   :  { %4866 = vpow2.f32 %v4097_v28 }
 0x798   :  { %v4472_v18 = vpop.f32.mrb[28].mxu1  ;;  %1433 = vrot.lane.b32.xlu0 %v1428_v17, %s5173_s23 }
 0x799   :  { %v1540_v19 = vpop.f32.mrb[29].mxu1  ;;  %v1564_v21 = vadd.f32 %v4472_v18, %v5540_v44  ;;  %v1550_v35 = vadd.f32 %v4472_v18, %v1469_v34 }
 0x79a   :  { %v1563_v20 = vadd.f32 %v1540_v19, %v5540_v44  ;;  %v1549_v29 = vadd.f32 %v1540_v19, %v1468_v27 }
 0x79b   :  { %v4101_v37 = vmul.f32 -1.442695, %v1550_v35 }
 0x79c   :  { %1567 = vrot.lane.b32.xlu1 %v1563_v20, %s5173_s23  ;;  %v4100_v36 = vmul.f32 -1.442695, %v1549_v29 }
 0x79e   :  { %4868 = vpow2.f32 %v4100_v36 }
 0x79f   :  { %4870 = vpow2.f32 %v4101_v37 }
 0x7a0   :  { %1569 = vrot.lane.b32.xlu1 %v1564_v21, %s5173_s23  ;;  %v4865_v39 = vpop.eup %4864 }
 0x7a1   :  { %v1421_v41 = vadd.f32 1.0, %v4865_v39  ;;  %v4867_v42 = vpop.eup %4866 }
 0x7a2   :  { %v1422_v43 = vadd.f32 1.0, %v4867_v42 }
 0x7a3   :  { %4872 = vrcp.f32 %v1421_v41 }
 0x7a4   :  { %4874 = vrcp.f32 %v1422_v43 }
 0x7a8   :  { %v4869_v32 = vpop.eup %4868 }
 0x7a9   :  { %v1557_v45 = vadd.f32 1.0, %v4869_v32  ;;  %v4871_v46 = vpop.eup %4870 }
 0x7aa   :  { %v1558_v47 = vadd.f32 1.0, %v4871_v46  ;;  %v1626_v46 = vld [vmem:[#allocation2 + $0x30] sm:$0xff] }
 0x7ab   :  { %4876 = vrcp.f32 %v1557_v45 }
 0x7ac   :  { %4878 = vrcp.f32 %v1558_v47 }
 0x7ad   :  { %v4873_v48 = vpop.eup %4872 }
 0x7ae   :  { %v4875_v51 = vpop.eup %4874  ;;  %v1451_v53 = vsub.f32 1.0, %v4873_v48  ;;  %v1463_v14 = vmul.f32 %v4873_v48, %v5604_v61 }
 0x7af   :  { %v1452_v17 = vsub.f32 1.0, %v4875_v51  ;;  %v1464_v19 = vmul.f32 %v4875_v51, %v5609_v2 }
 0x7b5   :  { %v4877_v56 = vpop.eup %4876 }
 0x7b6   :  { %v4879_v59 = vpop.eup %4878 }
 0x7b7   :  { %v1588_v26 = vsub.f32 1.0, %v4879_v59  ;;  %v1600_v2 = vmul.f32 %v4879_v59, %v5619_v11 }
 0x806   :  { %v1432_v49 = vpop.permute.xlu0 %1431 }
 0x807   :  { %v1437_v50 = vmul.f32 %v4873_v48, %v1432_v49  ;;  %v1627_v48 = vld [vmem:[#allocation2 + $0x38] sm:$0xff] }
 0x809   :  { %1441 = vrot.lane.b32.xlu0 %v1437_v50, %s5173_s23 }
 0x80a   :  { %v1434_v54 = vpop.permute.xlu0 %1433 }
 0x80b   :  { %v1438_v55 = vmul.f32 %v4875_v51, %v1434_v54  ;;  %v1762_v51 = vld [vmem:[#allocation3 + $0x40] sm:$0xff] }
 0x80d   :  { %1443 = vrot.lane.b32.xlu0 %v1438_v55, %s5173_s23 }
 0x80e   :  { %v1568_v57 = vpop.permute.xlu1 %1567 }
 0x80f   :  { %v1573_v58 = vmul.f32 %v4877_v56, %v1568_v57 }
 0x811   :  { %1577 = vrot.lane.b32.xlu1 %v1573_v58, %s5173_s23 }
 0x812   :  { %v1570_v62 = vpop.permute.xlu1 %1569 }
 0x813   :  { %v1574_v63 = vmul.f32 %v4879_v59, %v1570_v62 }
 0x815   :  { %1579 = vrot.lane.b32.xlu1 %v1574_v63, %s5173_s23 }
 0x87b   :  { %v1442_v0 = vpop.permute.xlu0 %1441 }
 0x87c   :  { %v1447_v1 = vadd.f32 %v1442_v0, %v1332_v22  ;;  %v1587_v22 = vsub.f32 1.0, %v4877_v56 }
 0x87e   :  { %4880 = vtanh.f32 %v1447_v1 }
 0x87f   :  { %v1444_v3 = vpop.permute.xlu0 %1443 }
 0x880   :  { %v1448_v4 = vadd.f32 %v1444_v3, %v1333_v24  ;;  %v1599_v24 = vmul.f32 %v4877_v56, %v5614_v38  ;;  %v1763_v56 = vld [vmem:[#allocation3 + $0x48] sm:$0xff] }
 0x882   :  { %4882 = vtanh.f32 %v1448_v4 }
 0x883   :  { %v1578_v6 = vpop.permute.xlu1 %1577 }
 0x884   :  { %v1583_v7 = vadd.f32 %v1578_v6, %v1468_v27 }
 0x886   :  { %4884 = vtanh.f32 %v1583_v7 }
 0x887   :  { %v1580_v8 = vpop.permute.xlu1 %1579 }
 0x888   :  { %v4881_v9 = vpop.eup %4880  ;;  %v1584_v31 = vadd.f32 %v1580_v8, %v1469_v34 }
 0x889   :  { %1455 = vrot.lane.b32.xlu0 %v4881_v9, %s5175_s5 }
 0x88a   :  { %4886 = vtanh.f32 %v1584_v31 }
 0x88c   :  { %v4883_v10 = vpop.eup %4882 }
 0x88d   :  { %1457 = vrot.lane.b32.xlu0 %v4883_v10, %s5175_s5 }
 0x890   :  { %v4885_v52 = vpop.eup %4884 }
 0x891   :  { %1591 = vrot.lane.b32.xlu1 %v4885_v52, %s5175_s5 }
 0x894   :  { %v4887_v12 = vpop.eup %4886 }
 0x895   :  { %1593 = vrot.lane.b32.xlu1 %v4887_v12, %s5175_s5 }
 0x8fb   :  { %v1456_v13 = vpop.permute.xlu0 %1455 }
 0x8fc   :  { %v1461_v15 = vmul.f32 %v1456_v13, %v1451_v53 }
 0x8fe   :  { %v5656_v16 = vadd.f32 %v1463_v14, %v1461_v15 }
 0x8ff   :  { %v1458_v18 = vpop.permute.xlu0 %1457 }
 0x900   :  { %v1462_v20 = vmul.f32 %v1458_v18, %v1452_v17  ;;  %1605 = vrot.lane.b32.xlu0 %v5656_v16, %s5175_s5 }
 0x902   :  { %v5661_v21 = vadd.f32 %v1464_v19, %v1462_v20 }
 0x903   :  { %v1592_v23 = vpop.permute.xlu1 %1591 }
 0x904   :  { %v1597_v25 = vmul.f32 %v1592_v23, %v1587_v22  ;;  %1607 = vrot.lane.b32.xlu0 %v5661_v21, %s5175_s5 }
 0x906   :  { %v5666_v61 = vadd.f32 %v1599_v24, %v1597_v25 }
 0x907   :  { %v1594_v27 = vpop.permute.xlu1 %1593 }
 0x908   :  { %v1598_v28 = vmul.f32 %v1594_v27, %v1588_v26  ;;  %1616 = vrot.lane.b32.xlu1 %v5666_v61, %s5175_s5 }
 0x90a   :  { %v5671_v29 = vadd.f32 %v1600_v2, %v1598_v28 }
 0x90c   :  { %1618 = vrot.lane.b32.xlu1 %v5671_v29, %s5175_s5 }
 0x972   :  { %v1606_v38 = vpop.permute.xlu0 %1605 }
 0x973   :  { %1612 = vst.msk [vmem:[#allocation4 + $0x20] sm:$0xff] %vm341_vm1, %v1606_v38  ;;  %4481 = vmatprep.mubr.msk.f32.mxu0 %vm341_vm1, %v1606_v38 }
 0x976   :  { %v1608_v34 = vpop.permute.xlu0 %1607 }
 0x977   :  { %1613 = vst.msk [vmem:[#allocation4 + $0x28] sm:$0xff] %vm341_vm1, %v1608_v34  ;;  %4482 = vmatmul.mubr.msk.f32.vlgmr.msra.gmra.mrb[30].mxu0 %vm341_vm1, %v1608_v34 }
 0x978   :  { %4692 = vmatpush3.bf16.msra.mxu0 %v5362_v33 }
 0x979   :  { %4694 = vmatprep.subr.bf16.mxu0 %v5397_v60 }
 0x97a   :  { %v1617_v11 = vpop.permute.xlu1 %1616 }
 0x97b   :  { %1623 = vst.msk [vmem:[#allocation5 + $0x50] sm:$0xff] %vm341_vm1, %v1617_v11  ;;  %4492 = vmatprep.mubr.msk.f32.mxu1 %vm341_vm1, %v1617_v11 }
 0x97c   :  { %4696 = vmatpush3.bf16.msra.mxu0 %v5397_v60 }
 0x97d   :  { %4706 = vmatprep.subr.bf16.mxu0 %v5362_v33 }
 0x97e   :  { %v1619_v35 = vpop.permute.xlu1 %1618 }
 0x97f   :  { %1624 = vst.msk [vmem:[#allocation5 + $0x58] sm:$0xff] %vm341_vm1, %v1619_v35  ;;  %4493 = vmatmul.mubr.msk.f32.vlgmr.msra.gmra.mrb[30].mxu1 %vm341_vm1, %v1619_v35 }
 0x980   :  { %4700 = vmatpush3.bf16.msra.mxu1 %v5408_v5 }
 0x981   :  { %4702 = vmatprep.subr.bf16.mxu1 %v5451_v30 }
 0x984   :  { %4704 = vmatpush3.bf16.msra.mxu1 %v5451_v30 }
 0x985   :  { %4714 = vmatprep.subr.bf16.mxu1 %v5408_v5 }
 0xa4a   :  { %v4483_v36 = vpop.f32.mrb[30].mxu0 }
 0xa4b   :  { %v1698_v37 = vpop.f32.mrb[31].mxu0  ;;  %v1722_v41 = vadd.f32 %v4483_v36, %v5533_v40  ;;  %v1708_v49 = vadd.f32 %v4483_v36, %v1627_v48 }
 0xa4c   :  { %v1721_v39 = vadd.f32 %v1698_v37, %v5533_v40  ;;  %v1707_v47 = vadd.f32 %v1698_v37, %v1626_v46 }
 0xa4d   :  { %v4105_v54 = vmul.f32 -1.442695, %v1708_v49 }
 0xa4e   :  { %1725 = vrot.lane.b32.xlu0 %v1721_v39, %s5173_s23  ;;  %v4104_v50 = vmul.f32 -1.442695, %v1707_v47 }
 0xa50   :  { %4888 = vpow2.f32 %v4104_v50 }
 0xa51   :  { %4890 = vpow2.f32 %v4105_v54 }
 0xa52   :  { %v4494_v42 = vpop.f32.mrb[30].mxu1  ;;  %1727 = vrot.lane.b32.xlu0 %v1722_v41, %s5173_s23 }
 0xa53   :  { %v1834_v43 = vpop.f32.mrb[31].mxu1  ;;  %v1858_v45 = vadd.f32 %v4494_v42, %v5540_v44  ;;  %v1844_v57 = vadd.f32 %v4494_v42, %v1763_v56 }
 0xa54   :  { %v1857_v32 = vadd.f32 %v1834_v43, %v5540_v44  ;;  %v1843_v55 = vadd.f32 %v1834_v43, %v1762_v51 }
 0xa55   :  { %v4109_v59 = vmul.f32 -1.442695, %v1844_v57 }
 0xa56   :  { %1861 = vrot.lane.b32.xlu1 %v1857_v32, %s5173_s23  ;;  %v4108_v58 = vmul.f32 -1.442695, %v1843_v55 }
 0xa58   :  { %4892 = vpow2.f32 %v4108_v58 }
 0xa59   :  { %4894 = vpow2.f32 %v4109_v59 }
 0xa5a   :  { %1863 = vrot.lane.b32.xlu1 %v1858_v45, %s5173_s23  ;;  %v4889_v62 = vpop.eup %4888 }
 0xa5b   :  { %v1715_v63 = vadd.f32 1.0, %v4889_v62  ;;  %v4891_v0 = vpop.eup %4890 }
 0xa5c   :  { %v1716_v1 = vadd.f32 1.0, %v4891_v0 }
 0xa5d   :  { %4896 = vrcp.f32 %v1715_v63 }
 0xa5e   :  { %4898 = vrcp.f32 %v1716_v1 }
 0xa62   :  { %v4893_v3 = vpop.eup %4892 }
 0xa63   :  { %v1851_v4 = vadd.f32 1.0, %v4893_v3  ;;  %v4895_v6 = vpop.eup %4894 }
 0xa64   :  { %v1852_v7 = vadd.f32 1.0, %v4895_v6  ;;  %v1920_v6 = vld [vmem:[#allocation2 + $0x40] sm:$0xff] }
 0xa65   :  { %4900 = vrcp.f32 %v1851_v4 }
 0xa66   :  { %4902 = vrcp.f32 %v1852_v7 }
 0xa67   :  { %v4897_v8 = vpop.eup %4896 }
 0xa68   :  { %v4899_v10 = vpop.eup %4898  ;;  %v1745_v11 = vsub.f32 1.0, %v4897_v8  ;;  %v1757_v36 = vmul.f32 %v4897_v8, %v5656_v16 }
 0xa69   :  { %v1746_v41 = vsub.f32 1.0, %v4899_v10  ;;  %v1758_v43 = vmul.f32 %v4899_v10, %v5661_v21 }
 0xa6f   :  { %v4901_v53 = vpop.eup %4900 }
 0xa70   :  { %v4903_v15 = vpop.eup %4902 }
 0xa71   :  { %v1882_v50 = vsub.f32 1.0, %v4903_v15  ;;  %v1894_v21 = vmul.f32 %v4903_v15, %v5671_v29 }
 0xac0   :  { %v1726_v9 = vpop.permute.xlu0 %1725 }
 0xac1   :  { %v1731_v31 = vmul.f32 %v4897_v8, %v1726_v9  ;;  %v1921_v8 = vld [vmem:[#allocation2 + $0x48] sm:$0xff] }
 0xac3   :  { %1735 = vrot.lane.b32.xlu0 %v1731_v31, %s5173_s23 }
 0xac4   :  { %v1728_v52 = vpop.permute.xlu0 %1727 }
 0xac5   :  { %v1732_v12 = vmul.f32 %v4899_v10, %v1728_v52  ;;  %v2056_v10 = vld [vmem:[#allocation3 + $0x30] sm:$0xff] }
 0xac7   :  { %1737 = vrot.lane.b32.xlu0 %v1732_v12, %s5173_s23 }
 0xac8   :  { %v1862_v13 = vpop.permute.xlu1 %1861 }
 0xac9   :  { %v1867_v14 = vmul.f32 %v4901_v53, %v1862_v13 }
 0xacb   :  { %1871 = vrot.lane.b32.xlu1 %v1867_v14, %s5173_s23 }
 0xacc   :  { %v1864_v17 = vpop.permute.xlu1 %1863 }
 0xacd   :  { %v1868_v18 = vmul.f32 %v4903_v15, %v1864_v17 }
 0xacf   :  { %1873 = vrot.lane.b32.xlu1 %v1868_v18, %s5173_s23 }
 0xb35   :  { %v1736_v19 = vpop.permute.xlu0 %1735 }
 0xb36   :  { %v1741_v20 = vadd.f32 %v1736_v19, %v1626_v46  ;;  %v1881_v46 = vsub.f32 1.0, %v4901_v53 }
 0xb38   :  { %4904 = vtanh.f32 %v1741_v20 }
 0xb39   :  { %v1738_v22 = vpop.permute.xlu0 %1737 }
 0xb3a   :  { %v1742_v23 = vadd.f32 %v1738_v22, %v1627_v48  ;;  %v1893_v48 = vmul.f32 %v4901_v53, %v5666_v61  ;;  %v2057_v53 = vld [vmem:[#allocation3 + $0x38] sm:$0xff] }
 0xb3c   :  { %4906 = vtanh.f32 %v1742_v23 }
 0xb3d   :  { %v1872_v24 = vpop.permute.xlu1 %1871 }
 0xb3e   :  { %v1877_v25 = vadd.f32 %v1872_v24, %v1762_v51 }
 0xb40   :  { %4908 = vtanh.f32 %v1877_v25 }
 0xb41   :  { %v1874_v26 = vpop.permute.xlu1 %1873 }
 0xb42   :  { %v4905_v27 = vpop.eup %4904  ;;  %v1878_v2 = vadd.f32 %v1874_v26, %v1763_v56 }
 0xb43   :  { %1749 = vrot.lane.b32.xlu0 %v4905_v27, %s5175_s5 }
 0xb44   :  { %4910 = vtanh.f32 %v1878_v2 }
 0xb46   :  { %v4907_v28 = vpop.eup %4906 }
 0xb47   :  { %1751 = vrot.lane.b32.xlu0 %v4907_v28, %s5175_s5 }
 0xb4a   :  { %v4909_v38 = vpop.eup %4908 }
 0xb4b   :  { %1885 = vrot.lane.b32.xlu1 %v4909_v38, %s5175_s5 }
 0xb4e   :  { %v4911_v34 = vpop.eup %4910 }
 0xb4f   :  { %1887 = vrot.lane.b32.xlu1 %v4911_v34, %s5175_s5 }
 0xbb5   :  { %v1750_v35 = vpop.permute.xlu0 %1749 }
 0xbb6   :  { %v1755_v37 = vmul.f32 %v1750_v35, %v1745_v11 }
 0xbb8   :  { %v5708_v39 = vadd.f32 %v1757_v36, %v1755_v37 }
 0xbb9   :  { %v1752_v42 = vpop.permute.xlu0 %1751 }
 0xbba   :  { %v1756_v32 = vmul.f32 %v1752_v42, %v1746_v41  ;;  %1899 = vrot.lane.b32.xlu0 %v5708_v39, %s5175_s5 }
 0xbbc   :  { %v5713_v45 = vadd.f32 %v1758_v43, %v1756_v32 }
 0xbbd   :  { %v1886_v47 = vpop.permute.xlu1 %1885 }
 0xbbe   :  { %v1891_v49 = vmul.f32 %v1886_v47, %v1881_v46  ;;  %1901 = vrot.lane.b32.xlu0 %v5713_v45, %s5175_s5 }
 0xbc0   :  { %v5718_v16 = vadd.f32 %v1893_v48, %v1891_v49 }
 0xbc1   :  { %v1888_v51 = vpop.permute.xlu1 %1887 }
 0xbc2   :  { %v1892_v54 = vmul.f32 %v1888_v51, %v1882_v50  ;;  %1910 = vrot.lane.b32.xlu1 %v5718_v16, %s5175_s5 }
 0xbc4   :  { %v5723_v55 = vadd.f32 %v1894_v21, %v1892_v54 }
 0xbc6   :  { %1912 = vrot.lane.b32.xlu1 %v5723_v55, %s5175_s5 }
 0xc2c   :  { %v1900_v61 = vpop.permute.xlu0 %1899 }
 0xc2d   :  { %1906 = vst.msk [vmem:[#allocation4 + $0x30] sm:$0xff] %vm341_vm1, %v1900_v61  ;;  %4503 = vmatprep.mubr.msk.f32.mxu0 %vm341_vm1, %v1900_v61 }
 0xc30   :  { %v1902_v56 = vpop.permute.xlu0 %1901 }
 0xc31   :  { %1907 = vst.msk [vmem:[#allocation4 + $0x38] sm:$0xff] %vm341_vm1, %v1902_v56  ;;  %4504 = vmatmul.mubr.msk.f32.vlgmr.msra.gmra.mrb[32].mxu0 %vm341_vm1, %v1902_v56 }
 0xc32   :  { %4708 = vmatpush3.bf16.msra.mxu0 %v5362_v33 }
 0xc33   :  { %4710 = vmatprep.subr.bf16.mxu0 %v5397_v60 }
 0xc34   :  { %v1911_v29 = vpop.permute.xlu1 %1910 }
 0xc35   :  { %1917 = vst.msk [vmem:[#allocation5 + $0x40] sm:$0xff] %vm341_vm1, %v1911_v29  ;;  %4514 = vmatprep.mubr.msk.f32.mxu1 %vm341_vm1, %v1911_v29 }
 0xc36   :  { %4712 = vmatpush3.bf16.msra.mxu0 %v5397_v60 }
 0xc37   :  { %4722 = vmatprep.subr.bf16.mxu0 %v5362_v33 }
 0xc38   :  { %v1913_v57 = vpop.permute.xlu1 %1912 }
 0xc39   :  { %1918 = vst.msk [vmem:[#allocation5 + $0x48] sm:$0xff] %vm341_vm1, %v1913_v57  ;;  %4515 = vmatmul.mubr.msk.f32.vlgmr.msra.gmra.mrb[32].mxu1 %vm341_vm1, %v1913_v57 }
 0xc3a   :  { %4716 = vmatpush3.bf16.msra.mxu1 %v5408_v5 }
 0xc3b   :  { %4718 = vmatprep.subr.bf16.mxu1 %v5451_v30 }
 0xc3e   :  { %4720 = vmatpush3.bf16.msra.mxu1 %v5451_v30 }
 0xc3f   :  { %4730 = vmatprep.subr.bf16.mxu1 %v5408_v5 }
 0xd04   :  { %v4505_v58 = vpop.f32.mrb[32].mxu0 }
 0xd05   :  { %v1992_v59 = vpop.f32.mrb[33].mxu0  ;;  %v2016_v63 = vadd.f32 %v4505_v58, %v5533_v40  ;;  %v2002_v9 = vadd.f32 %v4505_v58, %v1921_v8 }
 0xd06   :  { %v2015_v62 = vadd.f32 %v1992_v59, %v5533_v40  ;;  %v2001_v7 = vadd.f32 %v1992_v59, %v1920_v6 }
 0xd07   :  { %v4113_v52 = vmul.f32 -1.442695, %v2002_v9 }
 0xd08   :  { %2019 = vrot.lane.b32.xlu0 %v2015_v62, %s5173_s23  ;;  %v4112_v31 = vmul.f32 -1.442695, %v2001_v7 }
 0xd0a   :  { %4912 = vpow2.f32 %v4112_v31 }
 0xd0b   :  { %4914 = vpow2.f32 %v4113_v52 }
 0xd0c   :  { %v4516_v0 = vpop.f32.mrb[32].mxu1  ;;  %2021 = vrot.lane.b32.xlu0 %v2016_v63, %s5173_s23 }
 0xd0d   :  { %v2128_v1 = vpop.f32.mrb[33].mxu1  ;;  %v2152_v4 = vadd.f32 %v4516_v0, %v5540_v44  ;;  %v2138_v13 = vadd.f32 %v4516_v0, %v2057_v53 }
 0xd0e   :  { %v2151_v3 = vadd.f32 %v2128_v1, %v5540_v44  ;;  %v2137_v12 = vadd.f32 %v2128_v1, %v2056_v10 }
 0xd0f   :  { %v4117_v15 = vmul.f32 -1.442695, %v2138_v13 }
 0xd10   :  { %2155 = vrot.lane.b32.xlu1 %v2151_v3, %s5173_s23  ;;  %v4116_v14 = vmul.f32 -1.442695, %v2137_v12 }
 0xd12   :  { %4916 = vpow2.f32 %v4116_v14 }
 0xd13   :  { %4918 = vpow2.f32 %v4117_v15 }
 0xd14   :  { %2157 = vrot.lane.b32.xlu1 %v2152_v4, %s5173_s23  ;;  %v4913_v17 = vpop.eup %4912 }
 0xd15   :  { %v2009_v18 = vadd.f32 1.0, %v4913_v17  ;;  %v4915_v19 = vpop.eup %4914 }
 0xd16   :  { %v2010_v20 = vadd.f32 1.0, %v4915_v19 }
 0xd17   :  { %4920 = vrcp.f32 %v2009_v18 }
 0xd18   :  { %4922 = vrcp.f32 %v2010_v20 }
 0xd1c   :  { %v4917_v22 = vpop.eup %4916 }
 0xd1d   :  { %v2145_v23 = vadd.f32 1.0, %v4917_v22  ;;  %v4919_v24 = vpop.eup %4918 }
 0xd1e   :  { %v2146_v25 = vadd.f32 1.0, %v4919_v24  ;;  %v2214_v24 = vld [vmem:[#allocation2 + $0x50] sm:$0xff] }
 0xd1f   :  { %4924 = vrcp.f32 %v2145_v23 }
 0xd20   :  { %4926 = vrcp.f32 %v2146_v25 }
 0xd21   :  { %v4921_v26 = vpop.eup %4920 }
 0xd22   :  { %v4923_v28 = vpop.eup %4922  ;;  %v2039_v29 = vsub.f32 1.0, %v4921_v26  ;;  %v2051_v58 = vmul.f32 %v4921_v26, %v5708_v39 }
 0xd23   :  { %v2040_v63 = vsub.f32 1.0, %v4923_v28  ;;  %v2052_v1 = vmul.f32 %v4923_v28, %v5713_v45 }
 0xd29   :  { %v4925_v11 = vpop.eup %4924 }
 0xd2a   :  { %v4927_v37 = vpop.eup %4926 }
 0xd2b   :  { %v2176_v31 = vsub.f32 1.0, %v4927_v37  ;;  %v2188_v45 = vmul.f32 %v4927_v37, %v5723_v55 }
 0xd7a   :  { %v2020_v27 = vpop.permute.xlu0 %2019 }
 0xd7b   :  { %v2025_v2 = vmul.f32 %v4921_v26, %v2020_v27  ;;  %v2215_v26 = vld [vmem:[#allocation2 + $0x58] sm:$0xff] }
 0xd7d   :  { %2029 = vrot.lane.b32.xlu0 %v2025_v2, %s5173_s23 }
 0xd7e   :  { %v2022_v38 = vpop.permute.xlu0 %2021 }
 0xd7f   :  { %v2026_v34 = vmul.f32 %v4923_v28, %v2022_v38  ;;  %v2350_v28 = vld [vmem:[#allocation3 + $0x20] sm:$0xff] }
 0xd81   :  { %2031 = vrot.lane.b32.xlu0 %v2026_v34, %s5173_s23 }
 0xd82   :  { %v2156_v35 = vpop.permute.xlu1 %2155 }
 0xd83   :  { %v2161_v36 = vmul.f32 %v4925_v11, %v2156_v35 }
 0xd85   :  { %2165 = vrot.lane.b32.xlu1 %v2161_v36, %s5173_s23 }
 0xd86   :  { %v2158_v41 = vpop.permute.xlu1 %2157 }
 0xd87   :  { %v2162_v42 = vmul.f32 %v4927_v37, %v2158_v41 }
 0xd89   :  { %2167 = vrot.lane.b32.xlu1 %v2162_v42, %s5173_s23 }
 0xdef   :  { %v2030_v43 = vpop.permute.xlu0 %2029 }
 0xdf0   :  { %v2035_v32 = vadd.f32 %v2030_v43, %v1920_v6  ;;  %v2175_v6 = vsub.f32 1.0, %v4925_v11 }
 0xdf2   :  { %4928 = vtanh.f32 %v2035_v32 }
 0xdf3   :  { %v2032_v46 = vpop.permute.xlu0 %2031 }
 0xdf4   :  { %v2036_v47 = vadd.f32 %v2032_v46, %v1921_v8  ;;  %v2187_v8 = vmul.f32 %v4925_v11, %v5718_v16  ;;  %v2351_v11 = vld [vmem:[#allocation3 + $0x28] sm:$0xff] }
 0xdf6   :  { %4930 = vtanh.f32 %v2036_v47 }
 0xdf7   :  { %v2166_v48 = vpop.permute.xlu1 %2165 }
 0xdf8   :  { %v2171_v49 = vadd.f32 %v2166_v48, %v2056_v10 }
 0xdfa   :  { %4932 = vtanh.f32 %v2171_v49 }
 0xdfb   :  { %v2168_v50 = vpop.permute.xlu1 %2167 }
 0xdfc   :  { %v4929_v51 = vpop.eup %4928  ;;  %v2172_v21 = vadd.f32 %v2168_v50, %v2057_v53 }
 0xdfd   :  { %2043 = vrot.lane.b32.xlu0 %v4929_v51, %s5175_s5 }
 0xdfe   :  { %4934 = vtanh.f32 %v2172_v21 }
 0xe00   :  { %v4931_v54 = vpop.eup %4930 }
 0xe01   :  { %2045 = vrot.lane.b32.xlu0 %v4931_v54, %s5175_s5 }
 0xe04   :  { %v4933_v61 = vpop.eup %4932 }
 0xe05   :  { %2179 = vrot.lane.b32.xlu1 %v4933_v61, %s5175_s5 }
 0xe08   :  { %v4935_v56 = vpop.eup %4934 }
 0xe09   :  { %2181 = vrot.lane.b32.xlu1 %v4935_v56, %s5175_s5 }
 0xe6f   :  { %v2044_v57 = vpop.permute.xlu0 %2043 }
 0xe70   :  { %v2049_v59 = vmul.f32 %v2044_v57, %v2039_v29 }
 0xe72   :  { %v5760_v62 = vadd.f32 %v2051_v58, %v2049_v59 }
 0xe73   :  { %v2046_v0 = vpop.permute.xlu0 %2045 }
 0xe74   :  { %v2050_v3 = vmul.f32 %v2046_v0, %v2040_v63  ;;  %2193 = vrot.lane.b32.xlu0 %v5760_v62, %s5175_s5 }
 0xe76   :  { %v5765_v4 = vadd.f32 %v2052_v1, %v2050_v3 }
 0xe77   :  { %v2180_v7 = vpop.permute.xlu1 %2179 }
 0xe78   :  { %v2185_v9 = vmul.f32 %v2180_v7, %v2175_v6  ;;  %2195 = vrot.lane.b32.xlu0 %v5765_v4, %s5175_s5 }
 0xe7a   :  { %v5770_v39 = vadd.f32 %v2187_v8, %v2185_v9 }
 0xe7b   :  { %v2182_v10 = vpop.permute.xlu1 %2181 }
 0xe7c   :  { %v2186_v52 = vmul.f32 %v2182_v10, %v2176_v31  ;;  %2204 = vrot.lane.b32.xlu1 %v5770_v39, %s5175_s5 }
 0xe7e   :  { %v5775_v12 = vadd.f32 %v2188_v45, %v2186_v52 }
 0xe80   :  { %2206 = vrot.lane.b32.xlu1 %v5775_v12, %s5175_s5 }
 0xee6   :  { %v2194_v16 = vpop.permute.xlu0 %2193 }
 0xee7   :  { %2200 = vst.msk [vmem:[#allocation4 + $0x40] sm:$0xff] %vm341_vm1, %v2194_v16  ;;  %4525 = vmatprep.mubr.msk.f32.mxu0 %vm341_vm1, %v2194_v16 }
 0xeea   :  { %v2196_v53 = vpop.permute.xlu0 %2195 }
 0xeeb   :  { %2201 = vst.msk [vmem:[#allocation4 + $0x48] sm:$0xff] %vm341_vm1, %v2196_v53  ;;  %4526 = vmatmul.mubr.msk.f32.vlgmr.msra.gmra.mrb[34].mxu0 %vm341_vm1, %v2196_v53 }
 0xeec   :  { %4724 = vmatpush3.bf16.msra.mxu0 %v5362_v33 }
 0xeed   :  { %4726 = vmatprep.subr.bf16.mxu0 %v5397_v60 }
 0xeee   :  { %v2205_v55 = vpop.permute.xlu1 %2204 }
 0xeef   :  { %2211 = vst.msk [vmem:[#allocation5 + $0x30] sm:$0xff] %vm341_vm1, %v2205_v55  ;;  %4536 = vmatprep.mubr.msk.f32.mxu1 %vm341_vm1, %v2205_v55 }
 0xef0   :  { %4728 = vmatpush3.bf16.msra.mxu0 %v5397_v60 }
 0xef1   :  { %4738 = vmatprep.subr.bf16.mxu0 %v5362_v33 }
 0xef2   :  { %v2207_v13 = vpop.permute.xlu1 %2206 }
 0xef3   :  { %2212 = vst.msk [vmem:[#allocation5 + $0x38] sm:$0xff] %vm341_vm1, %v2207_v13  ;;  %4537 = vmatmul.mubr.msk.f32.vlgmr.msra.gmra.mrb[34].mxu1 %vm341_vm1, %v2207_v13 }
 0xef4   :  { %4732 = vmatpush3.bf16.msra.mxu1 %v5408_v5 }
 0xef5   :  { %4734 = vmatprep.subr.bf16.mxu1 %v5451_v30 }
 0xef8   :  { %4736 = vmatpush3.bf16.msra.mxu1 %v5451_v30 }
 0xef9   :  { %4746 = vmatprep.subr.bf16.mxu1 %v5408_v5 }
 0xfbe   :  { %v4527_v14 = vpop.f32.mrb[34].mxu0 }
 0xfbf   :  { %v2286_v15 = vpop.f32.mrb[35].mxu0  ;;  %v2310_v18 = vadd.f32 %v4527_v14, %v5533_v40  ;;  %v2296_v27 = vadd.f32 %v4527_v14, %v2215_v26 }
 0xfc0   :  { %v2309_v17 = vadd.f32 %v2286_v15, %v5533_v40  ;;  %v2295_v25 = vadd.f32 %v2286_v15, %v2214_v24 }
 0xfc1   :  { %v4121_v38 = vmul.f32 -1.442695, %v2296_v27 }
 0xfc2   :  { %2313 = vrot.lane.b32.xlu0 %v2309_v17, %s5173_s23  ;;  %v4120_v2 = vmul.f32 -1.442695, %v2295_v25 }
 0xfc4   :  { %4936 = vpow2.f32 %v4120_v2 }
 0xfc5   :  { %4938 = vpow2.f32 %v4121_v38 }
 0xfc6   :  { %v4538_v19 = vpop.f32.mrb[34].mxu1  ;;  %2315 = vrot.lane.b32.xlu0 %v2310_v18, %s5173_s23 }
 0xfc7   :  { %v2422_v20 = vpop.f32.mrb[35].mxu1  ;;  %v2446_v23 = vadd.f32 %v4538_v19, %v5540_v44  ;;  %v2432_v35 = vadd.f32 %v4538_v19, %v2351_v11 }
 0xfc8   :  { %v2445_v22 = vadd.f32 %v2422_v20, %v5540_v44  ;;  %v2431_v34 = vadd.f32 %v2422_v20, %v2350_v28 }
 0xfc9   :  { %v4125_v37 = vmul.f32 -1.442695, %v2432_v35 }
 0xfca   :  { %2449 = vrot.lane.b32.xlu1 %v2445_v22, %s5173_s23  ;;  %v4124_v36 = vmul.f32 -1.442695, %v2431_v34 }
 0xfcc   :  { %4940 = vpow2.f32 %v4124_v36 }
 0xfcd   :  { %4942 = vpow2.f32 %v4125_v37 }
 0xfce   :  { %2451 = vrot.lane.b32.xlu1 %v2446_v23, %s5173_s23  ;;  %v4937_v41 = vpop.eup %4936 }
 0xfcf   :  { %v2303_v42 = vadd.f32 1.0, %v4937_v41  ;;  %v4939_v43 = vpop.eup %4938 }
 0xfd0   :  { %v2304_v32 = vadd.f32 1.0, %v4939_v43 }
 0xfd1   :  { %4944 = vrcp.f32 %v2303_v42 }
 0xfd2   :  { %4946 = vrcp.f32 %v2304_v32 }
 0xfd6   :  { %v4941_v46 = vpop.eup %4940 }
 0xfd7   :  { %v2439_v47 = vadd.f32 1.0, %v4941_v46  ;;  %v4943_v48 = vpop.eup %4942  ;;  %v2509_v46 = vld [vmem:[#allocation2 + $0x68] sm:$0xff] }
 0xfd8   :  { %v2440_v49 = vadd.f32 1.0, %v4943_v48 }
 0xfd9   :  { %4948 = vrcp.f32 %v2439_v47 }
 0xfda   :  { %4950 = vrcp.f32 %v2440_v49  ;;  %v2644_v49 = vld [vmem:[#allocation3 + $0x10] sm:$0xff] }
 0xfdb   :  { %v4945_v50 = vpop.eup %4944 }
 0xfdc   :  { %v4947_v54 = vpop.eup %4946  ;;  %v2333_v55 = vsub.f32 1.0, %v4945_v50  ;;  %v2345_v14 = vmul.f32 %v4945_v50, %v5760_v62 }
 0xfdd   :  { %v2334_v18 = vsub.f32 1.0, %v4947_v54  ;;  %v2346_v20 = vmul.f32 %v4947_v54, %v5765_v4 }
 0xfe3   :  { %v4949_v29 = vpop.eup %4948 }
 0xfe4   :  { %v4951_v59 = vpop.eup %4950 }
 0xfe5   :  { %v2470_v2 = vsub.f32 1.0, %v4951_v59  ;;  %v2482_v4 = vmul.f32 %v4951_v59, %v5775_v12 }
0x1034   :  { %v2314_v51 = vpop.permute.xlu0 %2313 }
0x1035   :  { %v2319_v21 = vmul.f32 %v4945_v50, %v2314_v51 }
0x1037   :  { %2323 = vrot.lane.b32.xlu0 %v2319_v21, %s5173_s23  ;;  %v2645_v21 = vld [vmem:[#allocation3 + $0x18] sm:$0xff] }
0x1038   :  { %v2316_v61 = vpop.permute.xlu0 %2315 }
0x1039   :  { %v2320_v56 = vmul.f32 %v4947_v54, %v2316_v61 }
0x103b   :  { %2325 = vrot.lane.b32.xlu0 %v2320_v56, %s5173_s23 }
0x103c   :  { %v2450_v57 = vpop.permute.xlu1 %2449 }
0x103d   :  { %v2455_v58 = vmul.f32 %v4949_v29, %v2450_v57 }
0x103f   :  { %2459 = vrot.lane.b32.xlu1 %v2455_v58, %s5173_s23 }
0x1040   :  { %v2452_v63 = vpop.permute.xlu1 %2451 }
0x1041   :  { %v2456_v0 = vmul.f32 %v4951_v59, %v2452_v63 }
0x1043   :  { %2461 = vrot.lane.b32.xlu1 %v2456_v0, %s5173_s23 }
0x10a9   :  { %v2324_v1 = vpop.permute.xlu0 %2323 }
0x10aa   :  { %v2329_v3 = vadd.f32 %v2324_v1, %v2214_v24  ;;  %v2469_v24 = vsub.f32 1.0, %v4949_v29 }
0x10ac   :  { %4952 = vtanh.f32 %v2329_v3 }
0x10ad   :  { %v2326_v6 = vpop.permute.xlu0 %2325 }
0x10ae   :  { %v2330_v7 = vadd.f32 %v2326_v6, %v2215_v26  ;;  %v2481_v26 = vmul.f32 %v4949_v29, %v5770_v39 }
0x10b0   :  { %4954 = vtanh.f32 %v2330_v7 }
0x10b1   :  { %v2460_v8 = vpop.permute.xlu1 %2459 }
0x10b2   :  { %v2465_v9 = vadd.f32 %v2460_v8, %v2350_v28 }
0x10b4   :  { %4956 = vtanh.f32 %v2465_v9 }
0x10b5   :  { %v2462_v31 = vpop.permute.xlu1 %2461 }
0x10b6   :  { %v4953_v10 = vpop.eup %4952  ;;  %v2466_v45 = vadd.f32 %v2462_v31, %v2351_v11 }
0x10b7   :  { %2337 = vrot.lane.b32.xlu0 %v4953_v10, %s5175_s5 }
0x10b8   :  { %4958 = vtanh.f32 %v2466_v45 }
0x10ba   :  { %v4955_v52 = vpop.eup %4954 }
0x10bb   :  { %2339 = vrot.lane.b32.xlu0 %v4955_v52, %s5175_s5 }
0x10be   :  { %v4957_v16 = vpop.eup %4956 }
0x10bf   :  { %2473 = vrot.lane.b32.xlu1 %v4957_v16, %s5175_s5 }
0x10c2   :  { %v4959_v53 = vpop.eup %4958 }
0x10c3   :  { %2475 = vrot.lane.b32.xlu1 %v4959_v53, %s5175_s5 }
0x1129   :  { %v2338_v13 = vpop.permute.xlu0 %2337 }
0x112a   :  { %v2343_v15 = vmul.f32 %v2338_v13, %v2333_v55 }
0x112c   :  { %v5812_v17 = vadd.f32 %v2345_v14, %v2343_v15 }
0x112d   :  { %v2340_v19 = vpop.permute.xlu0 %2339 }
0x112e   :  { %v2344_v22 = vmul.f32 %v2340_v19, %v2334_v18  ;;  %2487 = vrot.lane.b32.xlu0 %v5812_v17, %s5175_s5 }
0x1130   :  { %v5817_v23 = vadd.f32 %v2346_v20, %v2344_v22 }
0x1131   :  { %v2474_v25 = vpop.permute.xlu1 %2473 }
0x1132   :  { %v2479_v27 = vmul.f32 %v2474_v25, %v2469_v24  ;;  %2489 = vrot.lane.b32.xlu0 %v5817_v23, %s5175_s5 }
0x1134   :  { %v5822_v62 = vadd.f32 %v2481_v26, %v2479_v27 }
0x1135   :  { %v2476_v28 = vpop.permute.xlu1 %2475 }
0x1136   :  { %v2480_v38 = vmul.f32 %v2476_v28, %v2470_v2  ;;  %2498 = vrot.lane.b32.xlu1 %v5822_v62, %s5175_s5 }
0x1138   :  { %v5827_v34 = vadd.f32 %v2482_v4, %v2480_v38 }
0x113a   :  { %2500 = vrot.lane.b32.xlu1 %v5827_v34, %s5175_s5 }
0x11a0   :  { %v2488_v39 = vpop.permute.xlu0 %2487 }
0x11a1   :  { %2494 = vst.msk [vmem:[#allocation4 + $0x50] sm:$0xff] %vm341_vm1, %v2488_v39  ;;  %4547 = vmatprep.mubr.msk.f32.mxu0 %vm341_vm1, %v2488_v39 }
0x11a4   :  { %v2490_v11 = vpop.permute.xlu0 %2489 }
0x11a5   :  { %2495 = vst.msk [vmem:[#allocation4 + $0x58] sm:$0xff] %vm341_vm1, %v2490_v11  ;;  %4548 = vmatmul.mubr.msk.f32.vlgmr.msra.gmra.mrb[36].mxu0 %vm341_vm1, %v2490_v11 }
0x11a6   :  { %4740 = vmatpush3.bf16.msra.mxu0 %v5362_v33 }
0x11a7   :  { %4742 = vmatprep.subr.bf16.mxu0 %v5397_v60 }
0x11a8   :  { %v2499_v12 = vpop.permute.xlu1 %2498 }
0x11a9   :  { %2505 = vst.msk [vmem:[#allocation5 + $0x20] sm:$0xff] %vm341_vm1, %v2499_v12  ;;  %4558 = vmatprep.mubr.msk.f32.mxu1 %vm341_vm1, %v2499_v12 }
0x11aa   :  { %4744 = vmatpush3.bf16.msra.mxu0 %v5397_v60 }
0x11ac   :  { %v2501_v35 = vpop.permute.xlu1 %2500 }
0x11ad   :  { %2506 = vst.msk [vmem:[#allocation5 + $0x28] sm:$0xff] %vm341_vm1, %v2501_v35  ;;  %4559 = vmatmul.mubr.msk.f32.vlgmr.msra.gmra.mrb[36].mxu1 %vm341_vm1, %v2501_v35 }
0x11ae   :  { %4748 = vmatpush3.bf16.msra.mxu1 %v5408_v5 }
0x11af   :  { %4750 = vmatprep.subr.bf16.mxu1 %v5451_v30 }
0x11b2   :  { %4752 = vmatpush3.bf16.msra.mxu1 %v5451_v30  ;;  %v2508_v30 = vld [vmem:[#allocation2 + $0x60] sm:$0xff] }
0x1278   :  { %v4549_v33 = vpop.f32.mrb[36].mxu0 }
0x1279   :  { %v2580_v36 = vpop.f32.mrb[37].mxu0  ;;  %v2604_v41 = vadd.f32 %v4549_v33, %v5533_v40  ;;  %v2590_v47 = vadd.f32 %v4549_v33, %v2509_v46 }
0x127a   :  { %v2603_v37 = vadd.f32 %v2580_v36, %v5533_v40  ;;  %v2589_v32 = vadd.f32 %v2580_v36, %v2508_v30 }
0x127b   :  { %v4129_v50 = vmul.f32 -1.442695, %v2590_v47 }
0x127c   :  { %2607 = vrot.lane.b32.xlu0 %v2603_v37, %s5173_s23  ;;  %v4128_v48 = vmul.f32 -1.442695, %v2589_v32 }
0x127e   :  { %4960 = vpow2.f32 %v4128_v48 }
0x127f   :  { %4962 = vpow2.f32 %v4129_v50 }
0x1280   :  { %v4560_v60 = vpop.f32.mrb[36].mxu1  ;;  %2609 = vrot.lane.b32.xlu0 %v2604_v41, %s5173_s23 }
0x1281   :  { %v2716_v42 = vpop.f32.mrb[37].mxu1  ;;  %v2740_v5 = vadd.f32 %v4560_v60, %v5540_v44  ;;  %v2726_v54 = vadd.f32 %v4560_v60, %v2645_v21 }
0x1282   :  { %v2739_v43 = vadd.f32 %v2716_v42, %v5540_v44  ;;  %v2725_v51 = vadd.f32 %v2716_v42, %v2644_v49 }
0x1283   :  { %v4133_v56 = vmul.f32 -1.442695, %v2726_v54 }
0x1284   :  { %2743 = vrot.lane.b32.xlu1 %v2739_v43, %s5173_s23  ;;  %v4132_v61 = vmul.f32 -1.442695, %v2725_v51 }
0x1286   :  { %4964 = vpow2.f32 %v4132_v61 }
0x1287   :  { %4966 = vpow2.f32 %v4133_v56 }
0x1288   :  { %2745 = vrot.lane.b32.xlu1 %v2740_v5, %s5173_s23  ;;  %v4961_v29 = vpop.eup %4960 }
0x1289   :  { %v2597_v57 = vadd.f32 1.0, %v4961_v29  ;;  %v4963_v58 = vpop.eup %4962 }
0x128a   :  { %v2598_v59 = vadd.f32 1.0, %v4963_v58  ;;  %v2802_v58 = vld [vmem:[#allocation2 + $0x70] sm:$0xff] }
0x128b   :  { %4968 = vrcp.f32 %v2597_v57 }
0x128c   :  { %4970 = vrcp.f32 %v2598_v59 }
0x1290   :  { %v4965_v63 = vpop.eup %4964 }
0x1291   :  { %v2733_v0 = vadd.f32 1.0, %v4965_v63  ;;  %v4967_v1 = vpop.eup %4966  ;;  %v2803_v63 = vld [vmem:[#allocation2 + $0x78] sm:$0xff] }
0x1292   :  { %v2734_v3 = vadd.f32 1.0, %v4967_v1 }
0x1293   :  { %4972 = vrcp.f32 %v2733_v0 }
0x1294   :  { %4974 = vrcp.f32 %v2734_v3  ;;  %v2937_v3 = vld [vmem:[#allocation3] sm:$0xff] }
0x1295   :  { %v4969_v6 = vpop.eup %4968 }
0x1296   :  { %v4971_v9 = vpop.eup %4970  ;;  %v2627_v4 = vsub.f32 1.0, %v4969_v6  ;;  %v2639_v39 = vmul.f32 %v4969_v6, %v5812_v17 }
0x1297   :  { %v2628_v35 = vsub.f32 1.0, %v4971_v9  ;;  %v2640_v36 = vmul.f32 %v4971_v9, %v5817_v23 }
0x129d   :  { %v4973_v45 = vpop.eup %4972 }
0x129e   :  { %v4975_v53 = vpop.eup %4974  ;;  %v2763_v60 = vsub.f32 1.0, %v4973_v45  ;;  %v2775_v43 = vmul.f32 %v4973_v45, %v5822_v62 }
0x129f   :  { %v2776_v23 = vmul.f32 %v4975_v53, %v5827_v34 }
0x12ee   :  { %v2608_v7 = vpop.permute.xlu0 %2607 }
0x12ef   :  { %v2613_v8 = vmul.f32 %v4969_v6, %v2608_v7  ;;  %v2938_v7 = vld [vmem:[#allocation3 + $0x8] sm:$0xff] }
0x12f1   :  { %2617 = vrot.lane.b32.xlu0 %v2613_v8, %s5173_s23 }
0x12f2   :  { %v2610_v31 = vpop.permute.xlu0 %2609 }
0x12f3   :  { %v2614_v10 = vmul.f32 %v4971_v9, %v2610_v31 }
0x12f5   :  { %2619 = vrot.lane.b32.xlu0 %v2614_v10, %s5173_s23 }
0x12f6   :  { %v2744_v52 = vpop.permute.xlu1 %2743 }
0x12f7   :  { %v2749_v16 = vmul.f32 %v4973_v45, %v2744_v52 }
0x12f9   :  { %2753 = vrot.lane.b32.xlu1 %v2749_v16, %s5173_s23 }
0x12fa   :  { %v2746_v55 = vpop.permute.xlu1 %2745 }
0x12fb   :  { %v2750_v13 = vmul.f32 %v4975_v53, %v2746_v55 }
0x12fd   :  { %2755 = vrot.lane.b32.xlu1 %v2750_v13, %s5173_s23 }
0x1363   :  { %v2618_v14 = vpop.permute.xlu0 %2617 }
0x1364   :  { %v2623_v15 = vadd.f32 %v2618_v14, %v2508_v30  ;;  %v2764_v30 = vsub.f32 1.0, %v4975_v53 }
0x1366   :  { %4976 = vtanh.f32 %v2623_v15 }
0x1367   :  { %v2620_v18 = vpop.permute.xlu0 %2619 }
0x1368   :  { %v2624_v19 = vadd.f32 %v2620_v18, %v2509_v46 }
0x136a   :  { %4978 = vtanh.f32 %v2624_v19 }
0x136b   :  { %v2754_v20 = vpop.permute.xlu1 %2753 }
0x136c   :  { %v2759_v22 = vadd.f32 %v2754_v20, %v2644_v49 }
0x136e   :  { %4980 = vtanh.f32 %v2759_v22 }
0x136f   :  { %v2756_v24 = vpop.permute.xlu1 %2755 }
0x1370   :  { %v4977_v25 = vpop.eup %4976  ;;  %v2760_v26 = vadd.f32 %v2756_v24, %v2645_v21 }
0x1371   :  { %2631 = vrot.lane.b32.xlu0 %v4977_v25, %s5175_s5 }
0x1372   :  { %4982 = vtanh.f32 %v2760_v26 }
0x1374   :  { %v4979_v27 = vpop.eup %4978 }
0x1375   :  { %2633 = vrot.lane.b32.xlu0 %v4979_v27, %s5175_s5 }
0x1378   :  { %v4981_v2 = vpop.eup %4980 }
0x1379   :  { %2767 = vrot.lane.b32.xlu1 %v4981_v2, %s5175_s5 }
0x137c   :  { %v4983_v28 = vpop.eup %4982 }
0x137d   :  { %2769 = vrot.lane.b32.xlu1 %v4983_v28, %s5175_s5 }
0x13e3   :  { %v2632_v38 = vpop.permute.xlu0 %2631 }
0x13e4   :  { %v2637_v11 = vmul.f32 %v2632_v38, %v2627_v4 }
0x13e6   :  { %v5862_v12 = vadd.f32 %v2639_v39, %v2637_v11 }
0x13e7   :  { %v2634_v33 = vpop.permute.xlu0 %2633 }
0x13e8   :  { %v2638_v37 = vmul.f32 %v2634_v33, %v2628_v35  ;;  %2781 = vrot.lane.b32.xlu0 %v5862_v12, %s5175_s5 }
0x13ea   :  { %v5867_v41 = vadd.f32 %v2640_v36, %v2638_v37 }
0x13eb   :  { %v2768_v42 = vpop.permute.xlu1 %2767 }
0x13ec   :  { %v2773_v5 = vmul.f32 %v2768_v42, %v2763_v60  ;;  %2783 = vrot.lane.b32.xlu0 %v5867_v41, %s5175_s5 }
0x13ee   :  { %v5872_v17 = vadd.f32 %v2775_v43, %v2773_v5 }
0x13ef   :  { %v2770_v32 = vpop.permute.xlu1 %2769 }
0x13f0   :  { %v2774_v46 = vmul.f32 %v2770_v32, %v2764_v30  ;;  %2792 = vrot.lane.b32.xlu1 %v5872_v17, %s5175_s5 }
0x13f2   :  { %v5877_v47 = vadd.f32 %v2776_v23, %v2774_v46 }
0x13f4   :  { %2794 = vrot.lane.b32.xlu1 %v5877_v47, %s5175_s5 }
0x145a   :  { %v2782_v62 = vpop.permute.xlu0 %2781 }
0x145b   :  { %2788 = vst.msk [vmem:[#allocation4 + $0x60] sm:$0xff] %vm341_vm1, %v2782_v62  ;;  %4569 = vmatprep.mubr.msk.f32.mxu0 %vm341_vm1, %v2782_v62 }
0x145e   :  { %v2784_v48 = vpop.permute.xlu0 %2783 }
0x145f   :  { %2789 = vst.msk [vmem:[#allocation4 + $0x68] sm:$0xff] %vm341_vm1, %v2784_v48  ;;  %4570 = vmatmul.mubr.msk.f32.vlgmr.msra.gmra.mrb[38].mxu0 %vm341_vm1, %v2784_v48 }
0x1462   :  { %v2793_v34 = vpop.permute.xlu1 %2792 }
0x1463   :  { %2799 = vst.msk [vmem:[#allocation5 + $0x10] sm:$0xff] %vm341_vm1, %v2793_v34  ;;  %4580 = vmatprep.mubr.msk.f32.mxu1 %vm341_vm1, %v2793_v34 }
0x1466   :  { %v2795_v49 = vpop.permute.xlu1 %2794 }
0x1467   :  { %2800 = vst.msk [vmem:[#allocation5 + $0x18] sm:$0xff] %vm341_vm1, %v2795_v49  ;;  %4581 = vmatmul.mubr.msk.f32.vlgmr.msra.gmra.mrb[38].mxu1 %vm341_vm1, %v2795_v49 }
0x1532   :  { %v4571_v50 = vpop.f32.mrb[38].mxu0 }
0x1533   :  { %v2874_v51 = vpop.f32.mrb[39].mxu0  ;;  %v2898_v54 = vadd.f32 %v4571_v50, %v5533_v40  ;;  %v2884_v0 = vadd.f32 %v4571_v50, %v2803_v63 }
0x1534   :  { %v2897_v21 = vadd.f32 %v2874_v51, %v5533_v40  ;;  %v2883_v59 = vadd.f32 %v2874_v51, %v2802_v58 }
0x1535   :  { %v4137_v6 = vmul.f32 -1.442695, %v2884_v0 }
0x1536   :  { %2901 = vrot.lane.b32.xlu0 %v2897_v21, %s5173_s23  ;;  %v4136_v1 = vmul.f32 -1.442695, %v2883_v59 }
0x1538   :  { %4984 = vpow2.f32 %v4136_v1 }
0x1539   :  { %4986 = vpow2.f32 %v4137_v6 }
0x153a   :  { %v4582_v61 = vpop.f32.mrb[38].mxu1  ;;  %2903 = vrot.lane.b32.xlu0 %v2898_v54, %s5173_s23 }
0x153b   :  { %v3009_v56 = vpop.f32.mrb[39].mxu1  ;;  %v3033_v57 = vadd.f32 %v4582_v61, %v5540_v44  ;;  %v3019_v8 = vadd.f32 %v4582_v61, %v2938_v7 }
0x153c   :  { %v3032_v29 = vadd.f32 %v3009_v56, %v5540_v44  ;;  %v3018_v40 = vadd.f32 %v3009_v56, %v2937_v3 }
0x153d   :  { %v4141_v31 = vmul.f32 -1.442695, %v3019_v8 }
0x153e   :  { %3036 = vrot.lane.b32.xlu1 %v3032_v29, %s5173_s23  ;;  %v4140_v9 = vmul.f32 -1.442695, %v3018_v40 }
0x1540   :  { %4988 = vpow2.f32 %v4140_v9 }
0x1541   :  { %4990 = vpow2.f32 %v4141_v31 }
0x1542   :  { %3038 = vrot.lane.b32.xlu1 %v3033_v57, %s5173_s23  ;;  %v4985_v10 = vpop.eup %4984 }
0x1543   :  { %v2891_v44 = vadd.f32 1.0, %v4985_v10  ;;  %v4987_v45 = vpop.eup %4986 }
0x1544   :  { %v2892_v52 = vadd.f32 1.0, %v4987_v45 }
0x1545   :  { %4992 = vrcp.f32 %v2891_v44 }
0x1546   :  { %4994 = vrcp.f32 %v2892_v52 }
0x154a   :  { %v4989_v16 = vpop.eup %4988 }
0x154b   :  { %v3026_v53 = vadd.f32 1.0, %v4989_v16  ;;  %v4991_v55 = vpop.eup %4990 }
0x154c   :  { %v3027_v13 = vadd.f32 1.0, %v4991_v55 }
0x154d   :  { %4996 = vrcp.f32 %v3026_v53 }
0x154e   :  { %4998 = vrcp.f32 %v3027_v13 }
0x154f   :  { %v4993_v14 = vpop.eup %4992 }
0x1550   :  { %v4995_v19 = vpop.eup %4994  ;;  %v2921_v46 = vsub.f32 1.0, %v4993_v14  ;;  %v2933_v51 = vmul.f32 %v4993_v14, %v5862_v12 }
0x1551   :  { %v2922_v32 = vsub.f32 1.0, %v4995_v19  ;;  %v2934_v62 = vmul.f32 %v4995_v19, %v5867_v41 }
0x1557   :  { %v4997_v24 = vpop.eup %4996 }
0x1558   :  { %v4999_v27 = vpop.eup %4998  ;;  %v3056_v56 = vsub.f32 1.0, %v4997_v24  ;;  %v3068_v59 = vmul.f32 %v4997_v24, %v5872_v17 }
0x1559   :  { %v3057_v54 = vsub.f32 1.0, %v4999_v27  ;;  %v3069_v29 = vmul.f32 %v4999_v27, %v5877_v47 }
0x15a8   :  { %v2902_v15 = vpop.permute.xlu0 %2901 }
0x15a9   :  { %v2907_v18 = vmul.f32 %v4993_v14, %v2902_v15  ;;  %v5952_v14 = vld [vmem:[%s6692_s11] ss:$0 sm:$0xff] }
0x15aa   :  { %v5959_v15 = vld [vmem:[%s6693_s12] ss:$0 sm:$0xff] }
0x15ab   :  { %2911 = vrot.lane.b32.xlu0 %v2907_v18, %s5173_s23  ;;  %v5963_v18 = vld [vmem:[#allocation4] sm:$0xff] }
0x15ac   :  { %v2904_v20 = vpop.permute.xlu0 %2903 }
0x15ad   :  { %v2908_v22 = vmul.f32 %v4995_v19, %v2904_v20  ;;  %v3412_v19 = vsel %vm341_vm1, %v5963_v18, 0.0  ;;  %v5967_v20 = vld [vmem:[#allocation4 + $0x10] sm:$0xff] }
0x15af   :  { %2913 = vrot.lane.b32.xlu0 %v2908_v22, %s5173_s23  ;;  %v3418_v22 = vsel %vm341_vm1, %v5967_v20, 0.0 }
0x15b0   :  { %v3037_v25 = vpop.permute.xlu1 %3036 }
0x15b1   :  { %v3042_v26 = vmul.f32 %v4997_v24, %v3037_v25  ;;  %v5971_v24 = vld [vmem:[#allocation4 + $0x18] sm:$0xff] }
0x15b2   :  { %v3421_v25 = vsel %vm341_vm1, %v5971_v24, 0.0 }
0x15b3   :  { %3046 = vrot.lane.b32.xlu1 %v3042_v26, %s5173_s23  ;;  %v5975_v26 = vld [vmem:[#allocation4 + $0x28] sm:$0xff] }
0x15b4   :  { %v3039_v2 = vpop.permute.xlu1 %3038 }
0x15b5   :  { %v3043_v28 = vmul.f32 %v4999_v27, %v3039_v2  ;;  %v3427_v27 = vsel %vm341_vm1, %v5975_v26, 0.0  ;;  %v5979_v2 = vld [vmem:[#allocation4 + $0x38] sm:$0xff] }
0x15b7   :  { %3048 = vrot.lane.b32.xlu1 %v3043_v28, %s5173_s23  ;;  %v3433_v28 = vsel %vm341_vm1, %v5979_v2, 0.0 }
0x161d   :  { %v2912_v4 = vpop.permute.xlu0 %2911 }
0x161e   :  { %v2917_v38 = vadd.f32 %v2912_v4, %v2802_v58 }
0x1620   :  { %5000 = vtanh.f32 %v2917_v38 }
0x1621   :  { %v2914_v39 = vpop.permute.xlu0 %2913 }
0x1622   :  { %v2918_v11 = vadd.f32 %v2914_v39, %v2803_v63 }
0x1624   :  { %5002 = vtanh.f32 %v2918_v11 }
0x1625   :  { %v3047_v35 = vpop.permute.xlu1 %3046 }
0x1626   :  { %v3052_v33 = vadd.f32 %v3047_v35, %v2937_v3 }
0x1628   :  { %5004 = vtanh.f32 %v3052_v33 }
0x1629   :  { %v3049_v36 = vpop.permute.xlu1 %3048 }
0x162a   :  { %v5001_v37 = vpop.eup %5000  ;;  %v3053_v60 = vadd.f32 %v3049_v36, %v2938_v7 }
0x162b   :  { %2925 = vrot.lane.b32.xlu0 %v5001_v37, %s5175_s5 }
0x162c   :  { %5006 = vtanh.f32 %v3053_v60 }
0x162e   :  { %v5003_v42 = vpop.eup %5002 }
0x162f   :  { %2927 = vrot.lane.b32.xlu0 %v5003_v42, %s5175_s5 }
0x1632   :  { %v5005_v43 = vpop.eup %5004 }
0x1633   :  { %3060 = vrot.lane.b32.xlu1 %v5005_v43, %s5175_s5 }
0x1636   :  { %v5007_v5 = vpop.eup %5006 }
0x1637   :  { %3062 = vrot.lane.b32.xlu1 %v5007_v5, %s5175_s5 }
0x169d   :  { %v2926_v30 = vpop.permute.xlu0 %2925 }
0x169e   :  { %v2931_v34 = vmul.f32 %v2926_v30, %v2921_v46 }
0x16a0   :  { %v5911_v21 = vadd.f32 %v2933_v51, %v2931_v34 }
0x16a1   :  { %v2928_v23 = vpop.permute.xlu0 %2927 }
0x16a2   :  { %v2932_v48 = vmul.f32 %v2928_v23, %v2922_v32  ;;  %v3109_v12 = vmul.f32 %v5911_v21, %v5911_v21 }
0x16a4   :  { %v5906_v49 = vadd.f32 %v2934_v62, %v2932_v48 }
0x16a5   :  { %v3061_v50 = vpop.permute.xlu1 %3060 }
0x16a6   :  { %3076 = vrot.lane.b32.xlu0 %v5906_v49, %s5175_s5  ;;  %v3066_v41 = vmul.f32 %v3061_v50, %v3056_v56  ;;  %v3110_v47 = vmul.f32 %v5906_v49, %v5906_v49  ;;  %v3194_v56 = vld [vmem:[%s6694_s13 + $0x28] sm:$0xff] }
0x16a8   :  { %v5924_v63 = vadd.f32 %v3068_v59, %v3066_v41  ;;  %v3195_v59 = vld [vmem:[%s6694_s13 + $0x30] sm:$0xff] }
0x16a9   :  { %v3063_v61 = vpop.permute.xlu1 %3062 }
0x16aa   :  { %v3067_v57 = vmul.f32 %v3063_v61, %v3057_v54  ;;  %3074 = vrot.lane.b32.xlu0 %v5911_v21, %s5175_s5  ;;  %v3125_v0 = vmul.f32 %v5924_v63, %v5924_v63  ;;  %v3193_v61 = vld [vmem:[%s6694_s13 + $0x20] sm:$0xff] }
0x16ac   :  { %v5916_v58 = vadd.f32 %v3069_v29, %v3067_v57  ;;  %v4753_v29 = vpack.c.bf16 %v3194_v56, %v3193_v61  ;;  %v6072_v61 = vld [vmem:[#allocation5 + $0x58] sm:$0xff]  ;;  %v6074_v56 = vld [vmem:[#allocation4 + $0x60] sm:$0xff] }
0x16ad   :  { %6718 = vst [vmem:[#allocation23_spill] sm:$0xff] %v6072_v61  ;;  %6719 = vst [vmem:[#allocation24_spill] sm:$0xff] %v6074_v56 }
0x16ae   :  { %3087 = vrot.lane.b32.xlu1 %v5916_v58, %s5175_s5  ;;  %3113 = vrot.lane.b32.xlu0 %v3109_v12, %s5175_s5  ;;  %v3126_v17 = vmul.f32 %v5916_v58, %v5916_v58 }
0x16af   :  { %4754 = vmatprep.subr.bf16.mxu0 %v4753_v29 }
0x16b0   :  { %4756 = vmatpush3.bf16.msra.mxu0 %v4753_v29  ;;  %v3493_v29 = vsel %vm341_vm1, %v6072_v61, 0.0 }
0x16b2   :  { %3085 = vrot.lane.b32.xlu1 %v5924_v63, %s5175_s5  ;;  %3115 = vrot.lane.b32.xlu0 %v3110_v47, %s5175_s5  ;;  %v3196_v47 = vld [vmem:[%s6694_s13 + $0x38] sm:$0xff] }
0x16b6   :  { %3129 = vrot.lane.b32.xlu1 %v3125_v0, %s5175_s5 }
0x16ba   :  { %3131 = vrot.lane.b32.xlu1 %v3126_v17, %s5175_s5  ;;  %v4757_v17 = vpack.c.bf16 %v3196_v47, %v3195_v59 }
0x16bc   :  { %4758 = vmatprep.subr.bf16.mxu0 %v4757_v17 }
0x16bd   :  { %4760 = vmatpush3.bf16.msra.mxu0 %v4757_v17 }
0x1718   :  { %v3077_v1 = vpop.permute.xlu0 %3076 }
0x1719   :  { %3082 = vst.msk [vmem:[#allocation4 + $0x78] sm:$0xff] %vm341_vm1, %v3077_v1  ;;  %v3098_v3 = vsel %vm341_vm1, %v3077_v1, 0.0 }
0x171a   :  { %3099 = vadd.xlane.f32.xlu0 %v3098_v3 }
0x171c   :  { %v3075_v6 = vpop.permute.xlu0 %3074 }
0x171d   :  { %3081 = vst.msk [vmem:[#allocation4 + $0x70] sm:$0xff] %vm341_vm1, %v3075_v6  ;;  %v3095_v40 = vsel %vm341_vm1, %v3075_v6, 0.0 }
0x171e   :  { %3096 = vadd.xlane.f32.xlu0 %v3095_v40 }
0x1720   :  { %v3088_v7 = vpop.permute.xlu1 %3087  ;;  %v3114_v8 = vpop.permute.xlu0 %3113 }
0x1721   :  { %3092 = vst.msk [vmem:[#allocation5 + $0x8] sm:$0xff] %vm341_vm1, %v3088_v7  ;;  %v3119_v9 = vsel %vm341_vm1, %v3114_v8, 0.0  ;;  %v3104_v31 = vsel %vm341_vm1, %v3088_v7, 0.0  ;;  %v3189_v7 = vld [vmem:[%s6694_s13] sm:$0xff]  ;;  %v3190_v8 = vld [vmem:[%s6694_s13 + $0x8] sm:$0xff] }
0x1722   :  { %3120 = vadd.xlane.f32.xlu1 %v3119_v9  ;;  %3105 = vadd.xlane.f32.xlu0 %v3104_v31 }
0x1724   :  { %v3086_v10 = vpop.permute.xlu1 %3085  ;;  %v3116_v45 = vpop.permute.xlu0 %3115 }
0x1725   :  { %3091 = vst.msk [vmem:[#allocation5] sm:$0xff] %vm341_vm1, %v3086_v10  ;;  %v3101_v44 = vsel %vm341_vm1, %v3086_v10, 0.0  ;;  %v3122_v16 = vsel %vm341_vm1, %v3116_v45, 0.0 }
0x1726   :  { %3102 = vadd.xlane.f32.xlu1 %v3101_v44  ;;  %v6004_v44 = vpack.c.bf16 %v3190_v8, %v3189_v7  ;;  %v3527_v7 = vmul.f32 %v5971_v24, %v5971_v24 }
0x1728   :  { %v3130_v52 = vpop.permute.xlu1 %3129  ;;  %4762 = vmatprep.subr.bf16.mxu0 %v6004_v44 }
0x1729   :  { %v3135_v53 = vsel %vm341_vm1, %v3130_v52, 0.0 }
0x172a   :  { %3136 = vadd.xlane.f32.xlu0 %v3135_v53  ;;  %3123 = vadd.xlane.f32.xlu1 %v3122_v16 }
0x172c   :  { %v3132_v55 = vpop.permute.xlu1 %3131  ;;  %v6090_v17 = vld [vmem:[#allocation5] sm:$0xff] }
0x172d   :  { %v3138_v13 = vsel %vm341_vm1, %v3132_v55, 0.0 }
0x172e   :  { %3139 = vadd.xlane.f32.xlu0 %v3138_v13 }
0x173b   :  { %3164 = vrot.lane.b32.xlu1 %v5952_v14, %s5176_s8 }
0x1744   :  { %3174 = vrot.lane.b32.xlu0 %v5959_v15, %s5176_s8 }
0x1763   :  { %3413 = vadd.xlane.f32.xlu0 %v3412_v19 }
0x1767   :  { %3419 = vadd.xlane.f32.xlu0 %v3418_v22  ;;  %v6020_v22 = vld [vmem:[#allocation4 + $0x58] sm:$0xff] }
0x176b   :  { %3422 = vadd.xlane.f32.xlu0 %v3421_v25  ;;  %v3445_v25 = vsel %vm341_vm1, %v6020_v22, 0.0 }
0x176f   :  { %3428 = vadd.xlane.f32.xlu0 %v3427_v27  ;;  %v6024_v27 = vld [vmem:[#allocation4 + $0x68] sm:$0xff] }
0x1773   :  { %3434 = vadd.xlane.f32.xlu0 %v3433_v28  ;;  %v3451_v28 = vsel %vm341_vm1, %v6024_v27, 0.0 }
0x17a7   :  { %v3100_v4 = vpop.xlane.xlu0 %3099 }
0x17ab   :  { %v3097_v38 = vpop.xlane.xlu0 %3096 }
0x17af   :  { %v3121_v39 = vpop.xlane.xlu1 %3120  ;;  %v3106_v11 = vpop.xlane.xlu0 %3105 }
0x17b0   :  { %v3108_v36 = vadd.f32 %v3106_v11, %v3100_v4  ;;  %v6028_v4 = vld [vmem:[#allocation4 + $0x78] sm:$0xff]  ;;  %v6034_v11 = vld [vmem:[#allocation4 + $0x8] sm:$0xff] }
0x17b2   :  { %v3144_v5 = vmul.f32 0.015625, %v3108_v36  ;;  %v6040_v36 = vld [vmem:[#allocation5 + $0x18] sm:$0xff] }
0x17b3   :  { %v3103_v35 = vpop.xlane.xlu1 %3102 }
0x17b4   :  { %v3107_v33 = vadd.f32 %v3103_v35, %v3097_v38  ;;  %v3148_v34 = vmul.f32 %v3144_v5, %v3144_v5  ;;  %v3156_v3 = vsub.f32 %v5906_v49, %v3144_v5  ;;  %v3180_v6 = vsub.f32 %v5916_v58, %v3144_v5  ;;  %v6050_v5 = vld [vmem:[#allocation4 + $0x30] sm:$0xff] }
0x17b5   :  { %v3457_v38 = vsel %vm341_vm1, %v6028_v4, 0.0 }
0x17b6   :  { %v3143_v37 = vmul.f32 0.015625, %v3107_v33  ;;  %v3415_v33 = vsel %vm341_vm1, %v6034_v11, 0.0 }
0x17b7   :  { %v3137_v60 = vpop.xlane.xlu0 %3136  ;;  %v3124_v32 = vpop.xlane.xlu1 %3123 }
0x17b8   :  { %v3147_v42 = vmul.f32 %v3143_v37, %v3143_v37  ;;  %v3141_v43 = vadd.f32 %v3137_v60, %v3121_v39  ;;  %v3155_v57 = vsub.f32 %v5911_v21, %v3143_v37  ;;  %v3179_v49 = vsub.f32 %v5924_v63, %v3143_v37  ;;  %v6016_v63 = vld [vmem:[#allocation4 + $0x48] sm:$0xff]  ;;  %v6042_v37 = vld [vmem:[#allocation4 + $0x20] sm:$0xff] }
0x17b9   :  { %v3439_v19 = vsel %vm341_vm1, %v6016_v63, 0.0  ;;  %v6032_v39 = vld [vmem:[#allocation5 + $0x8] sm:$0xff]  ;;  %v3469_v60 = vsel %vm341_vm1, %v6040_v36, 0.0 }
0x17ba   :  { %v3145_v30 = vmul.f32 0.015625, %v3141_v43  ;;  %v3463_v35 = vsel %vm341_vm1, %v6032_v39, 0.0  ;;  %v6048_v43 = vld [vmem:[#allocation5 + $0x28] sm:$0xff] }
0x17bb   :  { %v3140_v23 = vpop.xlane.xlu0 %3139  ;;  %v3165_v12 = vpop.permute.xlu1 %3164 }
0x17bc   :  { %v3149_v46 = vsub.f32 %v3145_v30, %v3147_v42  ;;  %v3142_v62 = vadd.f32 %v3140_v23, %v3124_v32  ;;  %v3424_v42 = vsel %vm341_vm1, %v6042_v37, 0.0  ;;  %v3475_v30 = vsel %vm341_vm1, %v6048_v43, 0.0  ;;  %v6056_v23 = vld [vmem:[#allocation5 + $0x38] sm:$0xff] }
0x17bd   :  { %v3430_v32 = vsel %vm341_vm1, %v6050_v5, 0.0  ;;  %6714 = vst [vmem:[#allocation19_spill] sm:$0xff] %v6056_v23 }
0x17be   :  { %v3151_v48 = vadd.f32 1e-05, %v3149_v46  ;;  %v3146_v50 = vmul.f32 0.015625, %v3142_v62  ;;  %v6058_v46 = vld [vmem:[#allocation4 + $0x40] sm:$0xff]  ;;  %v3481_v62 = vsel %vm341_vm1, %v6056_v23, 0.0 }
0x17bf   :  { %v3175_v1 = vpop.permute.xlu0 %3174  ;;  %6715 = vst [vmem:[#allocation20_spill] sm:$0xff] %v6058_v46 }
0x17c0   :  { %5008 = vrsqrt.f32 %v3151_v48  ;;  %v3150_v51 = vsub.f32 %v3146_v50, %v3148_v34  ;;  %v3436_v48 = vsel %vm341_vm1, %v6058_v46, 0.0  ;;  %v6064_v34 = vld [vmem:[#allocation5 + $0x48] sm:$0xff]  ;;  %v6066_v50 = vld [vmem:[#allocation4 + $0x50] sm:$0xff] }
0x17c1   :  { %6716 = vst [vmem:[#allocation21_spill] sm:$0xff] %v6064_v34  ;;  %6717 = vst [vmem:[#allocation22_spill] sm:$0xff] %v6066_v50 }
0x17c2   :  { %v3152_v54 = vadd.f32 1e-05, %v3150_v51  ;;  %v3487_v51 = vsel %vm341_vm1, %v6064_v34, 0.0 }
0x17c4   :  { %5010 = vrsqrt.f32 %v3152_v54  ;;  %v3442_v54 = vsel %vm341_vm1, %v6066_v50, 0.0 }
0x17ca   :  { %v5009_v41 = vpop.eup %5008 }
0x17cb   :  { %v3157_v0 = vmul.f32 %v5009_v41, %v3155_v57  ;;  %v3181_v16 = vmul.f32 %v5009_v41, %v3179_v49  ;;  %v3448_v57 = vsel %vm341_vm1, %v6074_v56, 0.0  ;;  %v6080_v41 = vld [vmem:[#allocation5 + $0x68] sm:$0xff] }
0x17cc   :  { %6720 = vst [vmem:[#allocation25_spill] sm:$0xff] %v6080_v41  ;;  %v3499_v59 = vsel %vm341_vm1, %v6080_v41, 0.0 }
0x17cd   :  { %v3167_v21 = vmul.f32 %v3165_v12, %v3157_v0  ;;  %v3184_v55 = vmul.f32 %v5952_v14, %v3181_v16  ;;  %v6088_v0 = vld [vmem:[#allocation5 + $0x78] sm:$0xff] }
0x17ce   :  { %v5011_v40 = vpop.eup %5010  ;;  %6722 = vst [vmem:[#allocation27_spill] sm:$0xff] %v6088_v0 }
0x17cf   :  { %v3158_v9 = vmul.f32 %v5011_v40, %v3156_v3  ;;  %v3177_v31 = vadd.f32 %v3175_v1, %v3167_v21  ;;  %v3182_v10 = vmul.f32 %v5011_v40, %v3180_v6  ;;  %v3187_v13 = vadd.f32 %v5959_v15, %v3184_v55  ;;  %v6098_v21 = vld [vmem:[#allocation5 + $0x10] sm:$0xff] }
0x17d0   :  { %v3525_v3 = vmul.f32 %v6034_v11, %v6034_v11  ;;  %v3460_v6 = vsel %vm341_vm1, %v6090_v17, 0.0  ;;  %v3466_v8 = vsel %vm341_vm1, %v6098_v21, 0.0 }
0x17d1   :  { %3284 = vrot.lane.b32.xlu0 %v3177_v31, %s5175_s5  ;;  %v3185_v58 = vmul.f32 %v5952_v14, %v3182_v10  ;;  %v3168_v45 = vmul.f32 %v3165_v12, %v3158_v9  ;;  %v6082_v12 = vld [vmem:[#allocation4 + $0x70] sm:$0xff]  ;;  %v6105_v9 = vld [vmem:[#allocation5 + $0x20] sm:$0xff]  ;;  %v3549_v31 = vsel %vm341_vm1, %v3527_v7, 0.0  ;;  %v3529_v10 = vmul.f32 %v5975_v26, %v5975_v26 }
0x17d2   :  { %6721 = vst [vmem:[#allocation26_spill] sm:$0xff] %v6082_v12  ;;  %v3454_v47 = vsel %vm341_vm1, %v6082_v12, 0.0  ;;  %v3543_v40 = vsel %vm341_vm1, %v3525_v3, 0.0  ;;  %v3472_v49 = vsel %vm341_vm1, %v6105_v9, 0.0  ;;  %v3526_v3 = vmul.f32 %v5967_v20, %v5967_v20 }
0x17d3   :  { %v3188_v52 = vadd.f32 %v5959_v15, %v3185_v58  ;;  %v3178_v53 = vadd.f32 %v3175_v1, %v3168_v45  ;;  %v3505_v1 = vsel %vm341_vm1, %v6088_v0, 0.0  ;;  %v6112_v58 = vld [vmem:[#allocation5 + $0x30] sm:$0xff]  ;;  %v3555_v45 = vsel %vm341_vm1, %v3529_v10, 0.0 }
0x17d4   :  { %v3478_v16 = vsel %vm341_vm1, %v6112_v58, 0.0  ;;  %v3546_v7 = vsel %vm341_vm1, %v3526_v3, 0.0 }
0x17d5   :  { %3201 = vrot.lane.b32.xlu1 %v3188_v52, %s5175_s5  ;;  %v3531_v52 = vmul.f32 %v5979_v2, %v5979_v2 }
0x17d7   :  { %v3561_v55 = vsel %vm341_vm1, %v3531_v52, 0.0  ;;  %v3530_v52 = vmul.f32 %v6050_v5, %v6050_v5 }
0x17d9   :  { %3286 = vrot.lane.b32.xlu1 %v3178_v53, %s5175_s5  ;;  %v6119_v53 = vld [vmem:[#allocation5 + $0x40] sm:$0xff] }
0x17da   :  { %6723 = vst [vmem:[#allocation28_spill] sm:$0xff] %v6119_v53 }
0x17dd   :  { %3199 = vrot.lane.b32.xlu1 %v3187_v13, %s5175_s5  ;;  %v3533_v13 = vmul.f32 %v6016_v63, %v6016_v63 }
0x17f0   :  { %3440 = vadd.xlane.f32.xlu0 %v3439_v19  ;;  %v3484_v19 = vsel %vm341_vm1, %v6119_v53, 0.0 }
0x17f4   :  { %3446 = vadd.xlane.f32.xlu0 %v3445_v25  ;;  %v6126_v25 = vld [vmem:[#allocation5 + $0x50] sm:$0xff] }
0x17f5   :  { %6724 = vst [vmem:[#allocation29_spill] sm:$0xff] %v6126_v25 }
0x17f8   :  { %3452 = vadd.xlane.f32.xlu0 %v3451_v28  ;;  %v3567_v28 = vsel %vm341_vm1, %v3533_v13, 0.0 }
0x17fc   :  { %3458 = vadd.xlane.f32.xlu0 %v3457_v38  ;;  %v3535_v38 = vmul.f32 %v6020_v22, %v6020_v22 }
0x1800   :  { %3464 = vadd.xlane.f32.xlu0 %v3463_v35  ;;  %v3490_v35 = vsel %vm341_vm1, %v6126_v25, 0.0 }
0x1801   :  { %3416 = vadd.xlane.f32.xlu1 %v3415_v33  ;;  %v6133_v33 = vld [vmem:[#allocation5 + $0x60] sm:$0xff] }
0x1802   :  { %6725 = vst [vmem:[#allocation30_spill] sm:$0xff] %v6133_v33 }
0x1804   :  { %3470 = vadd.xlane.f32.xlu0 %v3469_v60  ;;  %v3573_v60 = vsel %vm341_vm1, %v3535_v38, 0.0  ;;  %v3532_v38 = vmul.f32 %v6058_v46, %v6058_v46 }
0x1805   :  { %3425 = vadd.xlane.f32.xlu1 %v3424_v42  ;;  %v3537_v42 = vmul.f32 %v6024_v27, %v6024_v27 }
0x1808   :  { %3476 = vadd.xlane.f32.xlu0 %v3475_v30  ;;  %v3496_v30 = vsel %vm341_vm1, %v6133_v33, 0.0 }
0x1809   :  { %3431 = vadd.xlane.f32.xlu1 %v3430_v32  ;;  %v6140_v32 = vpop.xlane.xlu0 %3413 }
0x180c   :  { %3482 = vadd.xlane.f32.xlu0 %v3481_v62  ;;  %v6142_v62 = vld [vmem:[#allocation5 + $0x70] sm:$0xff] }
0x180d   :  { %3437 = vadd.xlane.f32.xlu1 %v3436_v48  ;;  %6726 = vst [vmem:[#allocation31_spill] sm:$0xff] %v6142_v62  ;;  %v3579_v48 = vsel %vm341_vm1, %v3537_v42, 0.0  ;;  %v3597_v42 = vmul.f32 %v6064_v34, %v6064_v34 }
0x1810   :  { %3488 = vadd.xlane.f32.xlu0 %v3487_v51  ;;  %v3539_v51 = vmul.f32 %v6028_v4, %v6028_v4 }
0x1811   :  { %3443 = vadd.xlane.f32.xlu1 %v3442_v54  ;;  %v3502_v54 = vsel %vm341_vm1, %v6142_v62, 0.0 }
0x1814   :  { %3494 = vadd.xlane.f32.xlu0 %v3493_v29  ;;  %v3524_v29 = vmul.f32 %v5963_v18, %v5963_v18 }
0x1815   :  { %3449 = vadd.xlane.f32.xlu1 %v3448_v57  ;;  %v6151_v57 = vpop.xlane.xlu0 %3419 }
0x1818   :  { %3500 = vadd.xlane.f32.xlu0 %v3499_v59  ;;  %v3585_v59 = vsel %vm341_vm1, %v3539_v51, 0.0  ;;  %v3191_v51 = vld [vmem:[%s6694_s13 + $0x10] sm:$0xff] }
0x1819   :  { %3455 = vadd.xlane.f32.xlu1 %v3454_v47  ;;  %v3589_v47 = vmul.f32 %v6032_v39, %v6032_v39 }
0x181c   :  { %3506 = vadd.xlane.f32.xlu0 %v3505_v1  ;;  %v3540_v1 = vsel %vm341_vm1, %v3524_v29, 0.0 }
0x181d   :  { %3461 = vadd.xlane.f32.xlu1 %v3460_v6  ;;  %v3607_v6 = vsel %vm341_vm1, %v3589_v47, 0.0  ;;  %v3631_v47 = vsel %vm341_vm1, %v3597_v42, 0.0  ;;  %v3592_v42 = vmul.f32 %v6105_v9, %v6105_v9 }
0x1820   :  { %3544 = vadd.xlane.f32.xlu0 %v3543_v40  ;;  %v3591_v40 = vmul.f32 %v6040_v36, %v6040_v36 }
0x1821   :  { %3467 = vadd.xlane.f32.xlu1 %v3466_v8  ;;  %v3528_v8 = vmul.f32 %v6042_v37, %v6042_v37 }
0x1822   :  { %v3613_v10 = vsel %vm341_vm1, %v3591_v40, 0.0  ;;  %v3536_v40 = vmul.f32 %v6074_v56, %v6074_v56 }
0x1824   :  { %3550 = vadd.xlane.f32.xlu0 %v3549_v31  ;;  %v6165_v31 = vpop.xlane.xlu0 %3422 }
0x1825   :  { %3473 = vadd.xlane.f32.xlu1 %v3472_v49  ;;  %v3593_v49 = vmul.f32 %v6048_v43, %v6048_v43 }
0x1827   :  { %v3619_v13 = vsel %vm341_vm1, %v3593_v49, 0.0  ;;  %v3576_v49 = vsel %vm341_vm1, %v3536_v40, 0.0 }
0x1828   :  { %3556 = vadd.xlane.f32.xlu0 %v3555_v45  ;;  %v3552_v45 = vsel %vm341_vm1, %v3528_v8, 0.0 }
0x1829   :  { %3479 = vadd.xlane.f32.xlu1 %v3478_v16  ;;  %v6173_v16 = vpop.xlane.xlu0 %3428 }
0x182c   :  { %3562 = vadd.xlane.f32.xlu0 %v3561_v55 }
0x182d   :  { %3485 = vadd.xlane.f32.xlu1 %v3484_v19  ;;  %v3595_v19 = vmul.f32 %v6056_v23, %v6056_v23  ;;  %v6193_v29 = vpop.xlane.xlu0 %3434 }
0x1830   :  { %3568 = vadd.xlane.f32.xlu0 %v3567_v28  ;;  %v3558_v28 = vsel %vm341_vm1, %v3530_v52, 0.0 }
0x1831   :  { %3491 = vadd.xlane.f32.xlu1 %v3490_v35 }
0x1834   :  { %3574 = vadd.xlane.f32.xlu0 %v3573_v60  ;;  %v3625_v60 = vsel %vm341_vm1, %v3595_v19, 0.0 }
0x1835   :  { %3497 = vadd.xlane.f32.xlu1 %v3496_v30  ;;  %v3564_v30 = vsel %vm341_vm1, %v3532_v38, 0.0  ;;  %v3590_v38 = vmul.f32 %v6098_v21, %v6098_v21 }
0x1838   :  { %3580 = vadd.xlane.f32.xlu0 %v3579_v48  ;;  %v3534_v48 = vmul.f32 %v6066_v50, %v6066_v50 }
0x1839   :  { %3503 = vadd.xlane.f32.xlu1 %v3502_v54  ;;  %v3192_v54 = vld [vmem:[%s6694_s13 + $0x18] sm:$0xff] }
0x183a   :  { %v4765_v3 = vpack.c.bf16 %v3192_v54, %v3191_v51  ;;  %v3596_v51 = vmul.f32 %v6119_v53, %v6119_v53 }
0x183c   :  { %3586 = vadd.xlane.f32.xlu0 %v3585_v59  ;;  %v3628_v54 = vsel %vm341_vm1, %v3596_v51, 0.0 }
0x183d   :  { %3541 = vadd.xlane.f32.xlu1 %v3540_v1  ;;  %v3599_v1 = vmul.f32 %v6072_v61, %v6072_v61 }
0x183f   :  { %v3637_v8 = vsel %vm341_vm1, %v3599_v1, 0.0  ;;  %v3600_v1 = vmul.f32 %v6133_v33, %v6133_v33 }
0x1840   :  { %3608 = vadd.xlane.f32.xlu0 %v3607_v6  ;;  %v3570_v6 = vsel %vm341_vm1, %v3534_v48, 0.0 }
0x1841   :  { %3547 = vadd.xlane.f32.xlu1 %v3546_v7 }
0x1843   :  { %v3285_v7 = vpop.permute.xlu0 %3284 }
0x1844   :  { %3614 = vadd.xlane.f32.xlu0 %v3613_v10  ;;  %v3601_v10 = vmul.f32 %v6080_v41, %v6080_v41 }
0x1845   :  { %3553 = vadd.xlane.f32.xlu1 %v3552_v45  ;;  %v3538_v45 = vmul.f32 %v6082_v12, %v6082_v12 }
0x1846   :  { %v3643_v52 = vsel %vm341_vm1, %v3601_v10, 0.0 }
0x1847   :  { %v3202_v55 = vpop.permute.xlu1 %3201 }
0x1848   :  { %3620 = vadd.xlane.f32.xlu0 %v3619_v13  ;;  %v3588_v13 = vmul.f32 %v6090_v17, %v6090_v17 }
0x1849   :  { %3559 = vadd.xlane.f32.xlu1 %v3558_v28 }
0x184a   :  { %v3604_v28 = vsel %vm341_vm1, %v3588_v13, 0.0 }
0x184b   :  { %v3287_v35 = vpop.permute.xlu1 %3286 }
0x184c   :  { %3626 = vadd.xlane.f32.xlu0 %v3625_v60  ;;  %v3610_v60 = vsel %vm341_vm1, %v3590_v38, 0.0 }
0x184d   :  { %3565 = vadd.xlane.f32.xlu1 %v3564_v30  ;;  %v3616_v30 = vsel %vm341_vm1, %v3592_v42, 0.0 }
0x184f   :  { %v3200_v59 = vpop.permute.xlu1 %3199 }
0x1850   :  { %4591 = vmatprep.mubr.msk.f32.mxu0 %vm341_vm1, %v3200_v59  ;;  %3632 = vadd.xlane.f32.xlu0 %v3631_v47  ;;  %v3598_v59 = vmul.f32 %v6126_v25, %v6126_v25 }
0x1851   :  { %3571 = vadd.xlane.f32.xlu1 %v3570_v6  ;;  %4592 = vmatmul.mubr.msk.f32.vlgmr.msra.gmra.mrb[40].mxu0 %vm341_vm1, %v3202_v55  ;;  %v3582_v55 = vsel %vm341_vm1, %v3538_v45, 0.0  ;;  %v3602_v6 = vmul.f32 %v6142_v62, %v6142_v62 }
0x1852   :  { %4764 = vmatpush3.bf16.msra.mxu0 %v6004_v44  ;;  %4602 = vmatprep.mubr.msk.f32.mxu0 %vm341_vm1, %v3285_v7  ;;  %v3603_v44 = vmul.f32 %v6088_v0, %v6088_v0  ;;  %v3634_v47 = vsel %vm341_vm1, %v3598_v59, 0.0 }
0x1853   :  { %4766 = vmatprep.subr.bf16.mxu0 %v4765_v3  ;;  %v3646_v40 = vsel %vm341_vm1, %v3602_v6, 0.0 }
0x1854   :  { %3638 = vadd.xlane.f32.xlu0 %v3637_v8  ;;  %v3649_v19 = vsel %vm341_vm1, %v3603_v44, 0.0 }
0x1855   :  { %3577 = vadd.xlane.f32.xlu1 %v3576_v49 }
0x1856   :  { %4768 = vmatpush3.bf16.msra.mxu0 %v4765_v3  ;;  %v3640_v3 = vsel %vm341_vm1, %v3600_v1, 0.0 }
0x1858   :  { %3644 = vadd.xlane.f32.xlu0 %v3643_v52 }
0x1859   :  { %3583 = vadd.xlane.f32.xlu1 %v3582_v55  ;;  %4603 = vmatmul.mubr.msk.f32.vlgmr.msra.gmra.mrb[40].mxu0 %vm341_vm1, %v3287_v35  ;;  %v3594_v35 = vmul.f32 %v6112_v58, %v6112_v58 }
0x185b   :  { %v3622_v48 = vsel %vm341_vm1, %v3594_v35, 0.0 }
0x185c   :  { %3650 = vadd.xlane.f32.xlu0 %v3649_v19 }
0x185d   :  { %3605 = vadd.xlane.f32.xlu1 %v3604_v28 }
0x1861   :  { %3611 = vadd.xlane.f32.xlu1 %v3610_v60 }
0x1865   :  { %3617 = vadd.xlane.f32.xlu1 %v3616_v30 }
0x1869   :  { %3623 = vadd.xlane.f32.xlu1 %v3622_v48 }
0x186d   :  { %3629 = vadd.xlane.f32.xlu1 %v3628_v54 }
0x1871   :  { %3635 = vadd.xlane.f32.xlu1 %v3634_v47 }
0x1872   :  { %3879 = vrot.lane.b32.xlu0 %v5959_v15, %s5175_s5 }
0x1875   :  { %3641 = vadd.xlane.f32.xlu1 %v3640_v3 }
0x1879   :  { %3647 = vadd.xlane.f32.xlu1 %v3646_v40 }
0x187d   :  { %v3441_v7 = vpop.xlane.xlu0 %3440 }
0x1881   :  { %v3447_v8 = vpop.xlane.xlu0 %3446 }
0x1885   :  { %v3453_v10 = vpop.xlane.xlu0 %3452 }
0x1889   :  { %v3459_v49 = vpop.xlane.xlu0 %3458 }
0x188a   :  { %3860 = vrot.lane.b32.xlu1 %v5952_v14, %s5175_s5  ;;  %s5177_s5 = smov [#allocation13]  }
0x188b   :  { %s4012_s9 = sshll.u32 %s5177_s5, 4  ;;  %s4013_s9 = int_to_ptr.vmem [resolvable:$true] %s4012_s9 }
0x188c   :  { %p5121_p11 = scmp.lt.s32.totalorder %s4013_s9, %s4013_s9 }
0x188d   :  { %v3465_v45 = vpop.xlane.xlu0 %3464 }
0x188e   :  { %v3417_v52 = vpop.xlane.xlu1 %3416 }
0x188f   :  { %v3509_v44 = vadd.f32 %v3465_v45, %v3417_v52 }
0x1891   :  { %v3471_v15 = vpop.xlane.xlu0 %3470 }
0x1892   :  { %v3426_v55 = vpop.xlane.xlu1 %3425 }
0x1895   :  { %v3477_v13 = vpop.xlane.xlu0 %3476 }
0x1896   :  { %v3432_v19 = vpop.xlane.xlu1 %3431 }
0x1899   :  { %v3483_v28 = vpop.xlane.xlu0 %3482 }
0x189a   :  { %v3438_v38 = vpop.xlane.xlu1 %3437 }
0x189d   :  { %v3489_v60 = vpop.xlane.xlu0 %3488 }
0x189e   :  { %v6245_v42 = vadd.f32 %v3489_v60, %v3441_v7  ;;  %v3444_v30 = vpop.xlane.xlu1 %3443 }
0x18a1   :  { %v3495_v35 = vpop.xlane.xlu0 %3494 }
0x18a2   :  { %v6247_v48 = vadd.f32 %v3495_v35, %v3447_v8  ;;  %v3450_v51 = vpop.xlane.xlu1 %3449 }
0x18a5   :  { %v3501_v54 = vpop.xlane.xlu0 %3500 }
0x18a6   :  { %v6249_v59 = vadd.f32 %v3501_v54, %v3453_v10  ;;  %v3456_v14 = vpop.xlane.xlu1 %3455 }
0x18a9   :  { %v3507_v47 = vpop.xlane.xlu0 %3506 }
0x18aa   :  { %v6251_v1 = vadd.f32 %v3507_v47, %v3459_v49  ;;  %v6253_v3 = vpop.xlane.xlu1 %3461 }
0x18ad   :  { %v3545_v6 = vpop.xlane.xlu0 %3544 }
0x18ae   :  { %v6255_v40 = vpop.xlane.xlu1 %3467 }
0x18b1   :  { %v3551_v45 = vpop.xlane.xlu0 %3550 }
0x18b2   :  { %v3474_v7 = vpop.xlane.xlu1 %3473 }
0x18b3   :  { %v6257_v52 = vadd.f32 %v3474_v7, %v3426_v55 }
0x18b5   :  { %v3557_v60 = vpop.xlane.xlu0 %3556 }
0x18b6   :  { %v3480_v8 = vpop.xlane.xlu1 %3479 }
0x18b7   :  { %v6259_v35 = vadd.f32 %v3480_v8, %v3432_v19  ;;  %v3669_v8 = vmul.f32 0.015625, %v3509_v44  ;;  %v3515_v44 = vadd.f32 %v3483_v28, %v6193_v29  ;;  %v6297_v28 = vmul.f32 0.015625, %v6245_v42 }
0x18b9   :  { %v3563_v0 = vpop.xlane.xlu0 %3562 }
0x18ba   :  { %v3486_v10 = vpop.xlane.xlu1 %3485 }
0x18bb   :  { %v6261_v54 = vadd.f32 %v3486_v10, %v3438_v38  ;;  %v3511_v38 = vadd.f32 %v3471_v15, %v6165_v31 }
0x18bd   :  { %v3569_v62 = vpop.xlane.xlu0 %3568 }
0x18be   :  { %v3492_v49 = vpop.xlane.xlu1 %3491 }
0x18bf   :  { %v6263_v47 = vadd.f32 %v3492_v49, %v3444_v30  ;;  %v6278_v49 = vmul.f32 0.015625, %v3511_v38 }
0x18c1   :  { %v3575_v12 = vpop.xlane.xlu0 %3574  ;;  %v3703_v46 = vmul.f32 %v6278_v49, %v6278_v49 }
0x18c2   :  { %v3498_v41 = vpop.xlane.xlu1 %3497 }
0x18c3   :  { %v6265_v33 = vadd.f32 %v3498_v41, %v3450_v51  ;;  %v3513_v41 = vadd.f32 %v3477_v13, %v6173_v16  ;;  %v3701_v51 = vmul.f32 %v3669_v8, %v3669_v8 }
0x18c5   :  { %v6267_v56 = vpop.xlane.xlu0 %3580  ;;  %v6285_v31 = vmul.f32 0.015625, %v3513_v41 }
0x18c6   :  { %v3504_v55 = vpop.xlane.xlu1 %3503 }
0x18c7   :  { %v6269_v7 = vadd.f32 %v3504_v55, %v3456_v14 }
0x18c9   :  { %v6271_v61 = vpop.xlane.xlu0 %3586 }
0x18ca   :  { %v6273_v19 = vpop.xlane.xlu1 %3541 }
0x18cd   :  { %v3609_v10 = vpop.xlane.xlu0 %3608 }
0x18ce   :  { %v3653_v25 = vadd.f32 %v3609_v10, %v3545_v6  ;;  %v6276_v30 = vpop.xlane.xlu1 %3547 }
0x18d0   :  { %v3685_v50 = vmul.f32 0.015625, %v3653_v25  ;;  %v6290_v25 = vmul.f32 0.015625, %v3515_v44 }
0x18d1   :  { %v3615_v34 = vpop.xlane.xlu0 %3614 }
0x18d2   :  { %v3717_v14 = vsub.f32 %v3685_v50, %v3701_v51  ;;  %v3655_v55 = vadd.f32 %v3615_v34, %v3551_v45  ;;  %v6281_v53 = vpop.xlane.xlu1 %3553  ;;  %v3705_v50 = vmul.f32 %v6285_v31, %v6285_v31 }
0x18d4   :  { %v3733_v15 = vadd.f32 1e-05, %v3717_v14  ;;  %v3687_v6 = vmul.f32 0.015625, %v3655_v55 }
0x18d5   :  { %v3621_v38 = vpop.xlane.xlu0 %3620 }
0x18d6   :  { %5012 = vrsqrt.f32 %v3733_v15  ;;  %v3719_v10 = vsub.f32 %v3687_v6, %v3703_v46  ;;  %v3657_v16 = vadd.f32 %v3621_v38, %v3557_v60  ;;  %v6288_v13 = vpop.xlane.xlu1 %3559  ;;  %v3707_v60 = vmul.f32 %v6290_v25, %v6290_v25 }
0x18d7   :  { %v3765_v38 = vsub.f32 %v6034_v11, %v3669_v8 }
0x18d8   :  { %v3735_v34 = vadd.f32 1e-05, %v3719_v10  ;;  %v3689_v45 = vmul.f32 0.015625, %v3657_v16  ;;  %v6306_v16 = vmul.f32 0.015625, %v6247_v48 }
0x18d9   :  { %v3627_v51 = vpop.xlane.xlu0 %3626 }
0x18da   :  { %5014 = vrsqrt.f32 %v3735_v34  ;;  %v3721_v41 = vsub.f32 %v3689_v45, %v3705_v50  ;;  %v3659_v23 = vadd.f32 %v3627_v51, %v3563_v0  ;;  %v6294_v29 = vpop.xlane.xlu1 %3565  ;;  %v3829_v0 = vsub.f32 %v6032_v39, %v3669_v8 }
0x18db   :  { %v3709_v34 = vmul.f32 %v6297_v28, %v6297_v28  ;;  %v3767_v39 = vsub.f32 %v5971_v24, %v6278_v49  ;;  %v6321_v8 = vmul.f32 0.015625, %v6249_v59  ;;  %v3769_v59 = vsub.f32 %v5975_v26, %v6285_v31 }
0x18dc   :  { %v3737_v46 = vadd.f32 1e-05, %v3721_v41  ;;  %v3691_v14 = vmul.f32 0.015625, %v3659_v23 }
0x18dd   :  { %v3633_v55 = vpop.xlane.xlu0 %3632 }
0x18de   :  { %5016 = vrsqrt.f32 %v3737_v46  ;;  %v3723_v44 = vsub.f32 %v3691_v14, %v3707_v60  ;;  %v3661_v15 = vadd.f32 %v3633_v55, %v3569_v62  ;;  %v6301_v6 = vpop.xlane.xlu1 %3571  ;;  %v3711_v60 = vmul.f32 %v6306_v16, %v6306_v16 }
0x18df   :  { %v3508_v55 = vadd.f32 %v6253_v3, %v6140_v32  ;;  %v3713_v32 = vmul.f32 %v6321_v8, %v6321_v8 }
0x18e0   :  { %v5013_v10 = vpop.eup %5012  ;;  %v3739_v42 = vadd.f32 1e-05, %v3723_v44  ;;  %v3693_v50 = vmul.f32 0.015625, %v3661_v15 }
0x18e1   :  { %v3639_v23 = vpop.xlane.xlu0 %3638  ;;  %v6310_v45 = vmul.f32 %v5013_v10, %v3829_v0  ;;  %v6312_v51 = vmul.f32 %v5013_v10, %v3765_v38  ;;  %v6338_v10 = vmul.f32 0.015625, %v6251_v1 }
0x18e2   :  { %5018 = vrsqrt.f32 %v3739_v42  ;;  %v3725_v62 = vsub.f32 %v3693_v50, %v3709_v34  ;;  %v3663_v41 = vadd.f32 %v3639_v23, %v3575_v12  ;;  %v6314_v11 = vpop.xlane.xlu1 %3577  ;;  %v6342_v34 = vmul.f32 0.015625, %v3508_v55 }
0x18e4   :  { %v6318_v48 = vpop.eup %5014  ;;  %v3741_v46 = vadd.f32 1e-05, %v3725_v62  ;;  %v3695_v14 = vmul.f32 0.015625, %v3663_v41  ;;  %v3771_v41 = vsub.f32 %v5979_v2, %v6290_v25 }
0x18e5   :  { %v3645_v44 = vpop.xlane.xlu0 %3644  ;;  %v6328_v12 = vmul.f32 %v6318_v48, %v3767_v39 }
0x18e6   :  { %5020 = vrsqrt.f32 %v3741_v46  ;;  %v3727_v15 = vsub.f32 %v3695_v14, %v3711_v60  ;;  %v3665_v24 = vadd.f32 %v3645_v44, %v6267_v56  ;;  %v6331_v38 = vpop.xlane.xlu1 %3583  ;;  %v3510_v56 = vadd.f32 %v6255_v40, %v6151_v57 }
0x18e7   :  { %v3715_v57 = vmul.f32 %v6338_v10, %v6338_v10  ;;  %v3700_v44 = vmul.f32 %v6342_v34, %v6342_v34 }
0x18e8   :  { %v6335_v0 = vpop.eup %5016  ;;  %v3743_v42 = vadd.f32 1e-05, %v3727_v15  ;;  %v3697_v3 = vmul.f32 0.015625, %v3665_v24  ;;  %v6357_v14 = vmul.f32 0.015625, %v3510_v56 }
0x18e9   :  { %v3651_v50 = vpop.xlane.xlu0 %3650  ;;  %v6347_v23 = vmul.f32 %v6335_v0, %v3769_v59 }
0x18ea   :  { %5022 = vrsqrt.f32 %v3743_v42  ;;  %v3729_v26 = vsub.f32 %v3697_v3, %v3713_v32  ;;  %v3667_v62 = vadd.f32 %v3651_v50, %v6271_v61  ;;  %v3606_v1 = vpop.xlane.xlu1 %3605  ;;  %v3773_v42 = vsub.f32 %v6016_v63, %v6297_v28 }
0x18eb   :  { %v3652_v39 = vadd.f32 %v3606_v1, %v6273_v19  ;;  %v6370_v32 = vmul.f32 0.015625, %v6257_v52 }
0x18ec   :  { %v6353_v46 = vpop.eup %5018  ;;  %v3745_v60 = vadd.f32 1e-05, %v3729_v26  ;;  %v3699_v40 = vmul.f32 0.015625, %v3667_v62  ;;  %v3702_v26 = vmul.f32 %v6357_v14, %v6357_v14 }
0x18ed   :  { %v3684_v55 = vmul.f32 0.015625, %v3652_v39  ;;  %v6362_v61 = vmul.f32 %v6353_v46, %v3771_v41  ;;  %v3704_v39 = vmul.f32 %v6370_v32, %v6370_v32 }
0x18ee   :  { %5024 = vrsqrt.f32 %v3745_v60  ;;  %v3731_v2 = vsub.f32 %v3699_v40, %v3715_v57  ;;  %v3612_v15 = vpop.xlane.xlu1 %3611  ;;  %v6385_v60 = vmul.f32 0.015625, %v6259_v35 }
0x18ef   :  { %v3716_v19 = vsub.f32 %v3684_v55, %v3700_v44  ;;  %v3654_v24 = vadd.f32 %v3612_v15, %v6276_v30  ;;  %v3775_v30 = vsub.f32 %v6020_v22, %v6306_v16 }
0x18f0   :  { %v6365_v59 = vpop.eup %5020  ;;  %v3747_v3 = vadd.f32 1e-05, %v3731_v2 }
0x18f1   :  { %v3732_v56 = vadd.f32 1e-05, %v3716_v19  ;;  %v3686_v50 = vmul.f32 0.015625, %v3654_v24  ;;  %v6375_v1 = vmul.f32 %v6365_v59, %v3773_v42  ;;  %v6396_v19 = vmul.f32 0.015625, %v6261_v54 }
0x18f2   :  { %5026 = vrsqrt.f32 %v3747_v3  ;;  %v3618_v62 = vpop.xlane.xlu1 %3617  ;;  %v3706_v24 = vmul.f32 %v6385_v60, %v6385_v60  ;;  %v3764_v54 = vsub.f32 %v5963_v18, %v6342_v34 }
0x18f3   :  { %5028 = vrsqrt.f32 %v3732_v56  ;;  %v3718_v41 = vsub.f32 %v3686_v50, %v3702_v26  ;;  %v3656_v63 = vadd.f32 %v3618_v62, %v6281_v53  ;;  %v3777_v53 = vsub.f32 %v6024_v27, %v6321_v8 }
0x18f4   :  { %v6380_v52 = vpop.eup %5022  ;;  %v3828_v62 = vsub.f32 %v6090_v17, %v6342_v34  ;;  %v3766_v34 = vsub.f32 %v5967_v20, %v6357_v14  ;;  %v6438_v20 = vmul.f32 0.015625, %v6269_v7 }
0x18f5   :  { %v3734_v57 = vadd.f32 1e-05, %v3718_v41  ;;  %v3688_v40 = vmul.f32 0.015625, %v3656_v63  ;;  %v6388_v55 = vmul.f32 %v6380_v52, %v3775_v30  ;;  %v3708_v30 = vmul.f32 %v6396_v19, %v6396_v19 }
0x18f6   :  { %v3624_v44 = vpop.xlane.xlu1 %3623  ;;  %v6415_v63 = vmul.f32 0.015625, %v6263_v47  ;;  %v6428_v47 = vmul.f32 0.015625, %v6265_v33 }
0x18f7   :  { %5030 = vrsqrt.f32 %v3734_v57  ;;  %v3720_v22 = vsub.f32 %v3688_v40, %v3704_v39  ;;  %v3658_v2 = vadd.f32 %v3624_v44, %v6288_v13  ;;  %v3779_v13 = vsub.f32 %v6028_v4, %v6338_v10 }
0x18f8   :  { %v6391_v15 = vpop.eup %5024 }
0x18f9   :  { %v3736_v35 = vadd.f32 1e-05, %v3720_v22  ;;  %v3690_v42 = vmul.f32 0.015625, %v3658_v2  ;;  %v6401_v56 = vmul.f32 %v6391_v15, %v3777_v53  ;;  %v3710_v53 = vmul.f32 %v6415_v63, %v6415_v63 }
0x18fa   :  { %v3630_v3 = vpop.xlane.xlu1 %3629 }
0x18fb   :  { %5032 = vrsqrt.f32 %v3736_v35  ;;  %v3722_v50 = vsub.f32 %v3690_v42, %v3706_v24  ;;  %v3660_v26 = vadd.f32 %v3630_v3, %v6294_v29 }
0x18fc   :  { %v6406_v27 = vpop.eup %5026 }
0x18fd   :  { %v5029_v41 = vpop.eup %5028  ;;  %v3738_v4 = vadd.f32 1e-05, %v3722_v50  ;;  %v3692_v39 = vmul.f32 0.015625, %v3660_v26  ;;  %v6418_v57 = vmul.f32 %v6406_v27, %v3779_v13  ;;  %v3712_v26 = vmul.f32 %v6428_v47, %v6428_v47 }
0x18fe   :  { %v3636_v29 = vpop.xlane.xlu1 %3635  ;;  %v6420_v40 = vmul.f32 %v5029_v41, %v3828_v62  ;;  %v6422_v44 = vmul.f32 %v5029_v41, %v3764_v54  ;;  %v3831_v62 = vsub.f32 %v6040_v36, %v6278_v49  ;;  %v3714_v36 = vmul.f32 %v6438_v20, %v6438_v20 }
0x18ff   :  { %5034 = vrsqrt.f32 %v3738_v4  ;;  %v3724_v18 = vsub.f32 %v3692_v39, %v3708_v30  ;;  %v3662_v17 = vadd.f32 %v3636_v29, %v6301_v6  ;;  %v3768_v6 = vsub.f32 %v6042_v37, %v6370_v32 }
0x1900   :  { %v3833_v4 = vsub.f32 %v6048_v43, %v6285_v31  ;;  %v3832_v39 = vsub.f32 %v6105_v9, %v6370_v32  ;;  %v3770_v29 = vsub.f32 %v6050_v5, %v6385_v60  ;;  %v6462_v43 = vpop.permute.xlu0 %3879 }
0x1901   :  { %v5031_v22 = vpop.eup %5030  ;;  %v3740_v2 = vadd.f32 1e-05, %v3724_v18  ;;  %v3694_v35 = vmul.f32 0.015625, %v3662_v17 }
0x1902   :  { %v3642_v24 = vpop.xlane.xlu1 %3641  ;;  %v6432_v42 = vmul.f32 %v5031_v22, %v3766_v34  ;;  %v3849_v9 = vmul.f32 %v6335_v0, %v3833_v4 }
0x1903   :  { %v3726_v3 = vsub.f32 %v3694_v35, %v3710_v53  ;;  %v3664_v13 = vadd.f32 %v3642_v24, %v6314_v11  ;;  %5036 = vrsqrt.f32 %v3740_v2  ;;  %v3830_v11 = vsub.f32 %v6098_v21, %v6357_v14 }
0x1904   :  { %v3847_v21 = vmul.f32 %v6318_v48, %v3831_v62  ;;  %v6727_v48 = vld [vmem:[#allocation19_spill] sm:$0xff] }
0x1905   :  { %v5033_v33 = vpop.eup %5032  ;;  %v3742_v50 = vadd.f32 1e-05, %v3726_v3  ;;  %v3696_v54 = vmul.f32 0.015625, %v3664_v13  ;;  %v3846_v14 = vmul.f32 %v5031_v22, %v3830_v11  ;;  %v3835_v22 = vsub.f32 %v6727_v48, %v6290_v25  ;;  %v6730_v25 = vld [vmem:[#allocation21_spill] sm:$0xff] }
0x1906   :  { %v3648_v30 = vpop.xlane.xlu1 %3647  ;;  %v6444_v41 = vmul.f32 %v5033_v33, %v3768_v6  ;;  %v3848_v31 = vmul.f32 %v5033_v33, %v3832_v39  ;;  %v6728_v33 = vld [vmem:[#allocation20_spill] sm:$0xff]  ;;  %v3837_v62 = vsub.f32 %v6730_v25, %v6297_v28 }
0x1907   :  { %5038 = vrsqrt.f32 %v3742_v50  ;;  %v3728_v37 = vsub.f32 %v3696_v54, %v3712_v26  ;;  %v3666_v7 = vadd.f32 %v3648_v30, %v6331_v38  ;;  %v3834_v38 = vsub.f32 %v6112_v58, %v6385_v60  ;;  %v6729_v26 = vld [vmem:[#allocation28_spill] sm:$0xff] }
0x1908   :  { %v3851_v6 = vmul.f32 %v6353_v46, %v3835_v22  ;;  %v3772_v50 = vsub.f32 %v6728_v33, %v6396_v19  ;;  %v3836_v54 = vsub.f32 %v6729_v26, %v6396_v19  ;;  %v6731_v19 = vld [vmem:[#allocation22_spill] sm:$0xff]  ;;  %v6738_v26 = vld [vmem:[#allocation31_spill] sm:$0xff] }
0x1909   :  { %v5035_v49 = vpop.eup %5034  ;;  %v3744_v18 = vadd.f32 1e-05, %v3728_v37  ;;  %v3698_v17 = vmul.f32 0.015625, %v3666_v7 }
0x190a   :  { %v6460_v34 = vpop.permute.xlu1 %3860  ;;  %v6465_v5 = vmul.f32 %v5035_v49, %v3770_v29  ;;  %v3850_v60 = vmul.f32 %v5035_v49, %v3834_v38  ;;  %v3774_v29 = vsub.f32 %v6731_v19, %v6415_v63  ;;  %v6732_v49 = vld [vmem:[#allocation29_spill] sm:$0xff] }
0x190b   :  { %5040 = vrsqrt.f32 %v3744_v18  ;;  %v3730_v32 = vsub.f32 %v3698_v17, %v3714_v36  ;;  %v3866_v2 = vmul.f32 %v6460_v34, %v3847_v21  ;;  %v3865_v53 = vmul.f32 %v6460_v34, %v3846_v14  ;;  %v6733_v18 = vld [vmem:[#allocation23_spill] sm:$0xff]  ;;  %v6734_v21 = vld [vmem:[#allocation24_spill] sm:$0xff] }
0x190c   :  { %v3868_v58 = vmul.f32 %v6460_v34, %v3849_v9  ;;  %v3867_v3 = vmul.f32 %v6460_v34, %v3848_v31  ;;  %v3870_v30 = vmul.f32 %v6460_v34, %v3851_v6  ;;  %v3869_v11 = vmul.f32 %v6460_v34, %v3850_v60 }
0x190d   :  { %v3746_v35 = vadd.f32 1e-05, %v3730_v32  ;;  %v3885_v24 = vadd.f32 %v6462_v43, %v3866_v2  ;;  %v3884_v0 = vadd.f32 %v6462_v43, %v3865_v53  ;;  %v5037_v13 = vpop.eup %5036  ;;  %v3853_v36 = vmul.f32 %v6365_v59, %v3837_v62  ;;  %v6735_v53 = vld [vmem:[#allocation30_spill] sm:$0xff] }
0x190e   :  { %v3887_v46 = vadd.f32 %v6462_v43, %v3868_v58  ;;  %v3886_v7 = vadd.f32 %v6462_v43, %v3867_v3  ;;  %v3852_v4 = vmul.f32 %v5037_v13, %v3836_v54  ;;  %v6488_v39 = vmul.f32 %v5037_v13, %v3772_v50  ;;  %v6736_v58 = vld [vmem:[#allocation25_spill] sm:$0xff] }
0x190f   :  { %5042 = vrsqrt.f32 %v3746_v35  ;;  %3920 = vrot.lane.b32.xlu1 %v3885_v24, %s5176_s8  ;;  %3918 = vrot.lane.b32.xlu0 %v3884_v0, %s5176_s8  ;;  %v3838_v28 = vsub.f32 %v6732_v49, %v6415_v63  ;;  %v3839_v17 = vsub.f32 %v6733_v18, %v6306_v16  ;;  %v3776_v14 = vsub.f32 %v6734_v21, %v6428_v47  ;;  %v6737_v35 = vld [vmem:[#allocation26_spill] sm:$0xff] }
0x1910   :  { %v3872_v38 = vmul.f32 %v6460_v34, %v3853_v36  ;;  %v3889_v59 = vadd.f32 %v6462_v43, %v3870_v30  ;;  %v3888_v32 = vadd.f32 %v6462_v43, %v3869_v11  ;;  %v3871_v63 = vmul.f32 %v6460_v34, %v3852_v4 }
0x1911   :  { %v5039_v37 = vpop.eup %5038  ;;  %v3840_v48 = vsub.f32 %v6735_v53, %v6428_v47  ;;  %v3855_v16 = vmul.f32 %v6380_v52, %v3839_v17  ;;  %v3841_v60 = vsub.f32 %v6736_v58, %v6321_v8  ;;  %v3778_v24 = vsub.f32 %v6737_v35, %v6438_v20 }
0x1912   :  { %v6502_v9 = vmul.f32 %v5039_v37, %v3774_v29  ;;  %v3854_v2 = vmul.f32 %v5039_v37, %v3838_v28  ;;  %v3891_v0 = vadd.f32 %v6462_v43, %v3872_v38  ;;  %v3890_v13 = vadd.f32 %v6462_v43, %v3871_v63 }
0x1913   :  { %3924 = vrot.lane.b32.xlu1 %v3887_v46, %s5176_s8  ;;  %3922 = vrot.lane.b32.xlu0 %v3886_v7, %s5176_s8  ;;  %v3874_v47 = vmul.f32 %v6460_v34, %v3855_v16  ;;  %v3857_v52 = vmul.f32 %v6391_v15, %v3841_v60  ;;  %v3842_v8 = vsub.f32 %v6738_v26, %v6438_v20  ;;  %v6739_v7 = vld [vmem:[#allocation27_spill] sm:$0xff] }
0x1914   :  { %v3873_v6 = vmul.f32 %v6460_v34, %v3854_v2  ;;  %v3864_v46 = vmul.f32 %v6460_v34, %v6310_v45  ;;  %v3843_v4 = vsub.f32 %v6739_v7, %v6338_v10  ;;  %v3863_v36 = vmul.f32 %v6460_v34, %v6420_v40  ;;  %v4148_v10 = vld [vmem:[%s6695_s14] ss:$0 sm:$0xff]  ;;  %s5116_s14 = scalar_lea.vmem %s4013_s9, 256 }
0x1915   :  { %v5041_v31 = vpop.eup %5040  ;;  %v3876_v54 = vmul.f32 %v6460_v34, %v3857_v52  ;;  %v3893_v25 = vadd.f32 %v6462_v43, %v3874_v47  ;;  %p5117_p10 = scmp.ne.s32.totalorder %s4013_s9, %s5116_s14  ;;  %p5122_p12 = scmp.lt.s32.totalorder %s5116_s14, %s5116_s14 }
0x1916   :  { %v6512_v22 = vmul.f32 %v5041_v31, %v3776_v14  ;;  %v3856_v33 = vmul.f32 %v5041_v31, %v3840_v48  ;;  %v3892_v62 = vadd.f32 %v6462_v43, %v3873_v6  ;;  %v3883_v29 = vadd.f32 %v6462_v43, %v3864_v46 }
0x1917   :  { %3928 = vrot.lane.b32.xlu1 %v3889_v59, %s5176_s8  ;;  %3926 = vrot.lane.b32.xlu0 %v3888_v32, %s5176_s8  ;;  %v3895_v15 = vadd.f32 %v6462_v43, %v3876_v54  ;;  %v3859_v45 = vmul.f32 %v6406_v27, %v3843_v4  ;;  %v3882_v49 = vadd.f32 %v6462_v43, %v3863_v36  ;;  %p5123_p13 = por %p5122_p12, %p5121_p11 }
0x1918   :  { %v3875_v30 = vmul.f32 %v6460_v34, %v3856_v33 }
0x1919   :  { %v5043_v3 = vpop.eup %5042  ;;  %v3878_v28 = vmul.f32 %v6460_v34, %v3859_v45  ;;  %p5124_p0 = pnand %p5123_p13, %p5117_p10 }
0x191a   :  { %v6523_v50 = vmul.f32 %v5043_v3, %v3778_v24  ;;  %v3858_v11 = vmul.f32 %v5043_v3, %v3842_v8  ;;  %v3894_v20 = vadd.f32 %v6462_v43, %v3875_v30 }
0x191b   :  { %3932 = vrot.lane.b32.xlu1 %v3891_v0, %s5176_s8  ;;  %3930 = vrot.lane.b32.xlu0 %v3890_v13, %s5176_s8  ;;  %v3897_v40 = vadd.f32 %v6462_v43, %v3878_v28 }
0x191c   :  { %v3877_v37 = vmul.f32 %v6460_v34, %v3858_v11 }
0x191e   :  { %v3896_v19 = vadd.f32 %v6462_v43, %v3877_v37 }
0x191f   :  { %3936 = vrot.lane.b32.xlu1 %v3893_v25, %s5176_s8  ;;  %3934 = vrot.lane.b32.xlu0 %v3892_v62, %s5176_s8 }
0x1923   :  { %3940 = vrot.lane.b32.xlu1 %v3895_v15, %s5176_s8  ;;  %3938 = vrot.lane.b32.xlu0 %v3894_v20, %s5176_s8 }
0x1927   :  { %3942 = vrot.lane.b32.xlu0 %v3896_v19, %s5176_s8  ;;  %3916 = vrot.lane.b32.xlu1 %v3883_v29, %s5176_s8 }
0x192b   :  { %3914 = vrot.lane.b32.xlu1 %v3882_v49, %s5176_s8 }
0x192c   :  { %v4604_v18 = vpop.f32.mrb[40].mxu0 }
0x192d   :  { %v3375_v17 = vadd.f32 %v4604_v18, %v4148_v10  ;;  %v3358_v21 = vpop.f32.mrb[41].mxu0 }
0x192e   :  { %v3374_v14 = vadd.f32 %v4148_v10, %v3358_v21 }
0x192f   :  { %5044 = vtanh.f32 %v3375_v17  ;;  %3944 = vrot.lane.b32.xlu1 %v3897_v40, %s5176_s8 }
0x1930   :  { %5046 = vtanh.f32 %v3374_v14 }
0x1939   :  { %v5045_v27 = vpop.eup %5044 }
0x193a   :  { %v5047_v34 = vpop.eup %5046  ;;  %3379 = vst.msk [vmem:[#allocation13 + $0x8] sm:$0xff] %vm341_vm1, %v5045_v27 }
0x193b   :  { %3378 = vst.msk [vmem:[#allocation13] sm:$0xff] %vm341_vm1, %v5047_v34 }
0x193c   :  { %5127 = shalt.err (!%p5124_p0)
}
0x193d   :  { %s5128_s8 = scalar_lea.hbm %s6697_s16, 256 }
0x193e   :  { %p5129_p1 = scmp.ne.s32.totalorder %s6697_s16, %s5128_s8  ;;  %p5132_p2 = scmp.lt.u32.totalorder %s5128_s8, %s6697_s16 }
0x1940   :  { %p5134_p3 = pnand %p5132_p2, %p5129_p1 }
0x1942   :  { %5137 = shalt.err (!%p5134_p3)
}
0x1943   :  { %4018 = dma.vmem_to_hbm [thread:$0]  %s4013_s9, 256, %s6697_s16, [#allocation14], %s5170_s18, %s5170_s18, %s5171_s19   ;;  %vm3978_vm3 = vcmask 523264  }
0x1944   :  { %v6579_v43 = vld [vmem:[%s6692_s11] ss:$0 sm:$0xff]  ;;  %s5178_s11 = smov [#allocation12]  }
0x1945   :  { %v3799_v38 = vmul.f32 %v6579_v43, %v6328_v12  ;;  %v3798_v31 = vmul.f32 %v6579_v43, %v6432_v42  ;;  %v6588_v59 = vld [vmem:[%s6693_s12] ss:$0 sm:$0xff]  ;;  %v3801_v2 = vmul.f32 %v6579_v43, %v6347_v23  ;;  %v3800_v53 = vmul.f32 %v6579_v43, %v6444_v41  ;;  %s4000_s12 = sshll.u32 %s5178_s11, 4  ;;  %s4001_s12 = int_to_ptr.vmem [resolvable:$true] %s4000_s12 }
0x1946   :  { %v3803_v23 = vmul.f32 %v6579_v43, %v6362_v61  ;;  %v3802_v41 = vmul.f32 %v6579_v43, %v6465_v5  ;;  %v3805_v61 = vmul.f32 %v6579_v43, %v6375_v1  ;;  %v3804_v5 = vmul.f32 %v6579_v43, %v6488_v39  ;;  %s5138_s16 = scalar_lea.vmem %s4001_s12, 2048  ;;  %p5143_p5 = scmp.lt.s32.totalorder %s4001_s12, %s4001_s12 }
0x1947   :  { %v3815_v32 = vadd.f32 %v6588_v59, %v3799_v38  ;;  %v3814_v63 = vadd.f32 %v6588_v59, %v3798_v31  ;;  %v3817_v58 = vadd.f32 %v6588_v59, %v3801_v2  ;;  %v3816_v60 = vadd.f32 %v6588_v59, %v3800_v53  ;;  %p5139_p4 = scmp.ne.s32.totalorder %s4001_s12, %s5138_s16  ;;  %p5144_p6 = scmp.lt.s32.totalorder %s5138_s16, %s5138_s16 }
0x1948   :  { %v3819_v13 = vadd.f32 %v6588_v59, %v3803_v23  ;;  %v3818_v47 = vadd.f32 %v6588_v59, %v3802_v41  ;;  %v3821_v8 = vadd.f32 %v6588_v59, %v3805_v61  ;;  %v3820_v54 = vadd.f32 %v6588_v59, %v3804_v5 }
0x1949   :  { %v3807_v1 = vmul.f32 %v6579_v43, %v6388_v55  ;;  %v3806_v39 = vmul.f32 %v6579_v43, %v6502_v9  ;;  %v3809_v55 = vmul.f32 %v6579_v43, %v6401_v56  ;;  %v3808_v9 = vmul.f32 %v6579_v43, %v6512_v22  ;;  %p5145_p7 = por %p5144_p6, %p5143_p5 }
0x194a   :  { %v3810_v56 = vmul.f32 %v6579_v43, %v6523_v50  ;;  %v3797_v22 = vmul.f32 %v6579_v43, %v6312_v51  ;;  %v3796_v50 = vmul.f32 %v6579_v43, %v6422_v44  ;;  %v3811_v27 = vmul.f32 %v6579_v43, %v6418_v57 }
0x194b   :  { %v3823_v15 = vadd.f32 %v6588_v59, %v3807_v1  ;;  %v3822_v20 = vadd.f32 %v6588_v59, %v3806_v39  ;;  %v3825_v19 = vadd.f32 %v6588_v59, %v3809_v55  ;;  %v3824_v29 = vadd.f32 %v6588_v59, %v3808_v9  ;;  %p5146_p8 = pnand %p5145_p7, %p5139_p4 }
0x194c   :  { %v3826_v10 = vadd.f32 %v6588_v59, %v3810_v56  ;;  %v3813_v18 = vadd.f32 %v6588_v59, %v3797_v22  ;;  %v3812_v14 = vadd.f32 %v6588_v59, %v3796_v50  ;;  %v3827_v44 = vadd.f32 %v6588_v59, %v3811_v27 }
0x1981   :  { %v3921_v12 = vpop.permute.xlu1 %3920  ;;  %v3919_v48 = vpop.permute.xlu0 %3918 }
0x1982   :  { %v3965_v42 = vsel %vm341_vm1, %v3815_v32, %v3921_v12  ;;  %v3964_v16 = vsel %vm341_vm1, %v3814_v63, %v3919_v48 }
0x1983   :  { %3982 = vst.msk [vmem:[#allocation12 + $0x18] sm:$0xff] %vm3978_vm3, %v3965_v42  ;;  %3981 = vst.msk [vmem:[#allocation12 + $0x10] sm:$0xff] %vm3978_vm3, %v3964_v16 }
0x1985   :  { %v3925_v35 = vpop.permute.xlu1 %3924  ;;  %v3923_v24 = vpop.permute.xlu0 %3922 }
0x1986   :  { %v3967_v0 = vsel %vm341_vm1, %v3817_v58, %v3925_v35  ;;  %v3966_v3 = vsel %vm341_vm1, %v3816_v60, %v3923_v24 }
0x1987   :  { %3984 = vst.msk [vmem:[#allocation12 + $0x28] sm:$0xff] %vm3978_vm3, %v3967_v0  ;;  %3983 = vst.msk [vmem:[#allocation12 + $0x20] sm:$0xff] %vm3978_vm3, %v3966_v3 }
0x1989   :  { %v3929_v6 = vpop.permute.xlu1 %3928  ;;  %v3927_v33 = vpop.permute.xlu0 %3926 }
0x198a   :  { %v3969_v52 = vsel %vm341_vm1, %v3819_v13, %v3929_v6  ;;  %v3968_v26 = vsel %vm341_vm1, %v3818_v47, %v3927_v33 }
0x198b   :  { %3986 = vst.msk [vmem:[#allocation12 + $0x38] sm:$0xff] %vm3978_vm3, %v3969_v52  ;;  %3985 = vst.msk [vmem:[#allocation12 + $0x30] sm:$0xff] %vm3978_vm3, %v3968_v26 }
0x198d   :  { %v3933_v25 = vpop.permute.xlu1 %3932  ;;  %v3931_v62 = vpop.permute.xlu0 %3930 }
0x198e   :  { %v3971_v30 = vsel %vm341_vm1, %v3821_v8, %v3933_v25  ;;  %v3970_v11 = vsel %vm341_vm1, %v3820_v54, %v3931_v62 }
0x198f   :  { %3988 = vst.msk [vmem:[#allocation12 + $0x48] sm:$0xff] %vm3978_vm3, %v3971_v30  ;;  %3987 = vst.msk [vmem:[#allocation12 + $0x40] sm:$0xff] %vm3978_vm3, %v3970_v11 }
0x1991   :  { %v3937_v37 = vpop.permute.xlu1 %3936  ;;  %v3935_v46 = vpop.permute.xlu0 %3934 }
0x1992   :  { %v3973_v7 = vsel %vm341_vm1, %v3823_v15, %v3937_v37  ;;  %v3972_v4 = vsel %vm341_vm1, %v3822_v20, %v3935_v46 }
0x1993   :  { %3990 = vst.msk [vmem:[#allocation12 + $0x58] sm:$0xff] %vm3978_vm3, %v3973_v7  ;;  %3989 = vst.msk [vmem:[#allocation12 + $0x50] sm:$0xff] %vm3978_vm3, %v3972_v4 }
0x1995   :  { %v3941_v36 = vpop.permute.xlu1 %3940  ;;  %v3939_v45 = vpop.permute.xlu0 %3938 }
0x1996   :  { %v3975_v49 = vsel %vm341_vm1, %v3825_v19, %v3941_v36  ;;  %v3974_v28 = vsel %vm341_vm1, %v3824_v29, %v3939_v45 }
0x1997   :  { %3992 = vst.msk [vmem:[#allocation12 + $0x68] sm:$0xff] %vm3978_vm3, %v3975_v49  ;;  %3991 = vst.msk [vmem:[#allocation12 + $0x60] sm:$0xff] %vm3978_vm3, %v3974_v28 }
0x1999   :  { %v3943_v17 = vpop.permute.xlu0 %3942  ;;  %v3917_v21 = vpop.permute.xlu1 %3916 }
0x199a   :  { %v3976_v51 = vsel %vm341_vm1, %v3826_v10, %v3943_v17  ;;  %v3963_v40 = vsel %vm341_vm1, %v3813_v18, %v3917_v21 }
0x199b   :  { %3993 = vst.msk [vmem:[#allocation12 + $0x70] sm:$0xff] %vm3978_vm3, %v3976_v51  ;;  %3980 = vst.msk [vmem:[#allocation12 + $0x8] sm:$0xff] %vm3978_vm3, %v3963_v40 }
0x199d   :  { %v3915_v34 = vpop.permute.xlu1 %3914 }
0x199e   :  { %v3962_v38 = vsel %vm341_vm1, %v3812_v14, %v3915_v34 }
0x199f   :  { %3979 = vst.msk [vmem:[#allocation12] sm:$0xff] %vm3978_vm3, %v3962_v38 }
0x19a1   :  { %v3945_v31 = vpop.permute.xlu1 %3944 }
0x19a2   :  { %v3977_v32 = vsel %vm341_vm1, %v3827_v44, %v3945_v31 }
0x19a3   :  { %3994 = vst.msk [vmem:[#allocation12 + $0x78] sm:$0xff] %vm3978_vm3, %v3977_v32 }
0x19a4   :  { %5149 = shalt.err (!%p5146_p8)
}
0x19a5   :  { %s5150_s10 = scalar_lea.hbm %s6696_s15, 2048 }
0x19a6   :  { %p5151_p9 = scmp.ne.s32.totalorder %s6696_s15, %s5150_s10  ;;  %p5154_p10 = scmp.lt.u32.totalorder %s5150_s10, %s6696_s15 }
0x19a8   :  { %p5156_p11 = pnand %p5154_p10, %p5151_p9 }
0x19aa   :  { %5159 = shalt.err (!%p5156_p11)
}
0x19ab   :  { %4006 = dma.vmem_to_hbm [thread:$0]  %s4001_s12, 2048, %s6696_s15, [#allocation8], %s5170_s18, %s5170_s18, %s5171_s19  }
0x19ac   :  { %5164 = dma.done.wait [#allocation8], 2048  }
0x19ad   :  { %5165 = vsyncadd [#allocation8], 4294965248 }
0x19ae   :  { %5166 = dma.done.wait [#allocation14], 256  }
0x19af   :  { %5167 = vsyncadd [#allocation14], 4294967040 }
0x19b0   :  { %4025 = vsyncpa [#allocation7], 1 }
0x19b1   :  { %4026 = vsyncpa [#allocation10], 1 }
0x19b2   :  { %4027 = vsyncpa [#allocation8], 1 }
0x19b3   :  { %4028 = vsyncpa [#allocation14], 1 }

</bundles_post_ra>
